<compile_context>
chip_gen: v5e
topology: v5e:2x2
jax: 0.10.0
libtpu: 0.0.40
codegen_flags: <defaults>
</compile_context>

<pallas_src>
import jax
import jax.numpy as jnp
from jax.experimental import pallas as pl
from jax.experimental.pallas import tpu as pltpu

BATCH = 50                                        # matches `batch_size` in the PyTorch module
LANES = 128                                       # one full vreg lane row
SIZES = ((1, 8), (8, 10), (10, 14), (14, 8), (8, 1))   # (in, out) per Linear layer
N_PARAMS = sum(i * o + o for i, o in SIZES)       # 389 packed scalars


def _tree_sum(vals):
    """Balanced pairwise add-tree: shortens the serial VPU dependency chain."""
    while len(vals) > 1:
        nxt = [vals[i] + vals[i + 1] for i in range(0, len(vals) - 1, 2)]
        if len(vals) % 2:
            nxt.append(vals[-1])
        vals = nxt
    return vals[0]


def mlp_kernel(p_ref, x_ref, o_ref):
    """p_ref: SMEM f32[N_PARAMS] (per layer: W row-major (out,in), then bias).
    x_ref / o_ref: VMEM (1, LANES) with the batch on the lane axis."""
    h = [x_ref[...]]                              # list of (1, LANES) feature rows
    off = 0
    for layer, (fin, fout) in enumerate(SIZES):
        w_off = off
        b_off = off + fin * fout
        off = b_off + fout
        last = layer == len(SIZES) - 1
        new_h = []
        for o in range(fout):
            # scalar-broadcast multiplies (VPU), then a balanced add tree + bias
            terms = [p_ref[w_off + o * fin + i] * h[i] for i in range(fin)]
            acc = _tree_sum(terms) + p_ref[b_off + o]
            if not last:
                acc = jnp.maximum(acc, 0.0)       # fused ReLU
            new_h.append(acc)
        h = new_h
    o_ref[...] = h[0]                             # lane-dense unmasked store


def pack_params(params):
    """params: list of (W (out,in), b (out,)) in torch layout -> flat f32[N_PARAMS]."""
    parts = []
    for w, b in params:
        parts.append(jnp.asarray(w, jnp.float32).reshape(-1))   # row-major (out, in)
        parts.append(jnp.asarray(b, jnp.float32).reshape(-1))
    return jnp.concatenate(parts)


_mlp_call = pl.pallas_call(
    mlp_kernel,
    out_shape=jax.ShapeDtypeStruct((1, LANES), jnp.float32),
    grid=(),
    in_specs=[
        pl.BlockSpec(memory_space=pltpu.MemorySpace.SMEM),   # one packed param slab
        pl.BlockSpec((1, LANES), lambda: (0, 0)),            # x, batch on lanes
    ],
    out_specs=pl.BlockSpec((1, LANES), lambda: (0, 0)),
)
# TODO(synk): if this forward is called over many independent batches, add a grid
# over batches (params held in SMEM across it) marked "parallel" so both v7x TCs work.


@jax.jit
def mlp_forward(x, packed_params):
    """x: (BATCH,) array. Returns (BATCH,) latent, matching latent.view(batch_size)."""
    x = x.astype(jnp.float32)
    x_pad = jnp.zeros((1, LANES), jnp.float32).at[0, :BATCH].set(x)
    out = _mlp_call(packed_params, x_pad)
    return out[0, :BATCH]


def init_params(key):
    """Deterministic synthetic params with torch nn.Linear layout: W (out,in), b (out,)."""
    params = []
    for fan_in, fan_out in SIZES:
        key, kw, kb = jax.random.split(key, 3)
        bound = 1.0 / jnp.sqrt(fan_in)            # torch.nn.Linear default uniform bound
        w = jax.random.uniform(kw, (fan_out, fan_in), jnp.float32, -bound, bound)
        b = jax.random.uniform(kb, (fan_out,), jnp.float32, -bound, bound)
        params.append((w, b))
    return params


if __name__ == "__main__":
    key = jax.random.PRNGKey(0)
    key, kx = jax.random.split(key)

    params = init_params(key)
    packed = pack_params(params)
    x = jax.random.normal(kx, (BATCH,), jnp.float32)

    latent = mlp_forward(x, packed)
    jax.block_until_ready(latent)

    # plain-JAX reference (dense form, torch layout)
    ref = x.reshape(BATCH, 1)
    for idx, (w, b) in enumerate(params):
        ref = ref @ w.T + b
        if idx < len(params) - 1:
            ref = jnp.maximum(ref, 0.0)
    ref = ref.reshape(BATCH)
    assert jnp.allclose(latent, ref, atol=1e-5), "mismatch vs reference"

    print("KERNEL_OK")
</pallas_src>

<mosaic_0001>
module attributes {stable_mosaic.version = 11 : i64} {
  func.func @mlp_kernel(%arg0: memref<389xf32, #tpu.memory_space<smem>>, %arg1: memref<1x128xf32, #tpu.memory_space<vmem>>, %arg2: memref<1x128xf32, #tpu.memory_space<vmem>>) attributes {dimension_semantics = [], scalar_prefetch = 0 : i64, scratch_operands = 0 : i64, tpu.core_type = #tpu.core_type<tc>} {
    %c0 = arith.constant 0 : index
    %c0_0 = arith.constant 0 : index
    %0 = vector.load %arg1[%c0, %c0_0] : memref<1x128xf32, #tpu.memory_space<vmem>>, vector<1x128xf32>
    %c0_1 = arith.constant 0 : index
    %1 = memref.load %arg0[%c0_1] : memref<389xf32, #tpu.memory_space<smem>>
    %2 = vector.broadcast %1 : f32 to vector<1x128xf32>
    %3 = arith.mulf %2, %0 : vector<1x128xf32>
    %c8 = arith.constant 8 : index
    %4 = memref.load %arg0[%c8] : memref<389xf32, #tpu.memory_space<smem>>
    %5 = vector.broadcast %4 : f32 to vector<1x128xf32>
    %6 = arith.addf %3, %5 : vector<1x128xf32>
    %cst = arith.constant 0.000000e+00 : f32
    %7 = vector.broadcast %cst : f32 to vector<1x128xf32>
    %8 = arith.maximumf %6, %7 : vector<1x128xf32>
    %c1 = arith.constant 1 : index
    %9 = memref.load %arg0[%c1] : memref<389xf32, #tpu.memory_space<smem>>
    %10 = vector.broadcast %9 : f32 to vector<1x128xf32>
    %11 = arith.mulf %10, %0 : vector<1x128xf32>
    %c9 = arith.constant 9 : index
    %12 = memref.load %arg0[%c9] : memref<389xf32, #tpu.memory_space<smem>>
    %13 = vector.broadcast %12 : f32 to vector<1x128xf32>
    %14 = arith.addf %11, %13 : vector<1x128xf32>
    %cst_2 = arith.constant 0.000000e+00 : f32
    %15 = vector.broadcast %cst_2 : f32 to vector<1x128xf32>
    %16 = arith.maximumf %14, %15 : vector<1x128xf32>
    %c2 = arith.constant 2 : index
    %17 = memref.load %arg0[%c2] : memref<389xf32, #tpu.memory_space<smem>>
    %18 = vector.broadcast %17 : f32 to vector<1x128xf32>
    %19 = arith.mulf %18, %0 : vector<1x128xf32>
    %c10 = arith.constant 10 : index
    %20 = memref.load %arg0[%c10] : memref<389xf32, #tpu.memory_space<smem>>
    %21 = vector.broadcast %20 : f32 to vector<1x128xf32>
    %22 = arith.addf %19, %21 : vector<1x128xf32>
    %cst_3 = arith.constant 0.000000e+00 : f32
    %23 = vector.broadcast %cst_3 : f32 to vector<1x128xf32>
    %24 = arith.maximumf %22, %23 : vector<1x128xf32>
    %c3 = arith.constant 3 : index
    %25 = memref.load %arg0[%c3] : memref<389xf32, #tpu.memory_space<smem>>
    %26 = vector.broadcast %25 : f32 to vector<1x128xf32>
    %27 = arith.mulf %26, %0 : vector<1x128xf32>
    %c11 = arith.constant 11 : index
    %28 = memref.load %arg0[%c11] : memref<389xf32, #tpu.memory_space<smem>>
    %29 = vector.broadcast %28 : f32 to vector<1x128xf32>
    %30 = arith.addf %27, %29 : vector<1x128xf32>
    %cst_4 = arith.constant 0.000000e+00 : f32
    %31 = vector.broadcast %cst_4 : f32 to vector<1x128xf32>
    %32 = arith.maximumf %30, %31 : vector<1x128xf32>
    %c4 = arith.constant 4 : index
    %33 = memref.load %arg0[%c4] : memref<389xf32, #tpu.memory_space<smem>>
    %34 = vector.broadcast %33 : f32 to vector<1x128xf32>
    %35 = arith.mulf %34, %0 : vector<1x128xf32>
    %c12 = arith.constant 12 : index
    %36 = memref.load %arg0[%c12] : memref<389xf32, #tpu.memory_space<smem>>
    %37 = vector.broadcast %36 : f32 to vector<1x128xf32>
    %38 = arith.addf %35, %37 : vector<1x128xf32>
    %cst_5 = arith.constant 0.000000e+00 : f32
    %39 = vector.broadcast %cst_5 : f32 to vector<1x128xf32>
    %40 = arith.maximumf %38, %39 : vector<1x128xf32>
    %c5 = arith.constant 5 : index
    %41 = memref.load %arg0[%c5] : memref<389xf32, #tpu.memory_space<smem>>
    %42 = vector.broadcast %41 : f32 to vector<1x128xf32>
    %43 = arith.mulf %42, %0 : vector<1x128xf32>
    %c13 = arith.constant 13 : index
    %44 = memref.load %arg0[%c13] : memref<389xf32, #tpu.memory_space<smem>>
    %45 = vector.broadcast %44 : f32 to vector<1x128xf32>
    %46 = arith.addf %43, %45 : vector<1x128xf32>
    %cst_6 = arith.constant 0.000000e+00 : f32
    %47 = vector.broadcast %cst_6 : f32 to vector<1x128xf32>
    %48 = arith.maximumf %46, %47 : vector<1x128xf32>
    %c6 = arith.constant 6 : index
    %49 = memref.load %arg0[%c6] : memref<389xf32, #tpu.memory_space<smem>>
    %50 = vector.broadcast %49 : f32 to vector<1x128xf32>
    %51 = arith.mulf %50, %0 : vector<1x128xf32>
    %c14 = arith.constant 14 : index
    %52 = memref.load %arg0[%c14] : memref<389xf32, #tpu.memory_space<smem>>
    %53 = vector.broadcast %52 : f32 to vector<1x128xf32>
    %54 = arith.addf %51, %53 : vector<1x128xf32>
    %cst_7 = arith.constant 0.000000e+00 : f32
    %55 = vector.broadcast %cst_7 : f32 to vector<1x128xf32>
    %56 = arith.maximumf %54, %55 : vector<1x128xf32>
    %c7 = arith.constant 7 : index
    %57 = memref.load %arg0[%c7] : memref<389xf32, #tpu.memory_space<smem>>
    %58 = vector.broadcast %57 : f32 to vector<1x128xf32>
    %59 = arith.mulf %58, %0 : vector<1x128xf32>
    %c15 = arith.constant 15 : index
    %60 = memref.load %arg0[%c15] : memref<389xf32, #tpu.memory_space<smem>>
    %61 = vector.broadcast %60 : f32 to vector<1x128xf32>
    %62 = arith.addf %59, %61 : vector<1x128xf32>
    %cst_8 = arith.constant 0.000000e+00 : f32
    %63 = vector.broadcast %cst_8 : f32 to vector<1x128xf32>
    %64 = arith.maximumf %62, %63 : vector<1x128xf32>
    %c16 = arith.constant 16 : index
    %65 = memref.load %arg0[%c16] : memref<389xf32, #tpu.memory_space<smem>>
    %66 = vector.broadcast %65 : f32 to vector<1x128xf32>
    %67 = arith.mulf %66, %8 : vector<1x128xf32>
    %c17 = arith.constant 17 : index
    %68 = memref.load %arg0[%c17] : memref<389xf32, #tpu.memory_space<smem>>
    %69 = vector.broadcast %68 : f32 to vector<1x128xf32>
    %70 = arith.mulf %69, %16 : vector<1x128xf32>
    %c18 = arith.constant 18 : index
    %71 = memref.load %arg0[%c18] : memref<389xf32, #tpu.memory_space<smem>>
    %72 = vector.broadcast %71 : f32 to vector<1x128xf32>
    %73 = arith.mulf %72, %24 : vector<1x128xf32>
    %c19 = arith.constant 19 : index
    %74 = memref.load %arg0[%c19] : memref<389xf32, #tpu.memory_space<smem>>
    %75 = vector.broadcast %74 : f32 to vector<1x128xf32>
    %76 = arith.mulf %75, %32 : vector<1x128xf32>
    %c20 = arith.constant 20 : index
    %77 = memref.load %arg0[%c20] : memref<389xf32, #tpu.memory_space<smem>>
    %78 = vector.broadcast %77 : f32 to vector<1x128xf32>
    %79 = arith.mulf %78, %40 : vector<1x128xf32>
    %c21 = arith.constant 21 : index
    %80 = memref.load %arg0[%c21] : memref<389xf32, #tpu.memory_space<smem>>
    %81 = vector.broadcast %80 : f32 to vector<1x128xf32>
    %82 = arith.mulf %81, %48 : vector<1x128xf32>
    %c22 = arith.constant 22 : index
    %83 = memref.load %arg0[%c22] : memref<389xf32, #tpu.memory_space<smem>>
    %84 = vector.broadcast %83 : f32 to vector<1x128xf32>
    %85 = arith.mulf %84, %56 : vector<1x128xf32>
    %c23 = arith.constant 23 : index
    %86 = memref.load %arg0[%c23] : memref<389xf32, #tpu.memory_space<smem>>
    %87 = vector.broadcast %86 : f32 to vector<1x128xf32>
    %88 = arith.mulf %87, %64 : vector<1x128xf32>
    %89 = arith.addf %67, %70 : vector<1x128xf32>
    %90 = arith.addf %73, %76 : vector<1x128xf32>
    %91 = arith.addf %79, %82 : vector<1x128xf32>
    %92 = arith.addf %85, %88 : vector<1x128xf32>
    %93 = arith.addf %89, %90 : vector<1x128xf32>
    %94 = arith.addf %91, %92 : vector<1x128xf32>
    %95 = arith.addf %93, %94 : vector<1x128xf32>
    %c96 = arith.constant 96 : index
    %96 = memref.load %arg0[%c96] : memref<389xf32, #tpu.memory_space<smem>>
    %97 = vector.broadcast %96 : f32 to vector<1x128xf32>
    %98 = arith.addf %95, %97 : vector<1x128xf32>
    %cst_9 = arith.constant 0.000000e+00 : f32
    %99 = vector.broadcast %cst_9 : f32 to vector<1x128xf32>
    %100 = arith.maximumf %98, %99 : vector<1x128xf32>
    %c24 = arith.constant 24 : index
    %101 = memref.load %arg0[%c24] : memref<389xf32, #tpu.memory_space<smem>>
    %102 = vector.broadcast %101 : f32 to vector<1x128xf32>
    %103 = arith.mulf %102, %8 : vector<1x128xf32>
    %c25 = arith.constant 25 : index
    %104 = memref.load %arg0[%c25] : memref<389xf32, #tpu.memory_space<smem>>
    %105 = vector.broadcast %104 : f32 to vector<1x128xf32>
    %106 = arith.mulf %105, %16 : vector<1x128xf32>
    %c26 = arith.constant 26 : index
    %107 = memref.load %arg0[%c26] : memref<389xf32, #tpu.memory_space<smem>>
    %108 = vector.broadcast %107 : f32 to vector<1x128xf32>
    %109 = arith.mulf %108, %24 : vector<1x128xf32>
    %c27 = arith.constant 27 : index
    %110 = memref.load %arg0[%c27] : memref<389xf32, #tpu.memory_space<smem>>
    %111 = vector.broadcast %110 : f32 to vector<1x128xf32>
    %112 = arith.mulf %111, %32 : vector<1x128xf32>
    %c28 = arith.constant 28 : index
    %113 = memref.load %arg0[%c28] : memref<389xf32, #tpu.memory_space<smem>>
    %114 = vector.broadcast %113 : f32 to vector<1x128xf32>
    %115 = arith.mulf %114, %40 : vector<1x128xf32>
    %c29 = arith.constant 29 : index
    %116 = memref.load %arg0[%c29] : memref<389xf32, #tpu.memory_space<smem>>
    %117 = vector.broadcast %116 : f32 to vector<1x128xf32>
    %118 = arith.mulf %117, %48 : vector<1x128xf32>
    %c30 = arith.constant 30 : index
    %119 = memref.load %arg0[%c30] : memref<389xf32, #tpu.memory_space<smem>>
    %120 = vector.broadcast %119 : f32 to vector<1x128xf32>
    %121 = arith.mulf %120, %56 : vector<1x128xf32>
    %c31 = arith.constant 31 : index
    %122 = memref.load %arg0[%c31] : memref<389xf32, #tpu.memory_space<smem>>
    %123 = vector.broadcast %122 : f32 to vector<1x128xf32>
    %124 = arith.mulf %123, %64 : vector<1x128xf32>
    %125 = arith.addf %103, %106 : vector<1x128xf32>
    %126 = arith.addf %109, %112 : vector<1x128xf32>
    %127 = arith.addf %115, %118 : vector<1x128xf32>
    %128 = arith.addf %121, %124 : vector<1x128xf32>
    %129 = arith.addf %125, %126 : vector<1x128xf32>
    %130 = arith.addf %127, %128 : vector<1x128xf32>
    %131 = arith.addf %129, %130 : vector<1x128xf32>
    %c97 = arith.constant 97 : index
    %132 = memref.load %arg0[%c97] : memref<389xf32, #tpu.memory_space<smem>>
    %133 = vector.broadcast %132 : f32 to vector<1x128xf32>
    %134 = arith.addf %131, %133 : vector<1x128xf32>
    %cst_10 = arith.constant 0.000000e+00 : f32
    %135 = vector.broadcast %cst_10 : f32 to vector<1x128xf32>
    %136 = arith.maximumf %134, %135 : vector<1x128xf32>
    %c32 = arith.constant 32 : index
    %137 = memref.load %arg0[%c32] : memref<389xf32, #tpu.memory_space<smem>>
    %138 = vector.broadcast %137 : f32 to vector<1x128xf32>
    %139 = arith.mulf %138, %8 : vector<1x128xf32>
    %c33 = arith.constant 33 : index
    %140 = memref.load %arg0[%c33] : memref<389xf32, #tpu.memory_space<smem>>
    %141 = vector.broadcast %140 : f32 to vector<1x128xf32>
    %142 = arith.mulf %141, %16 : vector<1x128xf32>
    %c34 = arith.constant 34 : index
    %143 = memref.load %arg0[%c34] : memref<389xf32, #tpu.memory_space<smem>>
    %144 = vector.broadcast %143 : f32 to vector<1x128xf32>
    %145 = arith.mulf %144, %24 : vector<1x128xf32>
    %c35 = arith.constant 35 : index
    %146 = memref.load %arg0[%c35] : memref<389xf32, #tpu.memory_space<smem>>
    %147 = vector.broadcast %146 : f32 to vector<1x128xf32>
    %148 = arith.mulf %147, %32 : vector<1x128xf32>
    %c36 = arith.constant 36 : index
    %149 = memref.load %arg0[%c36] : memref<389xf32, #tpu.memory_space<smem>>
    %150 = vector.broadcast %149 : f32 to vector<1x128xf32>
    %151 = arith.mulf %150, %40 : vector<1x128xf32>
    %c37 = arith.constant 37 : index
    %152 = memref.load %arg0[%c37] : memref<389xf32, #tpu.memory_space<smem>>
    %153 = vector.broadcast %152 : f32 to vector<1x128xf32>
    %154 = arith.mulf %153, %48 : vector<1x128xf32>
    %c38 = arith.constant 38 : index
    %155 = memref.load %arg0[%c38] : memref<389xf32, #tpu.memory_space<smem>>
    %156 = vector.broadcast %155 : f32 to vector<1x128xf32>
    %157 = arith.mulf %156, %56 : vector<1x128xf32>
    %c39 = arith.constant 39 : index
    %158 = memref.load %arg0[%c39] : memref<389xf32, #tpu.memory_space<smem>>
    %159 = vector.broadcast %158 : f32 to vector<1x128xf32>
    %160 = arith.mulf %159, %64 : vector<1x128xf32>
    %161 = arith.addf %139, %142 : vector<1x128xf32>
    %162 = arith.addf %145, %148 : vector<1x128xf32>
    %163 = arith.addf %151, %154 : vector<1x128xf32>
    %164 = arith.addf %157, %160 : vector<1x128xf32>
    %165 = arith.addf %161, %162 : vector<1x128xf32>
    %166 = arith.addf %163, %164 : vector<1x128xf32>
    %167 = arith.addf %165, %166 : vector<1x128xf32>
    %c98 = arith.constant 98 : index
    %168 = memref.load %arg0[%c98] : memref<389xf32, #tpu.memory_space<smem>>
    %169 = vector.broadcast %168 : f32 to vector<1x128xf32>
    %170 = arith.addf %167, %169 : vector<1x128xf32>
    %cst_11 = arith.constant 0.000000e+00 : f32
    %171 = vector.broadcast %cst_11 : f32 to vector<1x128xf32>
    %172 = arith.maximumf %170, %171 : vector<1x128xf32>
    %c40 = arith.constant 40 : index
    %173 = memref.load %arg0[%c40] : memref<389xf32, #tpu.memory_space<smem>>
    %174 = vector.broadcast %173 : f32 to vector<1x128xf32>
    %175 = arith.mulf %174, %8 : vector<1x128xf32>
    %c41 = arith.constant 41 : index
    %176 = memref.load %arg0[%c41] : memref<389xf32, #tpu.memory_space<smem>>
    %177 = vector.broadcast %176 : f32 to vector<1x128xf32>
    %178 = arith.mulf %177, %16 : vector<1x128xf32>
    %c42 = arith.constant 42 : index
    %179 = memref.load %arg0[%c42] : memref<389xf32, #tpu.memory_space<smem>>
    %180 = vector.broadcast %179 : f32 to vector<1x128xf32>
    %181 = arith.mulf %180, %24 : vector<1x128xf32>
    %c43 = arith.constant 43 : index
    %182 = memref.load %arg0[%c43] : memref<389xf32, #tpu.memory_space<smem>>
    %183 = vector.broadcast %182 : f32 to vector<1x128xf32>
    %184 = arith.mulf %183, %32 : vector<1x128xf32>
    %c44 = arith.constant 44 : index
    %185 = memref.load %arg0[%c44] : memref<389xf32, #tpu.memory_space<smem>>
    %186 = vector.broadcast %185 : f32 to vector<1x128xf32>
    %187 = arith.mulf %186, %40 : vector<1x128xf32>
    %c45 = arith.constant 45 : index
    %188 = memref.load %arg0[%c45] : memref<389xf32, #tpu.memory_space<smem>>
    %189 = vector.broadcast %188 : f32 to vector<1x128xf32>
    %190 = arith.mulf %189, %48 : vector<1x128xf32>
    %c46 = arith.constant 46 : index
    %191 = memref.load %arg0[%c46] : memref<389xf32, #tpu.memory_space<smem>>
    %192 = vector.broadcast %191 : f32 to vector<1x128xf32>
    %193 = arith.mulf %192, %56 : vector<1x128xf32>
    %c47 = arith.constant 47 : index
    %194 = memref.load %arg0[%c47] : memref<389xf32, #tpu.memory_space<smem>>
    %195 = vector.broadcast %194 : f32 to vector<1x128xf32>
    %196 = arith.mulf %195, %64 : vector<1x128xf32>
    %197 = arith.addf %175, %178 : vector<1x128xf32>
    %198 = arith.addf %181, %184 : vector<1x128xf32>
    %199 = arith.addf %187, %190 : vector<1x128xf32>
    %200 = arith.addf %193, %196 : vector<1x128xf32>
    %201 = arith.addf %197, %198 : vector<1x128xf32>
    %202 = arith.addf %199, %200 : vector<1x128xf32>
    %203 = arith.addf %201, %202 : vector<1x128xf32>
    %c99 = arith.constant 99 : index
    %204 = memref.load %arg0[%c99] : memref<389xf32, #tpu.memory_space<smem>>
    %205 = vector.broadcast %204 : f32 to vector<1x128xf32>
    %206 = arith.addf %203, %205 : vector<1x128xf32>
    %cst_12 = arith.constant 0.000000e+00 : f32
    %207 = vector.broadcast %cst_12 : f32 to vector<1x128xf32>
    %208 = arith.maximumf %206, %207 : vector<1x128xf32>
    %c48 = arith.constant 48 : index
    %209 = memref.load %arg0[%c48] : memref<389xf32, #tpu.memory_space<smem>>
    %210 = vector.broadcast %209 : f32 to vector<1x128xf32>
    %211 = arith.mulf %210, %8 : vector<1x128xf32>
    %c49 = arith.constant 49 : index
    %212 = memref.load %arg0[%c49] : memref<389xf32, #tpu.memory_space<smem>>
    %213 = vector.broadcast %212 : f32 to vector<1x128xf32>
    %214 = arith.mulf %213, %16 : vector<1x128xf32>
    %c50 = arith.constant 50 : index
    %215 = memref.load %arg0[%c50] : memref<389xf32, #tpu.memory_space<smem>>
    %216 = vector.broadcast %215 : f32 to vector<1x128xf32>
    %217 = arith.mulf %216, %24 : vector<1x128xf32>
    %c51 = arith.constant 51 : index
    %218 = memref.load %arg0[%c51] : memref<389xf32, #tpu.memory_space<smem>>
    %219 = vector.broadcast %218 : f32 to vector<1x128xf32>
    %220 = arith.mulf %219, %32 : vector<1x128xf32>
    %c52 = arith.constant 52 : index
    %221 = memref.load %arg0[%c52] : memref<389xf32, #tpu.memory_space<smem>>
    %222 = vector.broadcast %221 : f32 to vector<1x128xf32>
    %223 = arith.mulf %222, %40 : vector<1x128xf32>
    %c53 = arith.constant 53 : index
    %224 = memref.load %arg0[%c53] : memref<389xf32, #tpu.memory_space<smem>>
    %225 = vector.broadcast %224 : f32 to vector<1x128xf32>
    %226 = arith.mulf %225, %48 : vector<1x128xf32>
    %c54 = arith.constant 54 : index
    %227 = memref.load %arg0[%c54] : memref<389xf32, #tpu.memory_space<smem>>
    %228 = vector.broadcast %227 : f32 to vector<1x128xf32>
    %229 = arith.mulf %228, %56 : vector<1x128xf32>
    %c55 = arith.constant 55 : index
    %230 = memref.load %arg0[%c55] : memref<389xf32, #tpu.memory_space<smem>>
    %231 = vector.broadcast %230 : f32 to vector<1x128xf32>
    %232 = arith.mulf %231, %64 : vector<1x128xf32>
    %233 = arith.addf %211, %214 : vector<1x128xf32>
    %234 = arith.addf %217, %220 : vector<1x128xf32>
    %235 = arith.addf %223, %226 : vector<1x128xf32>
    %236 = arith.addf %229, %232 : vector<1x128xf32>
    %237 = arith.addf %233, %234 : vector<1x128xf32>
    %238 = arith.addf %235, %236 : vector<1x128xf32>
    %239 = arith.addf %237, %238 : vector<1x128xf32>
    %c100 = arith.constant 100 : index
    %240 = memref.load %arg0[%c100] : memref<389xf32, #tpu.memory_space<smem>>
    %241 = vector.broadcast %240 : f32 to vector<1x128xf32>
    %242 = arith.addf %239, %241 : vector<1x128xf32>
    %cst_13 = arith.constant 0.000000e+00 : f32
    %243 = vector.broadcast %cst_13 : f32 to vector<1x128xf32>
    %244 = arith.maximumf %242, %243 : vector<1x128xf32>
    %c56 = arith.constant 56 : index
    %245 = memref.load %arg0[%c56] : memref<389xf32, #tpu.memory_space<smem>>
    %246 = vector.broadcast %245 : f32 to vector<1x128xf32>
    %247 = arith.mulf %246, %8 : vector<1x128xf32>
    %c57 = arith.constant 57 : index
    %248 = memref.load %arg0[%c57] : memref<389xf32, #tpu.memory_space<smem>>
    %249 = vector.broadcast %248 : f32 to vector<1x128xf32>
    %250 = arith.mulf %249, %16 : vector<1x128xf32>
    %c58 = arith.constant 58 : index
    %251 = memref.load %arg0[%c58] : memref<389xf32, #tpu.memory_space<smem>>
    %252 = vector.broadcast %251 : f32 to vector<1x128xf32>
    %253 = arith.mulf %252, %24 : vector<1x128xf32>
    %c59 = arith.constant 59 : index
    %254 = memref.load %arg0[%c59] : memref<389xf32, #tpu.memory_space<smem>>
    %255 = vector.broadcast %254 : f32 to vector<1x128xf32>
    %256 = arith.mulf %255, %32 : vector<1x128xf32>
    %c60 = arith.constant 60 : index
    %257 = memref.load %arg0[%c60] : memref<389xf32, #tpu.memory_space<smem>>
    %258 = vector.broadcast %257 : f32 to vector<1x128xf32>
    %259 = arith.mulf %258, %40 : vector<1x128xf32>
    %c61 = arith.constant 61 : index
    %260 = memref.load %arg0[%c61] : memref<389xf32, #tpu.memory_space<smem>>
    %261 = vector.broadcast %260 : f32 to vector<1x128xf32>
    %262 = arith.mulf %261, %48 : vector<1x128xf32>
    %c62 = arith.constant 62 : index
    %263 = memref.load %arg0[%c62] : memref<389xf32, #tpu.memory_space<smem>>
    %264 = vector.broadcast %263 : f32 to vector<1x128xf32>
    %265 = arith.mulf %264, %56 : vector<1x128xf32>
    %c63 = arith.constant 63 : index
    %266 = memref.load %arg0[%c63] : memref<389xf32, #tpu.memory_space<smem>>
    %267 = vector.broadcast %266 : f32 to vector<1x128xf32>
    %268 = arith.mulf %267, %64 : vector<1x128xf32>
    %269 = arith.addf %247, %250 : vector<1x128xf32>
    %270 = arith.addf %253, %256 : vector<1x128xf32>
    %271 = arith.addf %259, %262 : vector<1x128xf32>
    %272 = arith.addf %265, %268 : vector<1x128xf32>
    %273 = arith.addf %269, %270 : vector<1x128xf32>
    %274 = arith.addf %271, %272 : vector<1x128xf32>
    %275 = arith.addf %273, %274 : vector<1x128xf32>
    %c101 = arith.constant 101 : index
    %276 = memref.load %arg0[%c101] : memref<389xf32, #tpu.memory_space<smem>>
    %277 = vector.broadcast %276 : f32 to vector<1x128xf32>
    %278 = arith.addf %275, %277 : vector<1x128xf32>
    %cst_14 = arith.constant 0.000000e+00 : f32
    %279 = vector.broadcast %cst_14 : f32 to vector<1x128xf32>
    %280 = arith.maximumf %278, %279 : vector<1x128xf32>
    %c64 = arith.constant 64 : index
    %281 = memref.load %arg0[%c64] : memref<389xf32, #tpu.memory_space<smem>>
    %282 = vector.broadcast %281 : f32 to vector<1x128xf32>
    %283 = arith.mulf %282, %8 : vector<1x128xf32>
    %c65 = arith.constant 65 : index
    %284 = memref.load %arg0[%c65] : memref<389xf32, #tpu.memory_space<smem>>
    %285 = vector.broadcast %284 : f32 to vector<1x128xf32>
    %286 = arith.mulf %285, %16 : vector<1x128xf32>
    %c66 = arith.constant 66 : index
    %287 = memref.load %arg0[%c66] : memref<389xf32, #tpu.memory_space<smem>>
    %288 = vector.broadcast %287 : f32 to vector<1x128xf32>
    %289 = arith.mulf %288, %24 : vector<1x128xf32>
    %c67 = arith.constant 67 : index
    %290 = memref.load %arg0[%c67] : memref<389xf32, #tpu.memory_space<smem>>
    %291 = vector.broadcast %290 : f32 to vector<1x128xf32>
    %292 = arith.mulf %291, %32 : vector<1x128xf32>
    %c68 = arith.constant 68 : index
    %293 = memref.load %arg0[%c68] : memref<389xf32, #tpu.memory_space<smem>>
    %294 = vector.broadcast %293 : f32 to vector<1x128xf32>
    %295 = arith.mulf %294, %40 : vector<1x128xf32>
    %c69 = arith.constant 69 : index
    %296 = memref.load %arg0[%c69] : memref<389xf32, #tpu.memory_space<smem>>
    %297 = vector.broadcast %296 : f32 to vector<1x128xf32>
    %298 = arith.mulf %297, %48 : vector<1x128xf32>
    %c70 = arith.constant 70 : index
    %299 = memref.load %arg0[%c70] : memref<389xf32, #tpu.memory_space<smem>>
    %300 = vector.broadcast %299 : f32 to vector<1x128xf32>
    %301 = arith.mulf %300, %56 : vector<1x128xf32>
    %c71 = arith.constant 71 : index
    %302 = memref.load %arg0[%c71] : memref<389xf32, #tpu.memory_space<smem>>
    %303 = vector.broadcast %302 : f32 to vector<1x128xf32>
    %304 = arith.mulf %303, %64 : vector<1x128xf32>
    %305 = arith.addf %283, %286 : vector<1x128xf32>
    %306 = arith.addf %289, %292 : vector<1x128xf32>
    %307 = arith.addf %295, %298 : vector<1x128xf32>
    %308 = arith.addf %301, %304 : vector<1x128xf32>
    %309 = arith.addf %305, %306 : vector<1x128xf32>
    %310 = arith.addf %307, %308 : vector<1x128xf32>
    %311 = arith.addf %309, %310 : vector<1x128xf32>
    %c102 = arith.constant 102 : index
    %312 = memref.load %arg0[%c102] : memref<389xf32, #tpu.memory_space<smem>>
    %313 = vector.broadcast %312 : f32 to vector<1x128xf32>
    %314 = arith.addf %311, %313 : vector<1x128xf32>
    %cst_15 = arith.constant 0.000000e+00 : f32
    %315 = vector.broadcast %cst_15 : f32 to vector<1x128xf32>
    %316 = arith.maximumf %314, %315 : vector<1x128xf32>
    %c72 = arith.constant 72 : index
    %317 = memref.load %arg0[%c72] : memref<389xf32, #tpu.memory_space<smem>>
    %318 = vector.broadcast %317 : f32 to vector<1x128xf32>
    %319 = arith.mulf %318, %8 : vector<1x128xf32>
    %c73 = arith.constant 73 : index
    %320 = memref.load %arg0[%c73] : memref<389xf32, #tpu.memory_space<smem>>
    %321 = vector.broadcast %320 : f32 to vector<1x128xf32>
    %322 = arith.mulf %321, %16 : vector<1x128xf32>
    %c74 = arith.constant 74 : index
    %323 = memref.load %arg0[%c74] : memref<389xf32, #tpu.memory_space<smem>>
    %324 = vector.broadcast %323 : f32 to vector<1x128xf32>
    %325 = arith.mulf %324, %24 : vector<1x128xf32>
    %c75 = arith.constant 75 : index
    %326 = memref.load %arg0[%c75] : memref<389xf32, #tpu.memory_space<smem>>
    %327 = vector.broadcast %326 : f32 to vector<1x128xf32>
    %328 = arith.mulf %327, %32 : vector<1x128xf32>
    %c76 = arith.constant 76 : index
    %329 = memref.load %arg0[%c76] : memref<389xf32, #tpu.memory_space<smem>>
    %330 = vector.broadcast %329 : f32 to vector<1x128xf32>
    %331 = arith.mulf %330, %40 : vector<1x128xf32>
    %c77 = arith.constant 77 : index
    %332 = memref.load %arg0[%c77] : memref<389xf32, #tpu.memory_space<smem>>
    %333 = vector.broadcast %332 : f32 to vector<1x128xf32>
    %334 = arith.mulf %333, %48 : vector<1x128xf32>
    %c78 = arith.constant 78 : index
    %335 = memref.load %arg0[%c78] : memref<389xf32, #tpu.memory_space<smem>>
    %336 = vector.broadcast %335 : f32 to vector<1x128xf32>
    %337 = arith.mulf %336, %56 : vector<1x128xf32>
    %c79 = arith.constant 79 : index
    %338 = memref.load %arg0[%c79] : memref<389xf32, #tpu.memory_space<smem>>
    %339 = vector.broadcast %338 : f32 to vector<1x128xf32>
    %340 = arith.mulf %339, %64 : vector<1x128xf32>
    %341 = arith.addf %319, %322 : vector<1x128xf32>
    %342 = arith.addf %325, %328 : vector<1x128xf32>
    %343 = arith.addf %331, %334 : vector<1x128xf32>
    %344 = arith.addf %337, %340 : vector<1x128xf32>
    %345 = arith.addf %341, %342 : vector<1x128xf32>
    %346 = arith.addf %343, %344 : vector<1x128xf32>
    %347 = arith.addf %345, %346 : vector<1x128xf32>
    %c103 = arith.constant 103 : index
    %348 = memref.load %arg0[%c103] : memref<389xf32, #tpu.memory_space<smem>>
    %349 = vector.broadcast %348 : f32 to vector<1x128xf32>
    %350 = arith.addf %347, %349 : vector<1x128xf32>
    %cst_16 = arith.constant 0.000000e+00 : f32
    %351 = vector.broadcast %cst_16 : f32 to vector<1x128xf32>
    %352 = arith.maximumf %350, %351 : vector<1x128xf32>
    %c80 = arith.constant 80 : index
    %353 = memref.load %arg0[%c80] : memref<389xf32, #tpu.memory_space<smem>>
    %354 = vector.broadcast %353 : f32 to vector<1x128xf32>
    %355 = arith.mulf %354, %8 : vector<1x128xf32>
    %c81 = arith.constant 81 : index
    %356 = memref.load %arg0[%c81] : memref<389xf32, #tpu.memory_space<smem>>
    %357 = vector.broadcast %356 : f32 to vector<1x128xf32>
    %358 = arith.mulf %357, %16 : vector<1x128xf32>
    %c82 = arith.constant 82 : index
    %359 = memref.load %arg0[%c82] : memref<389xf32, #tpu.memory_space<smem>>
    %360 = vector.broadcast %359 : f32 to vector<1x128xf32>
    %361 = arith.mulf %360, %24 : vector<1x128xf32>
    %c83 = arith.constant 83 : index
    %362 = memref.load %arg0[%c83] : memref<389xf32, #tpu.memory_space<smem>>
    %363 = vector.broadcast %362 : f32 to vector<1x128xf32>
    %364 = arith.mulf %363, %32 : vector<1x128xf32>
    %c84 = arith.constant 84 : index
    %365 = memref.load %arg0[%c84] : memref<389xf32, #tpu.memory_space<smem>>
    %366 = vector.broadcast %365 : f32 to vector<1x128xf32>
    %367 = arith.mulf %366, %40 : vector<1x128xf32>
    %c85 = arith.constant 85 : index
    %368 = memref.load %arg0[%c85] : memref<389xf32, #tpu.memory_space<smem>>
    %369 = vector.broadcast %368 : f32 to vector<1x128xf32>
    %370 = arith.mulf %369, %48 : vector<1x128xf32>
    %c86 = arith.constant 86 : index
    %371 = memref.load %arg0[%c86] : memref<389xf32, #tpu.memory_space<smem>>
    %372 = vector.broadcast %371 : f32 to vector<1x128xf32>
    %373 = arith.mulf %372, %56 : vector<1x128xf32>
    %c87 = arith.constant 87 : index
    %374 = memref.load %arg0[%c87] : memref<389xf32, #tpu.memory_space<smem>>
    %375 = vector.broadcast %374 : f32 to vector<1x128xf32>
    %376 = arith.mulf %375, %64 : vector<1x128xf32>
    %377 = arith.addf %355, %358 : vector<1x128xf32>
    %378 = arith.addf %361, %364 : vector<1x128xf32>
    %379 = arith.addf %367, %370 : vector<1x128xf32>
    %380 = arith.addf %373, %376 : vector<1x128xf32>
    %381 = arith.addf %377, %378 : vector<1x128xf32>
    %382 = arith.addf %379, %380 : vector<1x128xf32>
    %383 = arith.addf %381, %382 : vector<1x128xf32>
    %c104 = arith.constant 104 : index
    %384 = memref.load %arg0[%c104] : memref<389xf32, #tpu.memory_space<smem>>
    %385 = vector.broadcast %384 : f32 to vector<1x128xf32>
    %386 = arith.addf %383, %385 : vector<1x128xf32>
    %cst_17 = arith.constant 0.000000e+00 : f32
    %387 = vector.broadcast %cst_17 : f32 to vector<1x128xf32>
    %388 = arith.maximumf %386, %387 : vector<1x128xf32>
    %c88 = arith.constant 88 : index
    %389 = memref.load %arg0[%c88] : memref<389xf32, #tpu.memory_space<smem>>
    %390 = vector.broadcast %389 : f32 to vector<1x128xf32>
    %391 = arith.mulf %390, %8 : vector<1x128xf32>
    %c89 = arith.constant 89 : index
    %392 = memref.load %arg0[%c89] : memref<389xf32, #tpu.memory_space<smem>>
    %393 = vector.broadcast %392 : f32 to vector<1x128xf32>
    %394 = arith.mulf %393, %16 : vector<1x128xf32>
    %c90 = arith.constant 90 : index
    %395 = memref.load %arg0[%c90] : memref<389xf32, #tpu.memory_space<smem>>
    %396 = vector.broadcast %395 : f32 to vector<1x128xf32>
    %397 = arith.mulf %396, %24 : vector<1x128xf32>
    %c91 = arith.constant 91 : index
    %398 = memref.load %arg0[%c91] : memref<389xf32, #tpu.memory_space<smem>>
    %399 = vector.broadcast %398 : f32 to vector<1x128xf32>
    %400 = arith.mulf %399, %32 : vector<1x128xf32>
    %c92 = arith.constant 92 : index
    %401 = memref.load %arg0[%c92] : memref<389xf32, #tpu.memory_space<smem>>
    %402 = vector.broadcast %401 : f32 to vector<1x128xf32>
    %403 = arith.mulf %402, %40 : vector<1x128xf32>
    %c93 = arith.constant 93 : index
    %404 = memref.load %arg0[%c93] : memref<389xf32, #tpu.memory_space<smem>>
    %405 = vector.broadcast %404 : f32 to vector<1x128xf32>
    %406 = arith.mulf %405, %48 : vector<1x128xf32>
    %c94 = arith.constant 94 : index
    %407 = memref.load %arg0[%c94] : memref<389xf32, #tpu.memory_space<smem>>
    %408 = vector.broadcast %407 : f32 to vector<1x128xf32>
    %409 = arith.mulf %408, %56 : vector<1x128xf32>
    %c95 = arith.constant 95 : index
    %410 = memref.load %arg0[%c95] : memref<389xf32, #tpu.memory_space<smem>>
    %411 = vector.broadcast %410 : f32 to vector<1x128xf32>
    %412 = arith.mulf %411, %64 : vector<1x128xf32>
    %413 = arith.addf %391, %394 : vector<1x128xf32>
    %414 = arith.addf %397, %400 : vector<1x128xf32>
    %415 = arith.addf %403, %406 : vector<1x128xf32>
    %416 = arith.addf %409, %412 : vector<1x128xf32>
    %417 = arith.addf %413, %414 : vector<1x128xf32>
    %418 = arith.addf %415, %416 : vector<1x128xf32>
    %419 = arith.addf %417, %418 : vector<1x128xf32>
    %c105 = arith.constant 105 : index
    %420 = memref.load %arg0[%c105] : memref<389xf32, #tpu.memory_space<smem>>
    %421 = vector.broadcast %420 : f32 to vector<1x128xf32>
    %422 = arith.addf %419, %421 : vector<1x128xf32>
    %cst_18 = arith.constant 0.000000e+00 : f32
    %423 = vector.broadcast %cst_18 : f32 to vector<1x128xf32>
    %424 = arith.maximumf %422, %423 : vector<1x128xf32>
    %c106 = arith.constant 106 : index
    %425 = memref.load %arg0[%c106] : memref<389xf32, #tpu.memory_space<smem>>
    %426 = vector.broadcast %425 : f32 to vector<1x128xf32>
    %427 = arith.mulf %426, %100 : vector<1x128xf32>
    %c107 = arith.constant 107 : index
    %428 = memref.load %arg0[%c107] : memref<389xf32, #tpu.memory_space<smem>>
    %429 = vector.broadcast %428 : f32 to vector<1x128xf32>
    %430 = arith.mulf %429, %136 : vector<1x128xf32>
    %c108 = arith.constant 108 : index
    %431 = memref.load %arg0[%c108] : memref<389xf32, #tpu.memory_space<smem>>
    %432 = vector.broadcast %431 : f32 to vector<1x128xf32>
    %433 = arith.mulf %432, %172 : vector<1x128xf32>
    %c109 = arith.constant 109 : index
    %434 = memref.load %arg0[%c109] : memref<389xf32, #tpu.memory_space<smem>>
    %435 = vector.broadcast %434 : f32 to vector<1x128xf32>
    %436 = arith.mulf %435, %208 : vector<1x128xf32>
    %c110 = arith.constant 110 : index
    %437 = memref.load %arg0[%c110] : memref<389xf32, #tpu.memory_space<smem>>
    %438 = vector.broadcast %437 : f32 to vector<1x128xf32>
    %439 = arith.mulf %438, %244 : vector<1x128xf32>
    %c111 = arith.constant 111 : index
    %440 = memref.load %arg0[%c111] : memref<389xf32, #tpu.memory_space<smem>>
    %441 = vector.broadcast %440 : f32 to vector<1x128xf32>
    %442 = arith.mulf %441, %280 : vector<1x128xf32>
    %c112 = arith.constant 112 : index
    %443 = memref.load %arg0[%c112] : memref<389xf32, #tpu.memory_space<smem>>
    %444 = vector.broadcast %443 : f32 to vector<1x128xf32>
    %445 = arith.mulf %444, %316 : vector<1x128xf32>
    %c113 = arith.constant 113 : index
    %446 = memref.load %arg0[%c113] : memref<389xf32, #tpu.memory_space<smem>>
    %447 = vector.broadcast %446 : f32 to vector<1x128xf32>
    %448 = arith.mulf %447, %352 : vector<1x128xf32>
    %c114 = arith.constant 114 : index
    %449 = memref.load %arg0[%c114] : memref<389xf32, #tpu.memory_space<smem>>
    %450 = vector.broadcast %449 : f32 to vector<1x128xf32>
    %451 = arith.mulf %450, %388 : vector<1x128xf32>
    %c115 = arith.constant 115 : index
    %452 = memref.load %arg0[%c115] : memref<389xf32, #tpu.memory_space<smem>>
    %453 = vector.broadcast %452 : f32 to vector<1x128xf32>
    %454 = arith.mulf %453, %424 : vector<1x128xf32>
    %455 = arith.addf %427, %430 : vector<1x128xf32>
    %456 = arith.addf %433, %436 : vector<1x128xf32>
    %457 = arith.addf %439, %442 : vector<1x128xf32>
    %458 = arith.addf %445, %448 : vector<1x128xf32>
    %459 = arith.addf %451, %454 : vector<1x128xf32>
    %460 = arith.addf %455, %456 : vector<1x128xf32>
    %461 = arith.addf %457, %458 : vector<1x128xf32>
    %462 = arith.addf %460, %461 : vector<1x128xf32>
    %463 = arith.addf %462, %459 : vector<1x128xf32>
    %c246 = arith.constant 246 : index
    %464 = memref.load %arg0[%c246] : memref<389xf32, #tpu.memory_space<smem>>
    %465 = vector.broadcast %464 : f32 to vector<1x128xf32>
    %466 = arith.addf %463, %465 : vector<1x128xf32>
    %cst_19 = arith.constant 0.000000e+00 : f32
    %467 = vector.broadcast %cst_19 : f32 to vector<1x128xf32>
    %468 = arith.maximumf %466, %467 : vector<1x128xf32>
    %c116 = arith.constant 116 : index
    %469 = memref.load %arg0[%c116] : memref<389xf32, #tpu.memory_space<smem>>
    %470 = vector.broadcast %469 : f32 to vector<1x128xf32>
    %471 = arith.mulf %470, %100 : vector<1x128xf32>
    %c117 = arith.constant 117 : index
    %472 = memref.load %arg0[%c117] : memref<389xf32, #tpu.memory_space<smem>>
    %473 = vector.broadcast %472 : f32 to vector<1x128xf32>
    %474 = arith.mulf %473, %136 : vector<1x128xf32>
    %c118 = arith.constant 118 : index
    %475 = memref.load %arg0[%c118] : memref<389xf32, #tpu.memory_space<smem>>
    %476 = vector.broadcast %475 : f32 to vector<1x128xf32>
    %477 = arith.mulf %476, %172 : vector<1x128xf32>
    %c119 = arith.constant 119 : index
    %478 = memref.load %arg0[%c119] : memref<389xf32, #tpu.memory_space<smem>>
    %479 = vector.broadcast %478 : f32 to vector<1x128xf32>
    %480 = arith.mulf %479, %208 : vector<1x128xf32>
    %c120 = arith.constant 120 : index
    %481 = memref.load %arg0[%c120] : memref<389xf32, #tpu.memory_space<smem>>
    %482 = vector.broadcast %481 : f32 to vector<1x128xf32>
    %483 = arith.mulf %482, %244 : vector<1x128xf32>
    %c121 = arith.constant 121 : index
    %484 = memref.load %arg0[%c121] : memref<389xf32, #tpu.memory_space<smem>>
    %485 = vector.broadcast %484 : f32 to vector<1x128xf32>
    %486 = arith.mulf %485, %280 : vector<1x128xf32>
    %c122 = arith.constant 122 : index
    %487 = memref.load %arg0[%c122] : memref<389xf32, #tpu.memory_space<smem>>
    %488 = vector.broadcast %487 : f32 to vector<1x128xf32>
    %489 = arith.mulf %488, %316 : vector<1x128xf32>
    %c123 = arith.constant 123 : index
    %490 = memref.load %arg0[%c123] : memref<389xf32, #tpu.memory_space<smem>>
    %491 = vector.broadcast %490 : f32 to vector<1x128xf32>
    %492 = arith.mulf %491, %352 : vector<1x128xf32>
    %c124 = arith.constant 124 : index
    %493 = memref.load %arg0[%c124] : memref<389xf32, #tpu.memory_space<smem>>
    %494 = vector.broadcast %493 : f32 to vector<1x128xf32>
    %495 = arith.mulf %494, %388 : vector<1x128xf32>
    %c125 = arith.constant 125 : index
    %496 = memref.load %arg0[%c125] : memref<389xf32, #tpu.memory_space<smem>>
    %497 = vector.broadcast %496 : f32 to vector<1x128xf32>
    %498 = arith.mulf %497, %424 : vector<1x128xf32>
    %499 = arith.addf %471, %474 : vector<1x128xf32>
    %500 = arith.addf %477, %480 : vector<1x128xf32>
    %501 = arith.addf %483, %486 : vector<1x128xf32>
    %502 = arith.addf %489, %492 : vector<1x128xf32>
    %503 = arith.addf %495, %498 : vector<1x128xf32>
    %504 = arith.addf %499, %500 : vector<1x128xf32>
    %505 = arith.addf %501, %502 : vector<1x128xf32>
    %506 = arith.addf %504, %505 : vector<1x128xf32>
    %507 = arith.addf %506, %503 : vector<1x128xf32>
    %c247 = arith.constant 247 : index
    %508 = memref.load %arg0[%c247] : memref<389xf32, #tpu.memory_space<smem>>
    %509 = vector.broadcast %508 : f32 to vector<1x128xf32>
    %510 = arith.addf %507, %509 : vector<1x128xf32>
    %cst_20 = arith.constant 0.000000e+00 : f32
    %511 = vector.broadcast %cst_20 : f32 to vector<1x128xf32>
    %512 = arith.maximumf %510, %511 : vector<1x128xf32>
    %c126 = arith.constant 126 : index
    %513 = memref.load %arg0[%c126] : memref<389xf32, #tpu.memory_space<smem>>
    %514 = vector.broadcast %513 : f32 to vector<1x128xf32>
    %515 = arith.mulf %514, %100 : vector<1x128xf32>
    %c127 = arith.constant 127 : index
    %516 = memref.load %arg0[%c127] : memref<389xf32, #tpu.memory_space<smem>>
    %517 = vector.broadcast %516 : f32 to vector<1x128xf32>
    %518 = arith.mulf %517, %136 : vector<1x128xf32>
    %c128 = arith.constant 128 : index
    %519 = memref.load %arg0[%c128] : memref<389xf32, #tpu.memory_space<smem>>
    %520 = vector.broadcast %519 : f32 to vector<1x128xf32>
    %521 = arith.mulf %520, %172 : vector<1x128xf32>
    %c129 = arith.constant 129 : index
    %522 = memref.load %arg0[%c129] : memref<389xf32, #tpu.memory_space<smem>>
    %523 = vector.broadcast %522 : f32 to vector<1x128xf32>
    %524 = arith.mulf %523, %208 : vector<1x128xf32>
    %c130 = arith.constant 130 : index
    %525 = memref.load %arg0[%c130] : memref<389xf32, #tpu.memory_space<smem>>
    %526 = vector.broadcast %525 : f32 to vector<1x128xf32>
    %527 = arith.mulf %526, %244 : vector<1x128xf32>
    %c131 = arith.constant 131 : index
    %528 = memref.load %arg0[%c131] : memref<389xf32, #tpu.memory_space<smem>>
    %529 = vector.broadcast %528 : f32 to vector<1x128xf32>
    %530 = arith.mulf %529, %280 : vector<1x128xf32>
    %c132 = arith.constant 132 : index
    %531 = memref.load %arg0[%c132] : memref<389xf32, #tpu.memory_space<smem>>
    %532 = vector.broadcast %531 : f32 to vector<1x128xf32>
    %533 = arith.mulf %532, %316 : vector<1x128xf32>
    %c133 = arith.constant 133 : index
    %534 = memref.load %arg0[%c133] : memref<389xf32, #tpu.memory_space<smem>>
    %535 = vector.broadcast %534 : f32 to vector<1x128xf32>
    %536 = arith.mulf %535, %352 : vector<1x128xf32>
    %c134 = arith.constant 134 : index
    %537 = memref.load %arg0[%c134] : memref<389xf32, #tpu.memory_space<smem>>
    %538 = vector.broadcast %537 : f32 to vector<1x128xf32>
    %539 = arith.mulf %538, %388 : vector<1x128xf32>
    %c135 = arith.constant 135 : index
    %540 = memref.load %arg0[%c135] : memref<389xf32, #tpu.memory_space<smem>>
    %541 = vector.broadcast %540 : f32 to vector<1x128xf32>
    %542 = arith.mulf %541, %424 : vector<1x128xf32>
    %543 = arith.addf %515, %518 : vector<1x128xf32>
    %544 = arith.addf %521, %524 : vector<1x128xf32>
    %545 = arith.addf %527, %530 : vector<1x128xf32>
    %546 = arith.addf %533, %536 : vector<1x128xf32>
    %547 = arith.addf %539, %542 : vector<1x128xf32>
    %548 = arith.addf %543, %544 : vector<1x128xf32>
    %549 = arith.addf %545, %546 : vector<1x128xf32>
    %550 = arith.addf %548, %549 : vector<1x128xf32>
    %551 = arith.addf %550, %547 : vector<1x128xf32>
    %c248 = arith.constant 248 : index
    %552 = memref.load %arg0[%c248] : memref<389xf32, #tpu.memory_space<smem>>
    %553 = vector.broadcast %552 : f32 to vector<1x128xf32>
    %554 = arith.addf %551, %553 : vector<1x128xf32>
    %cst_21 = arith.constant 0.000000e+00 : f32
    %555 = vector.broadcast %cst_21 : f32 to vector<1x128xf32>
    %556 = arith.maximumf %554, %555 : vector<1x128xf32>
    %c136 = arith.constant 136 : index
    %557 = memref.load %arg0[%c136] : memref<389xf32, #tpu.memory_space<smem>>
    %558 = vector.broadcast %557 : f32 to vector<1x128xf32>
    %559 = arith.mulf %558, %100 : vector<1x128xf32>
    %c137 = arith.constant 137 : index
    %560 = memref.load %arg0[%c137] : memref<389xf32, #tpu.memory_space<smem>>
    %561 = vector.broadcast %560 : f32 to vector<1x128xf32>
    %562 = arith.mulf %561, %136 : vector<1x128xf32>
    %c138 = arith.constant 138 : index
    %563 = memref.load %arg0[%c138] : memref<389xf32, #tpu.memory_space<smem>>
    %564 = vector.broadcast %563 : f32 to vector<1x128xf32>
    %565 = arith.mulf %564, %172 : vector<1x128xf32>
    %c139 = arith.constant 139 : index
    %566 = memref.load %arg0[%c139] : memref<389xf32, #tpu.memory_space<smem>>
    %567 = vector.broadcast %566 : f32 to vector<1x128xf32>
    %568 = arith.mulf %567, %208 : vector<1x128xf32>
    %c140 = arith.constant 140 : index
    %569 = memref.load %arg0[%c140] : memref<389xf32, #tpu.memory_space<smem>>
    %570 = vector.broadcast %569 : f32 to vector<1x128xf32>
    %571 = arith.mulf %570, %244 : vector<1x128xf32>
    %c141 = arith.constant 141 : index
    %572 = memref.load %arg0[%c141] : memref<389xf32, #tpu.memory_space<smem>>
    %573 = vector.broadcast %572 : f32 to vector<1x128xf32>
    %574 = arith.mulf %573, %280 : vector<1x128xf32>
    %c142 = arith.constant 142 : index
    %575 = memref.load %arg0[%c142] : memref<389xf32, #tpu.memory_space<smem>>
    %576 = vector.broadcast %575 : f32 to vector<1x128xf32>
    %577 = arith.mulf %576, %316 : vector<1x128xf32>
    %c143 = arith.constant 143 : index
    %578 = memref.load %arg0[%c143] : memref<389xf32, #tpu.memory_space<smem>>
    %579 = vector.broadcast %578 : f32 to vector<1x128xf32>
    %580 = arith.mulf %579, %352 : vector<1x128xf32>
    %c144 = arith.constant 144 : index
    %581 = memref.load %arg0[%c144] : memref<389xf32, #tpu.memory_space<smem>>
    %582 = vector.broadcast %581 : f32 to vector<1x128xf32>
    %583 = arith.mulf %582, %388 : vector<1x128xf32>
    %c145 = arith.constant 145 : index
    %584 = memref.load %arg0[%c145] : memref<389xf32, #tpu.memory_space<smem>>
    %585 = vector.broadcast %584 : f32 to vector<1x128xf32>
    %586 = arith.mulf %585, %424 : vector<1x128xf32>
    %587 = arith.addf %559, %562 : vector<1x128xf32>
    %588 = arith.addf %565, %568 : vector<1x128xf32>
    %589 = arith.addf %571, %574 : vector<1x128xf32>
    %590 = arith.addf %577, %580 : vector<1x128xf32>
    %591 = arith.addf %583, %586 : vector<1x128xf32>
    %592 = arith.addf %587, %588 : vector<1x128xf32>
    %593 = arith.addf %589, %590 : vector<1x128xf32>
    %594 = arith.addf %592, %593 : vector<1x128xf32>
    %595 = arith.addf %594, %591 : vector<1x128xf32>
    %c249 = arith.constant 249 : index
    %596 = memref.load %arg0[%c249] : memref<389xf32, #tpu.memory_space<smem>>
    %597 = vector.broadcast %596 : f32 to vector<1x128xf32>
    %598 = arith.addf %595, %597 : vector<1x128xf32>
    %cst_22 = arith.constant 0.000000e+00 : f32
    %599 = vector.broadcast %cst_22 : f32 to vector<1x128xf32>
    %600 = arith.maximumf %598, %599 : vector<1x128xf32>
    %c146 = arith.constant 146 : index
    %601 = memref.load %arg0[%c146] : memref<389xf32, #tpu.memory_space<smem>>
    %602 = vector.broadcast %601 : f32 to vector<1x128xf32>
    %603 = arith.mulf %602, %100 : vector<1x128xf32>
    %c147 = arith.constant 147 : index
    %604 = memref.load %arg0[%c147] : memref<389xf32, #tpu.memory_space<smem>>
    %605 = vector.broadcast %604 : f32 to vector<1x128xf32>
    %606 = arith.mulf %605, %136 : vector<1x128xf32>
    %c148 = arith.constant 148 : index
    %607 = memref.load %arg0[%c148] : memref<389xf32, #tpu.memory_space<smem>>
    %608 = vector.broadcast %607 : f32 to vector<1x128xf32>
    %609 = arith.mulf %608, %172 : vector<1x128xf32>
    %c149 = arith.constant 149 : index
    %610 = memref.load %arg0[%c149] : memref<389xf32, #tpu.memory_space<smem>>
    %611 = vector.broadcast %610 : f32 to vector<1x128xf32>
    %612 = arith.mulf %611, %208 : vector<1x128xf32>
    %c150 = arith.constant 150 : index
    %613 = memref.load %arg0[%c150] : memref<389xf32, #tpu.memory_space<smem>>
    %614 = vector.broadcast %613 : f32 to vector<1x128xf32>
    %615 = arith.mulf %614, %244 : vector<1x128xf32>
    %c151 = arith.constant 151 : index
    %616 = memref.load %arg0[%c151] : memref<389xf32, #tpu.memory_space<smem>>
    %617 = vector.broadcast %616 : f32 to vector<1x128xf32>
    %618 = arith.mulf %617, %280 : vector<1x128xf32>
    %c152 = arith.constant 152 : index
    %619 = memref.load %arg0[%c152] : memref<389xf32, #tpu.memory_space<smem>>
    %620 = vector.broadcast %619 : f32 to vector<1x128xf32>
    %621 = arith.mulf %620, %316 : vector<1x128xf32>
    %c153 = arith.constant 153 : index
    %622 = memref.load %arg0[%c153] : memref<389xf32, #tpu.memory_space<smem>>
    %623 = vector.broadcast %622 : f32 to vector<1x128xf32>
    %624 = arith.mulf %623, %352 : vector<1x128xf32>
    %c154 = arith.constant 154 : index
    %625 = memref.load %arg0[%c154] : memref<389xf32, #tpu.memory_space<smem>>
    %626 = vector.broadcast %625 : f32 to vector<1x128xf32>
    %627 = arith.mulf %626, %388 : vector<1x128xf32>
    %c155 = arith.constant 155 : index
    %628 = memref.load %arg0[%c155] : memref<389xf32, #tpu.memory_space<smem>>
    %629 = vector.broadcast %628 : f32 to vector<1x128xf32>
    %630 = arith.mulf %629, %424 : vector<1x128xf32>
    %631 = arith.addf %603, %606 : vector<1x128xf32>
    %632 = arith.addf %609, %612 : vector<1x128xf32>
    %633 = arith.addf %615, %618 : vector<1x128xf32>
    %634 = arith.addf %621, %624 : vector<1x128xf32>
    %635 = arith.addf %627, %630 : vector<1x128xf32>
    %636 = arith.addf %631, %632 : vector<1x128xf32>
    %637 = arith.addf %633, %634 : vector<1x128xf32>
    %638 = arith.addf %636, %637 : vector<1x128xf32>
    %639 = arith.addf %638, %635 : vector<1x128xf32>
    %c250 = arith.constant 250 : index
    %640 = memref.load %arg0[%c250] : memref<389xf32, #tpu.memory_space<smem>>
    %641 = vector.broadcast %640 : f32 to vector<1x128xf32>
    %642 = arith.addf %639, %641 : vector<1x128xf32>
    %cst_23 = arith.constant 0.000000e+00 : f32
    %643 = vector.broadcast %cst_23 : f32 to vector<1x128xf32>
    %644 = arith.maximumf %642, %643 : vector<1x128xf32>
    %c156 = arith.constant 156 : index
    %645 = memref.load %arg0[%c156] : memref<389xf32, #tpu.memory_space<smem>>
    %646 = vector.broadcast %645 : f32 to vector<1x128xf32>
    %647 = arith.mulf %646, %100 : vector<1x128xf32>
    %c157 = arith.constant 157 : index
    %648 = memref.load %arg0[%c157] : memref<389xf32, #tpu.memory_space<smem>>
    %649 = vector.broadcast %648 : f32 to vector<1x128xf32>
    %650 = arith.mulf %649, %136 : vector<1x128xf32>
    %c158 = arith.constant 158 : index
    %651 = memref.load %arg0[%c158] : memref<389xf32, #tpu.memory_space<smem>>
    %652 = vector.broadcast %651 : f32 to vector<1x128xf32>
    %653 = arith.mulf %652, %172 : vector<1x128xf32>
    %c159 = arith.constant 159 : index
    %654 = memref.load %arg0[%c159] : memref<389xf32, #tpu.memory_space<smem>>
    %655 = vector.broadcast %654 : f32 to vector<1x128xf32>
    %656 = arith.mulf %655, %208 : vector<1x128xf32>
    %c160 = arith.constant 160 : index
    %657 = memref.load %arg0[%c160] : memref<389xf32, #tpu.memory_space<smem>>
    %658 = vector.broadcast %657 : f32 to vector<1x128xf32>
    %659 = arith.mulf %658, %244 : vector<1x128xf32>
    %c161 = arith.constant 161 : index
    %660 = memref.load %arg0[%c161] : memref<389xf32, #tpu.memory_space<smem>>
    %661 = vector.broadcast %660 : f32 to vector<1x128xf32>
    %662 = arith.mulf %661, %280 : vector<1x128xf32>
    %c162 = arith.constant 162 : index
    %663 = memref.load %arg0[%c162] : memref<389xf32, #tpu.memory_space<smem>>
    %664 = vector.broadcast %663 : f32 to vector<1x128xf32>
    %665 = arith.mulf %664, %316 : vector<1x128xf32>
    %c163 = arith.constant 163 : index
    %666 = memref.load %arg0[%c163] : memref<389xf32, #tpu.memory_space<smem>>
    %667 = vector.broadcast %666 : f32 to vector<1x128xf32>
    %668 = arith.mulf %667, %352 : vector<1x128xf32>
    %c164 = arith.constant 164 : index
    %669 = memref.load %arg0[%c164] : memref<389xf32, #tpu.memory_space<smem>>
    %670 = vector.broadcast %669 : f32 to vector<1x128xf32>
    %671 = arith.mulf %670, %388 : vector<1x128xf32>
    %c165 = arith.constant 165 : index
    %672 = memref.load %arg0[%c165] : memref<389xf32, #tpu.memory_space<smem>>
    %673 = vector.broadcast %672 : f32 to vector<1x128xf32>
    %674 = arith.mulf %673, %424 : vector<1x128xf32>
    %675 = arith.addf %647, %650 : vector<1x128xf32>
    %676 = arith.addf %653, %656 : vector<1x128xf32>
    %677 = arith.addf %659, %662 : vector<1x128xf32>
    %678 = arith.addf %665, %668 : vector<1x128xf32>
    %679 = arith.addf %671, %674 : vector<1x128xf32>
    %680 = arith.addf %675, %676 : vector<1x128xf32>
    %681 = arith.addf %677, %678 : vector<1x128xf32>
    %682 = arith.addf %680, %681 : vector<1x128xf32>
    %683 = arith.addf %682, %679 : vector<1x128xf32>
    %c251 = arith.constant 251 : index
    %684 = memref.load %arg0[%c251] : memref<389xf32, #tpu.memory_space<smem>>
    %685 = vector.broadcast %684 : f32 to vector<1x128xf32>
    %686 = arith.addf %683, %685 : vector<1x128xf32>
    %cst_24 = arith.constant 0.000000e+00 : f32
    %687 = vector.broadcast %cst_24 : f32 to vector<1x128xf32>
    %688 = arith.maximumf %686, %687 : vector<1x128xf32>
    %c166 = arith.constant 166 : index
    %689 = memref.load %arg0[%c166] : memref<389xf32, #tpu.memory_space<smem>>
    %690 = vector.broadcast %689 : f32 to vector<1x128xf32>
    %691 = arith.mulf %690, %100 : vector<1x128xf32>
    %c167 = arith.constant 167 : index
    %692 = memref.load %arg0[%c167] : memref<389xf32, #tpu.memory_space<smem>>
    %693 = vector.broadcast %692 : f32 to vector<1x128xf32>
    %694 = arith.mulf %693, %136 : vector<1x128xf32>
    %c168 = arith.constant 168 : index
    %695 = memref.load %arg0[%c168] : memref<389xf32, #tpu.memory_space<smem>>
    %696 = vector.broadcast %695 : f32 to vector<1x128xf32>
    %697 = arith.mulf %696, %172 : vector<1x128xf32>
    %c169 = arith.constant 169 : index
    %698 = memref.load %arg0[%c169] : memref<389xf32, #tpu.memory_space<smem>>
    %699 = vector.broadcast %698 : f32 to vector<1x128xf32>
    %700 = arith.mulf %699, %208 : vector<1x128xf32>
    %c170 = arith.constant 170 : index
    %701 = memref.load %arg0[%c170] : memref<389xf32, #tpu.memory_space<smem>>
    %702 = vector.broadcast %701 : f32 to vector<1x128xf32>
    %703 = arith.mulf %702, %244 : vector<1x128xf32>
    %c171 = arith.constant 171 : index
    %704 = memref.load %arg0[%c171] : memref<389xf32, #tpu.memory_space<smem>>
    %705 = vector.broadcast %704 : f32 to vector<1x128xf32>
    %706 = arith.mulf %705, %280 : vector<1x128xf32>
    %c172 = arith.constant 172 : index
    %707 = memref.load %arg0[%c172] : memref<389xf32, #tpu.memory_space<smem>>
    %708 = vector.broadcast %707 : f32 to vector<1x128xf32>
    %709 = arith.mulf %708, %316 : vector<1x128xf32>
    %c173 = arith.constant 173 : index
    %710 = memref.load %arg0[%c173] : memref<389xf32, #tpu.memory_space<smem>>
    %711 = vector.broadcast %710 : f32 to vector<1x128xf32>
    %712 = arith.mulf %711, %352 : vector<1x128xf32>
    %c174 = arith.constant 174 : index
    %713 = memref.load %arg0[%c174] : memref<389xf32, #tpu.memory_space<smem>>
    %714 = vector.broadcast %713 : f32 to vector<1x128xf32>
    %715 = arith.mulf %714, %388 : vector<1x128xf32>
    %c175 = arith.constant 175 : index
    %716 = memref.load %arg0[%c175] : memref<389xf32, #tpu.memory_space<smem>>
    %717 = vector.broadcast %716 : f32 to vector<1x128xf32>
    %718 = arith.mulf %717, %424 : vector<1x128xf32>
    %719 = arith.addf %691, %694 : vector<1x128xf32>
    %720 = arith.addf %697, %700 : vector<1x128xf32>
    %721 = arith.addf %703, %706 : vector<1x128xf32>
    %722 = arith.addf %709, %712 : vector<1x128xf32>
    %723 = arith.addf %715, %718 : vector<1x128xf32>
    %724 = arith.addf %719, %720 : vector<1x128xf32>
    %725 = arith.addf %721, %722 : vector<1x128xf32>
    %726 = arith.addf %724, %725 : vector<1x128xf32>
    %727 = arith.addf %726, %723 : vector<1x128xf32>
    %c252 = arith.constant 252 : index
    %728 = memref.load %arg0[%c252] : memref<389xf32, #tpu.memory_space<smem>>
    %729 = vector.broadcast %728 : f32 to vector<1x128xf32>
    %730 = arith.addf %727, %729 : vector<1x128xf32>
    %cst_25 = arith.constant 0.000000e+00 : f32
    %731 = vector.broadcast %cst_25 : f32 to vector<1x128xf32>
    %732 = arith.maximumf %730, %731 : vector<1x128xf32>
    %c176 = arith.constant 176 : index
    %733 = memref.load %arg0[%c176] : memref<389xf32, #tpu.memory_space<smem>>
    %734 = vector.broadcast %733 : f32 to vector<1x128xf32>
    %735 = arith.mulf %734, %100 : vector<1x128xf32>
    %c177 = arith.constant 177 : index
    %736 = memref.load %arg0[%c177] : memref<389xf32, #tpu.memory_space<smem>>
    %737 = vector.broadcast %736 : f32 to vector<1x128xf32>
    %738 = arith.mulf %737, %136 : vector<1x128xf32>
    %c178 = arith.constant 178 : index
    %739 = memref.load %arg0[%c178] : memref<389xf32, #tpu.memory_space<smem>>
    %740 = vector.broadcast %739 : f32 to vector<1x128xf32>
    %741 = arith.mulf %740, %172 : vector<1x128xf32>
    %c179 = arith.constant 179 : index
    %742 = memref.load %arg0[%c179] : memref<389xf32, #tpu.memory_space<smem>>
    %743 = vector.broadcast %742 : f32 to vector<1x128xf32>
    %744 = arith.mulf %743, %208 : vector<1x128xf32>
    %c180 = arith.constant 180 : index
    %745 = memref.load %arg0[%c180] : memref<389xf32, #tpu.memory_space<smem>>
    %746 = vector.broadcast %745 : f32 to vector<1x128xf32>
    %747 = arith.mulf %746, %244 : vector<1x128xf32>
    %c181 = arith.constant 181 : index
    %748 = memref.load %arg0[%c181] : memref<389xf32, #tpu.memory_space<smem>>
    %749 = vector.broadcast %748 : f32 to vector<1x128xf32>
    %750 = arith.mulf %749, %280 : vector<1x128xf32>
    %c182 = arith.constant 182 : index
    %751 = memref.load %arg0[%c182] : memref<389xf32, #tpu.memory_space<smem>>
    %752 = vector.broadcast %751 : f32 to vector<1x128xf32>
    %753 = arith.mulf %752, %316 : vector<1x128xf32>
    %c183 = arith.constant 183 : index
    %754 = memref.load %arg0[%c183] : memref<389xf32, #tpu.memory_space<smem>>
    %755 = vector.broadcast %754 : f32 to vector<1x128xf32>
    %756 = arith.mulf %755, %352 : vector<1x128xf32>
    %c184 = arith.constant 184 : index
    %757 = memref.load %arg0[%c184] : memref<389xf32, #tpu.memory_space<smem>>
    %758 = vector.broadcast %757 : f32 to vector<1x128xf32>
    %759 = arith.mulf %758, %388 : vector<1x128xf32>
    %c185 = arith.constant 185 : index
    %760 = memref.load %arg0[%c185] : memref<389xf32, #tpu.memory_space<smem>>
    %761 = vector.broadcast %760 : f32 to vector<1x128xf32>
    %762 = arith.mulf %761, %424 : vector<1x128xf32>
    %763 = arith.addf %735, %738 : vector<1x128xf32>
    %764 = arith.addf %741, %744 : vector<1x128xf32>
    %765 = arith.addf %747, %750 : vector<1x128xf32>
    %766 = arith.addf %753, %756 : vector<1x128xf32>
    %767 = arith.addf %759, %762 : vector<1x128xf32>
    %768 = arith.addf %763, %764 : vector<1x128xf32>
    %769 = arith.addf %765, %766 : vector<1x128xf32>
    %770 = arith.addf %768, %769 : vector<1x128xf32>
    %771 = arith.addf %770, %767 : vector<1x128xf32>
    %c253 = arith.constant 253 : index
    %772 = memref.load %arg0[%c253] : memref<389xf32, #tpu.memory_space<smem>>
    %773 = vector.broadcast %772 : f32 to vector<1x128xf32>
    %774 = arith.addf %771, %773 : vector<1x128xf32>
    %cst_26 = arith.constant 0.000000e+00 : f32
    %775 = vector.broadcast %cst_26 : f32 to vector<1x128xf32>
    %776 = arith.maximumf %774, %775 : vector<1x128xf32>
    %c186 = arith.constant 186 : index
    %777 = memref.load %arg0[%c186] : memref<389xf32, #tpu.memory_space<smem>>
    %778 = vector.broadcast %777 : f32 to vector<1x128xf32>
    %779 = arith.mulf %778, %100 : vector<1x128xf32>
    %c187 = arith.constant 187 : index
    %780 = memref.load %arg0[%c187] : memref<389xf32, #tpu.memory_space<smem>>
    %781 = vector.broadcast %780 : f32 to vector<1x128xf32>
    %782 = arith.mulf %781, %136 : vector<1x128xf32>
    %c188 = arith.constant 188 : index
    %783 = memref.load %arg0[%c188] : memref<389xf32, #tpu.memory_space<smem>>
    %784 = vector.broadcast %783 : f32 to vector<1x128xf32>
    %785 = arith.mulf %784, %172 : vector<1x128xf32>
    %c189 = arith.constant 189 : index
    %786 = memref.load %arg0[%c189] : memref<389xf32, #tpu.memory_space<smem>>
    %787 = vector.broadcast %786 : f32 to vector<1x128xf32>
    %788 = arith.mulf %787, %208 : vector<1x128xf32>
    %c190 = arith.constant 190 : index
    %789 = memref.load %arg0[%c190] : memref<389xf32, #tpu.memory_space<smem>>
    %790 = vector.broadcast %789 : f32 to vector<1x128xf32>
    %791 = arith.mulf %790, %244 : vector<1x128xf32>
    %c191 = arith.constant 191 : index
    %792 = memref.load %arg0[%c191] : memref<389xf32, #tpu.memory_space<smem>>
    %793 = vector.broadcast %792 : f32 to vector<1x128xf32>
    %794 = arith.mulf %793, %280 : vector<1x128xf32>
    %c192 = arith.constant 192 : index
    %795 = memref.load %arg0[%c192] : memref<389xf32, #tpu.memory_space<smem>>
    %796 = vector.broadcast %795 : f32 to vector<1x128xf32>
    %797 = arith.mulf %796, %316 : vector<1x128xf32>
    %c193 = arith.constant 193 : index
    %798 = memref.load %arg0[%c193] : memref<389xf32, #tpu.memory_space<smem>>
    %799 = vector.broadcast %798 : f32 to vector<1x128xf32>
    %800 = arith.mulf %799, %352 : vector<1x128xf32>
    %c194 = arith.constant 194 : index
    %801 = memref.load %arg0[%c194] : memref<389xf32, #tpu.memory_space<smem>>
    %802 = vector.broadcast %801 : f32 to vector<1x128xf32>
    %803 = arith.mulf %802, %388 : vector<1x128xf32>
    %c195 = arith.constant 195 : index
    %804 = memref.load %arg0[%c195] : memref<389xf32, #tpu.memory_space<smem>>
    %805 = vector.broadcast %804 : f32 to vector<1x128xf32>
    %806 = arith.mulf %805, %424 : vector<1x128xf32>
    %807 = arith.addf %779, %782 : vector<1x128xf32>
    %808 = arith.addf %785, %788 : vector<1x128xf32>
    %809 = arith.addf %791, %794 : vector<1x128xf32>
    %810 = arith.addf %797, %800 : vector<1x128xf32>
    %811 = arith.addf %803, %806 : vector<1x128xf32>
    %812 = arith.addf %807, %808 : vector<1x128xf32>
    %813 = arith.addf %809, %810 : vector<1x128xf32>
    %814 = arith.addf %812, %813 : vector<1x128xf32>
    %815 = arith.addf %814, %811 : vector<1x128xf32>
    %c254 = arith.constant 254 : index
    %816 = memref.load %arg0[%c254] : memref<389xf32, #tpu.memory_space<smem>>
    %817 = vector.broadcast %816 : f32 to vector<1x128xf32>
    %818 = arith.addf %815, %817 : vector<1x128xf32>
    %cst_27 = arith.constant 0.000000e+00 : f32
    %819 = vector.broadcast %cst_27 : f32 to vector<1x128xf32>
    %820 = arith.maximumf %818, %819 : vector<1x128xf32>
    %c196 = arith.constant 196 : index
    %821 = memref.load %arg0[%c196] : memref<389xf32, #tpu.memory_space<smem>>
    %822 = vector.broadcast %821 : f32 to vector<1x128xf32>
    %823 = arith.mulf %822, %100 : vector<1x128xf32>
    %c197 = arith.constant 197 : index
    %824 = memref.load %arg0[%c197] : memref<389xf32, #tpu.memory_space<smem>>
    %825 = vector.broadcast %824 : f32 to vector<1x128xf32>
    %826 = arith.mulf %825, %136 : vector<1x128xf32>
    %c198 = arith.constant 198 : index
    %827 = memref.load %arg0[%c198] : memref<389xf32, #tpu.memory_space<smem>>
    %828 = vector.broadcast %827 : f32 to vector<1x128xf32>
    %829 = arith.mulf %828, %172 : vector<1x128xf32>
    %c199 = arith.constant 199 : index
    %830 = memref.load %arg0[%c199] : memref<389xf32, #tpu.memory_space<smem>>
    %831 = vector.broadcast %830 : f32 to vector<1x128xf32>
    %832 = arith.mulf %831, %208 : vector<1x128xf32>
    %c200 = arith.constant 200 : index
    %833 = memref.load %arg0[%c200] : memref<389xf32, #tpu.memory_space<smem>>
    %834 = vector.broadcast %833 : f32 to vector<1x128xf32>
    %835 = arith.mulf %834, %244 : vector<1x128xf32>
    %c201 = arith.constant 201 : index
    %836 = memref.load %arg0[%c201] : memref<389xf32, #tpu.memory_space<smem>>
    %837 = vector.broadcast %836 : f32 to vector<1x128xf32>
    %838 = arith.mulf %837, %280 : vector<1x128xf32>
    %c202 = arith.constant 202 : index
    %839 = memref.load %arg0[%c202] : memref<389xf32, #tpu.memory_space<smem>>
    %840 = vector.broadcast %839 : f32 to vector<1x128xf32>
    %841 = arith.mulf %840, %316 : vector<1x128xf32>
    %c203 = arith.constant 203 : index
    %842 = memref.load %arg0[%c203] : memref<389xf32, #tpu.memory_space<smem>>
    %843 = vector.broadcast %842 : f32 to vector<1x128xf32>
    %844 = arith.mulf %843, %352 : vector<1x128xf32>
    %c204 = arith.constant 204 : index
    %845 = memref.load %arg0[%c204] : memref<389xf32, #tpu.memory_space<smem>>
    %846 = vector.broadcast %845 : f32 to vector<1x128xf32>
    %847 = arith.mulf %846, %388 : vector<1x128xf32>
    %c205 = arith.constant 205 : index
    %848 = memref.load %arg0[%c205] : memref<389xf32, #tpu.memory_space<smem>>
    %849 = vector.broadcast %848 : f32 to vector<1x128xf32>
    %850 = arith.mulf %849, %424 : vector<1x128xf32>
    %851 = arith.addf %823, %826 : vector<1x128xf32>
    %852 = arith.addf %829, %832 : vector<1x128xf32>
    %853 = arith.addf %835, %838 : vector<1x128xf32>
    %854 = arith.addf %841, %844 : vector<1x128xf32>
    %855 = arith.addf %847, %850 : vector<1x128xf32>
    %856 = arith.addf %851, %852 : vector<1x128xf32>
    %857 = arith.addf %853, %854 : vector<1x128xf32>
    %858 = arith.addf %856, %857 : vector<1x128xf32>
    %859 = arith.addf %858, %855 : vector<1x128xf32>
    %c255 = arith.constant 255 : index
    %860 = memref.load %arg0[%c255] : memref<389xf32, #tpu.memory_space<smem>>
    %861 = vector.broadcast %860 : f32 to vector<1x128xf32>
    %862 = arith.addf %859, %861 : vector<1x128xf32>
    %cst_28 = arith.constant 0.000000e+00 : f32
    %863 = vector.broadcast %cst_28 : f32 to vector<1x128xf32>
    %864 = arith.maximumf %862, %863 : vector<1x128xf32>
    %c206 = arith.constant 206 : index
    %865 = memref.load %arg0[%c206] : memref<389xf32, #tpu.memory_space<smem>>
    %866 = vector.broadcast %865 : f32 to vector<1x128xf32>
    %867 = arith.mulf %866, %100 : vector<1x128xf32>
    %c207 = arith.constant 207 : index
    %868 = memref.load %arg0[%c207] : memref<389xf32, #tpu.memory_space<smem>>
    %869 = vector.broadcast %868 : f32 to vector<1x128xf32>
    %870 = arith.mulf %869, %136 : vector<1x128xf32>
    %c208 = arith.constant 208 : index
    %871 = memref.load %arg0[%c208] : memref<389xf32, #tpu.memory_space<smem>>
    %872 = vector.broadcast %871 : f32 to vector<1x128xf32>
    %873 = arith.mulf %872, %172 : vector<1x128xf32>
    %c209 = arith.constant 209 : index
    %874 = memref.load %arg0[%c209] : memref<389xf32, #tpu.memory_space<smem>>
    %875 = vector.broadcast %874 : f32 to vector<1x128xf32>
    %876 = arith.mulf %875, %208 : vector<1x128xf32>
    %c210 = arith.constant 210 : index
    %877 = memref.load %arg0[%c210] : memref<389xf32, #tpu.memory_space<smem>>
    %878 = vector.broadcast %877 : f32 to vector<1x128xf32>
    %879 = arith.mulf %878, %244 : vector<1x128xf32>
    %c211 = arith.constant 211 : index
    %880 = memref.load %arg0[%c211] : memref<389xf32, #tpu.memory_space<smem>>
    %881 = vector.broadcast %880 : f32 to vector<1x128xf32>
    %882 = arith.mulf %881, %280 : vector<1x128xf32>
    %c212 = arith.constant 212 : index
    %883 = memref.load %arg0[%c212] : memref<389xf32, #tpu.memory_space<smem>>
    %884 = vector.broadcast %883 : f32 to vector<1x128xf32>
    %885 = arith.mulf %884, %316 : vector<1x128xf32>
    %c213 = arith.constant 213 : index
    %886 = memref.load %arg0[%c213] : memref<389xf32, #tpu.memory_space<smem>>
    %887 = vector.broadcast %886 : f32 to vector<1x128xf32>
    %888 = arith.mulf %887, %352 : vector<1x128xf32>
    %c214 = arith.constant 214 : index
    %889 = memref.load %arg0[%c214] : memref<389xf32, #tpu.memory_space<smem>>
    %890 = vector.broadcast %889 : f32 to vector<1x128xf32>
    %891 = arith.mulf %890, %388 : vector<1x128xf32>
    %c215 = arith.constant 215 : index
    %892 = memref.load %arg0[%c215] : memref<389xf32, #tpu.memory_space<smem>>
    %893 = vector.broadcast %892 : f32 to vector<1x128xf32>
    %894 = arith.mulf %893, %424 : vector<1x128xf32>
    %895 = arith.addf %867, %870 : vector<1x128xf32>
    %896 = arith.addf %873, %876 : vector<1x128xf32>
    %897 = arith.addf %879, %882 : vector<1x128xf32>
    %898 = arith.addf %885, %888 : vector<1x128xf32>
    %899 = arith.addf %891, %894 : vector<1x128xf32>
    %900 = arith.addf %895, %896 : vector<1x128xf32>
    %901 = arith.addf %897, %898 : vector<1x128xf32>
    %902 = arith.addf %900, %901 : vector<1x128xf32>
    %903 = arith.addf %902, %899 : vector<1x128xf32>
    %c256 = arith.constant 256 : index
    %904 = memref.load %arg0[%c256] : memref<389xf32, #tpu.memory_space<smem>>
    %905 = vector.broadcast %904 : f32 to vector<1x128xf32>
    %906 = arith.addf %903, %905 : vector<1x128xf32>
    %cst_29 = arith.constant 0.000000e+00 : f32
    %907 = vector.broadcast %cst_29 : f32 to vector<1x128xf32>
    %908 = arith.maximumf %906, %907 : vector<1x128xf32>
    %c216 = arith.constant 216 : index
    %909 = memref.load %arg0[%c216] : memref<389xf32, #tpu.memory_space<smem>>
    %910 = vector.broadcast %909 : f32 to vector<1x128xf32>
    %911 = arith.mulf %910, %100 : vector<1x128xf32>
    %c217 = arith.constant 217 : index
    %912 = memref.load %arg0[%c217] : memref<389xf32, #tpu.memory_space<smem>>
    %913 = vector.broadcast %912 : f32 to vector<1x128xf32>
    %914 = arith.mulf %913, %136 : vector<1x128xf32>
    %c218 = arith.constant 218 : index
    %915 = memref.load %arg0[%c218] : memref<389xf32, #tpu.memory_space<smem>>
    %916 = vector.broadcast %915 : f32 to vector<1x128xf32>
    %917 = arith.mulf %916, %172 : vector<1x128xf32>
    %c219 = arith.constant 219 : index
    %918 = memref.load %arg0[%c219] : memref<389xf32, #tpu.memory_space<smem>>
    %919 = vector.broadcast %918 : f32 to vector<1x128xf32>
    %920 = arith.mulf %919, %208 : vector<1x128xf32>
    %c220 = arith.constant 220 : index
    %921 = memref.load %arg0[%c220] : memref<389xf32, #tpu.memory_space<smem>>
    %922 = vector.broadcast %921 : f32 to vector<1x128xf32>
    %923 = arith.mulf %922, %244 : vector<1x128xf32>
    %c221 = arith.constant 221 : index
    %924 = memref.load %arg0[%c221] : memref<389xf32, #tpu.memory_space<smem>>
    %925 = vector.broadcast %924 : f32 to vector<1x128xf32>
    %926 = arith.mulf %925, %280 : vector<1x128xf32>
    %c222 = arith.constant 222 : index
    %927 = memref.load %arg0[%c222] : memref<389xf32, #tpu.memory_space<smem>>
    %928 = vector.broadcast %927 : f32 to vector<1x128xf32>
    %929 = arith.mulf %928, %316 : vector<1x128xf32>
    %c223 = arith.constant 223 : index
    %930 = memref.load %arg0[%c223] : memref<389xf32, #tpu.memory_space<smem>>
    %931 = vector.broadcast %930 : f32 to vector<1x128xf32>
    %932 = arith.mulf %931, %352 : vector<1x128xf32>
    %c224 = arith.constant 224 : index
    %933 = memref.load %arg0[%c224] : memref<389xf32, #tpu.memory_space<smem>>
    %934 = vector.broadcast %933 : f32 to vector<1x128xf32>
    %935 = arith.mulf %934, %388 : vector<1x128xf32>
    %c225 = arith.constant 225 : index
    %936 = memref.load %arg0[%c225] : memref<389xf32, #tpu.memory_space<smem>>
    %937 = vector.broadcast %936 : f32 to vector<1x128xf32>
    %938 = arith.mulf %937, %424 : vector<1x128xf32>
    %939 = arith.addf %911, %914 : vector<1x128xf32>
    %940 = arith.addf %917, %920 : vector<1x128xf32>
    %941 = arith.addf %923, %926 : vector<1x128xf32>
    %942 = arith.addf %929, %932 : vector<1x128xf32>
    %943 = arith.addf %935, %938 : vector<1x128xf32>
    %944 = arith.addf %939, %940 : vector<1x128xf32>
    %945 = arith.addf %941, %942 : vector<1x128xf32>
    %946 = arith.addf %944, %945 : vector<1x128xf32>
    %947 = arith.addf %946, %943 : vector<1x128xf32>
    %c257 = arith.constant 257 : index
    %948 = memref.load %arg0[%c257] : memref<389xf32, #tpu.memory_space<smem>>
    %949 = vector.broadcast %948 : f32 to vector<1x128xf32>
    %950 = arith.addf %947, %949 : vector<1x128xf32>
    %cst_30 = arith.constant 0.000000e+00 : f32
    %951 = vector.broadcast %cst_30 : f32 to vector<1x128xf32>
    %952 = arith.maximumf %950, %951 : vector<1x128xf32>
    %c226 = arith.constant 226 : index
    %953 = memref.load %arg0[%c226] : memref<389xf32, #tpu.memory_space<smem>>
    %954 = vector.broadcast %953 : f32 to vector<1x128xf32>
    %955 = arith.mulf %954, %100 : vector<1x128xf32>
    %c227 = arith.constant 227 : index
    %956 = memref.load %arg0[%c227] : memref<389xf32, #tpu.memory_space<smem>>
    %957 = vector.broadcast %956 : f32 to vector<1x128xf32>
    %958 = arith.mulf %957, %136 : vector<1x128xf32>
    %c228 = arith.constant 228 : index
    %959 = memref.load %arg0[%c228] : memref<389xf32, #tpu.memory_space<smem>>
    %960 = vector.broadcast %959 : f32 to vector<1x128xf32>
    %961 = arith.mulf %960, %172 : vector<1x128xf32>
    %c229 = arith.constant 229 : index
    %962 = memref.load %arg0[%c229] : memref<389xf32, #tpu.memory_space<smem>>
    %963 = vector.broadcast %962 : f32 to vector<1x128xf32>
    %964 = arith.mulf %963, %208 : vector<1x128xf32>
    %c230 = arith.constant 230 : index
    %965 = memref.load %arg0[%c230] : memref<389xf32, #tpu.memory_space<smem>>
    %966 = vector.broadcast %965 : f32 to vector<1x128xf32>
    %967 = arith.mulf %966, %244 : vector<1x128xf32>
    %c231 = arith.constant 231 : index
    %968 = memref.load %arg0[%c231] : memref<389xf32, #tpu.memory_space<smem>>
    %969 = vector.broadcast %968 : f32 to vector<1x128xf32>
    %970 = arith.mulf %969, %280 : vector<1x128xf32>
    %c232 = arith.constant 232 : index
    %971 = memref.load %arg0[%c232] : memref<389xf32, #tpu.memory_space<smem>>
    %972 = vector.broadcast %971 : f32 to vector<1x128xf32>
    %973 = arith.mulf %972, %316 : vector<1x128xf32>
    %c233 = arith.constant 233 : index
    %974 = memref.load %arg0[%c233] : memref<389xf32, #tpu.memory_space<smem>>
    %975 = vector.broadcast %974 : f32 to vector<1x128xf32>
    %976 = arith.mulf %975, %352 : vector<1x128xf32>
    %c234 = arith.constant 234 : index
    %977 = memref.load %arg0[%c234] : memref<389xf32, #tpu.memory_space<smem>>
    %978 = vector.broadcast %977 : f32 to vector<1x128xf32>
    %979 = arith.mulf %978, %388 : vector<1x128xf32>
    %c235 = arith.constant 235 : index
    %980 = memref.load %arg0[%c235] : memref<389xf32, #tpu.memory_space<smem>>
    %981 = vector.broadcast %980 : f32 to vector<1x128xf32>
    %982 = arith.mulf %981, %424 : vector<1x128xf32>
    %983 = arith.addf %955, %958 : vector<1x128xf32>
    %984 = arith.addf %961, %964 : vector<1x128xf32>
    %985 = arith.addf %967, %970 : vector<1x128xf32>
    %986 = arith.addf %973, %976 : vector<1x128xf32>
    %987 = arith.addf %979, %982 : vector<1x128xf32>
    %988 = arith.addf %983, %984 : vector<1x128xf32>
    %989 = arith.addf %985, %986 : vector<1x128xf32>
    %990 = arith.addf %988, %989 : vector<1x128xf32>
    %991 = arith.addf %990, %987 : vector<1x128xf32>
    %c258 = arith.constant 258 : index
    %992 = memref.load %arg0[%c258] : memref<389xf32, #tpu.memory_space<smem>>
    %993 = vector.broadcast %992 : f32 to vector<1x128xf32>
    %994 = arith.addf %991, %993 : vector<1x128xf32>
    %cst_31 = arith.constant 0.000000e+00 : f32
    %995 = vector.broadcast %cst_31 : f32 to vector<1x128xf32>
    %996 = arith.maximumf %994, %995 : vector<1x128xf32>
    %c236 = arith.constant 236 : index
    %997 = memref.load %arg0[%c236] : memref<389xf32, #tpu.memory_space<smem>>
    %998 = vector.broadcast %997 : f32 to vector<1x128xf32>
    %999 = arith.mulf %998, %100 : vector<1x128xf32>
    %c237 = arith.constant 237 : index
    %1000 = memref.load %arg0[%c237] : memref<389xf32, #tpu.memory_space<smem>>
    %1001 = vector.broadcast %1000 : f32 to vector<1x128xf32>
    %1002 = arith.mulf %1001, %136 : vector<1x128xf32>
    %c238 = arith.constant 238 : index
    %1003 = memref.load %arg0[%c238] : memref<389xf32, #tpu.memory_space<smem>>
    %1004 = vector.broadcast %1003 : f32 to vector<1x128xf32>
    %1005 = arith.mulf %1004, %172 : vector<1x128xf32>
    %c239 = arith.constant 239 : index
    %1006 = memref.load %arg0[%c239] : memref<389xf32, #tpu.memory_space<smem>>
    %1007 = vector.broadcast %1006 : f32 to vector<1x128xf32>
    %1008 = arith.mulf %1007, %208 : vector<1x128xf32>
    %c240 = arith.constant 240 : index
    %1009 = memref.load %arg0[%c240] : memref<389xf32, #tpu.memory_space<smem>>
    %1010 = vector.broadcast %1009 : f32 to vector<1x128xf32>
    %1011 = arith.mulf %1010, %244 : vector<1x128xf32>
    %c241 = arith.constant 241 : index
    %1012 = memref.load %arg0[%c241] : memref<389xf32, #tpu.memory_space<smem>>
    %1013 = vector.broadcast %1012 : f32 to vector<1x128xf32>
    %1014 = arith.mulf %1013, %280 : vector<1x128xf32>
    %c242 = arith.constant 242 : index
    %1015 = memref.load %arg0[%c242] : memref<389xf32, #tpu.memory_space<smem>>
    %1016 = vector.broadcast %1015 : f32 to vector<1x128xf32>
    %1017 = arith.mulf %1016, %316 : vector<1x128xf32>
    %c243 = arith.constant 243 : index
    %1018 = memref.load %arg0[%c243] : memref<389xf32, #tpu.memory_space<smem>>
    %1019 = vector.broadcast %1018 : f32 to vector<1x128xf32>
    %1020 = arith.mulf %1019, %352 : vector<1x128xf32>
    %c244 = arith.constant 244 : index
    %1021 = memref.load %arg0[%c244] : memref<389xf32, #tpu.memory_space<smem>>
    %1022 = vector.broadcast %1021 : f32 to vector<1x128xf32>
    %1023 = arith.mulf %1022, %388 : vector<1x128xf32>
    %c245 = arith.constant 245 : index
    %1024 = memref.load %arg0[%c245] : memref<389xf32, #tpu.memory_space<smem>>
    %1025 = vector.broadcast %1024 : f32 to vector<1x128xf32>
    %1026 = arith.mulf %1025, %424 : vector<1x128xf32>
    %1027 = arith.addf %999, %1002 : vector<1x128xf32>
    %1028 = arith.addf %1005, %1008 : vector<1x128xf32>
    %1029 = arith.addf %1011, %1014 : vector<1x128xf32>
    %1030 = arith.addf %1017, %1020 : vector<1x128xf32>
    %1031 = arith.addf %1023, %1026 : vector<1x128xf32>
    %1032 = arith.addf %1027, %1028 : vector<1x128xf32>
    %1033 = arith.addf %1029, %1030 : vector<1x128xf32>
    %1034 = arith.addf %1032, %1033 : vector<1x128xf32>
    %1035 = arith.addf %1034, %1031 : vector<1x128xf32>
    %c259 = arith.constant 259 : index
    %1036 = memref.load %arg0[%c259] : memref<389xf32, #tpu.memory_space<smem>>
    %1037 = vector.broadcast %1036 : f32 to vector<1x128xf32>
    %1038 = arith.addf %1035, %1037 : vector<1x128xf32>
    %cst_32 = arith.constant 0.000000e+00 : f32
    %1039 = vector.broadcast %cst_32 : f32 to vector<1x128xf32>
    %1040 = arith.maximumf %1038, %1039 : vector<1x128xf32>
    %c260 = arith.constant 260 : index
    %1041 = memref.load %arg0[%c260] : memref<389xf32, #tpu.memory_space<smem>>
    %1042 = vector.broadcast %1041 : f32 to vector<1x128xf32>
    %1043 = arith.mulf %1042, %468 : vector<1x128xf32>
    %c261 = arith.constant 261 : index
    %1044 = memref.load %arg0[%c261] : memref<389xf32, #tpu.memory_space<smem>>
    %1045 = vector.broadcast %1044 : f32 to vector<1x128xf32>
    %1046 = arith.mulf %1045, %512 : vector<1x128xf32>
    %c262 = arith.constant 262 : index
    %1047 = memref.load %arg0[%c262] : memref<389xf32, #tpu.memory_space<smem>>
    %1048 = vector.broadcast %1047 : f32 to vector<1x128xf32>
    %1049 = arith.mulf %1048, %556 : vector<1x128xf32>
    %c263 = arith.constant 263 : index
    %1050 = memref.load %arg0[%c263] : memref<389xf32, #tpu.memory_space<smem>>
    %1051 = vector.broadcast %1050 : f32 to vector<1x128xf32>
    %1052 = arith.mulf %1051, %600 : vector<1x128xf32>
    %c264 = arith.constant 264 : index
    %1053 = memref.load %arg0[%c264] : memref<389xf32, #tpu.memory_space<smem>>
    %1054 = vector.broadcast %1053 : f32 to vector<1x128xf32>
    %1055 = arith.mulf %1054, %644 : vector<1x128xf32>
    %c265 = arith.constant 265 : index
    %1056 = memref.load %arg0[%c265] : memref<389xf32, #tpu.memory_space<smem>>
    %1057 = vector.broadcast %1056 : f32 to vector<1x128xf32>
    %1058 = arith.mulf %1057, %688 : vector<1x128xf32>
    %c266 = arith.constant 266 : index
    %1059 = memref.load %arg0[%c266] : memref<389xf32, #tpu.memory_space<smem>>
    %1060 = vector.broadcast %1059 : f32 to vector<1x128xf32>
    %1061 = arith.mulf %1060, %732 : vector<1x128xf32>
    %c267 = arith.constant 267 : index
    %1062 = memref.load %arg0[%c267] : memref<389xf32, #tpu.memory_space<smem>>
    %1063 = vector.broadcast %1062 : f32 to vector<1x128xf32>
    %1064 = arith.mulf %1063, %776 : vector<1x128xf32>
    %c268 = arith.constant 268 : index
    %1065 = memref.load %arg0[%c268] : memref<389xf32, #tpu.memory_space<smem>>
    %1066 = vector.broadcast %1065 : f32 to vector<1x128xf32>
    %1067 = arith.mulf %1066, %820 : vector<1x128xf32>
    %c269 = arith.constant 269 : index
    %1068 = memref.load %arg0[%c269] : memref<389xf32, #tpu.memory_space<smem>>
    %1069 = vector.broadcast %1068 : f32 to vector<1x128xf32>
    %1070 = arith.mulf %1069, %864 : vector<1x128xf32>
    %c270 = arith.constant 270 : index
    %1071 = memref.load %arg0[%c270] : memref<389xf32, #tpu.memory_space<smem>>
    %1072 = vector.broadcast %1071 : f32 to vector<1x128xf32>
    %1073 = arith.mulf %1072, %908 : vector<1x128xf32>
    %c271 = arith.constant 271 : index
    %1074 = memref.load %arg0[%c271] : memref<389xf32, #tpu.memory_space<smem>>
    %1075 = vector.broadcast %1074 : f32 to vector<1x128xf32>
    %1076 = arith.mulf %1075, %952 : vector<1x128xf32>
    %c272 = arith.constant 272 : index
    %1077 = memref.load %arg0[%c272] : memref<389xf32, #tpu.memory_space<smem>>
    %1078 = vector.broadcast %1077 : f32 to vector<1x128xf32>
    %1079 = arith.mulf %1078, %996 : vector<1x128xf32>
    %c273 = arith.constant 273 : index
    %1080 = memref.load %arg0[%c273] : memref<389xf32, #tpu.memory_space<smem>>
    %1081 = vector.broadcast %1080 : f32 to vector<1x128xf32>
    %1082 = arith.mulf %1081, %1040 : vector<1x128xf32>
    %1083 = arith.addf %1043, %1046 : vector<1x128xf32>
    %1084 = arith.addf %1049, %1052 : vector<1x128xf32>
    %1085 = arith.addf %1055, %1058 : vector<1x128xf32>
    %1086 = arith.addf %1061, %1064 : vector<1x128xf32>
    %1087 = arith.addf %1067, %1070 : vector<1x128xf32>
    %1088 = arith.addf %1073, %1076 : vector<1x128xf32>
    %1089 = arith.addf %1079, %1082 : vector<1x128xf32>
    %1090 = arith.addf %1083, %1084 : vector<1x128xf32>
    %1091 = arith.addf %1085, %1086 : vector<1x128xf32>
    %1092 = arith.addf %1087, %1088 : vector<1x128xf32>
    %1093 = arith.addf %1090, %1091 : vector<1x128xf32>
    %1094 = arith.addf %1092, %1089 : vector<1x128xf32>
    %1095 = arith.addf %1093, %1094 : vector<1x128xf32>
    %c372 = arith.constant 372 : index
    %1096 = memref.load %arg0[%c372] : memref<389xf32, #tpu.memory_space<smem>>
    %1097 = vector.broadcast %1096 : f32 to vector<1x128xf32>
    %1098 = arith.addf %1095, %1097 : vector<1x128xf32>
    %cst_33 = arith.constant 0.000000e+00 : f32
    %1099 = vector.broadcast %cst_33 : f32 to vector<1x128xf32>
    %1100 = arith.maximumf %1098, %1099 : vector<1x128xf32>
    %c274 = arith.constant 274 : index
    %1101 = memref.load %arg0[%c274] : memref<389xf32, #tpu.memory_space<smem>>
    %1102 = vector.broadcast %1101 : f32 to vector<1x128xf32>
    %1103 = arith.mulf %1102, %468 : vector<1x128xf32>
    %c275 = arith.constant 275 : index
    %1104 = memref.load %arg0[%c275] : memref<389xf32, #tpu.memory_space<smem>>
    %1105 = vector.broadcast %1104 : f32 to vector<1x128xf32>
    %1106 = arith.mulf %1105, %512 : vector<1x128xf32>
    %c276 = arith.constant 276 : index
    %1107 = memref.load %arg0[%c276] : memref<389xf32, #tpu.memory_space<smem>>
    %1108 = vector.broadcast %1107 : f32 to vector<1x128xf32>
    %1109 = arith.mulf %1108, %556 : vector<1x128xf32>
    %c277 = arith.constant 277 : index
    %1110 = memref.load %arg0[%c277] : memref<389xf32, #tpu.memory_space<smem>>
    %1111 = vector.broadcast %1110 : f32 to vector<1x128xf32>
    %1112 = arith.mulf %1111, %600 : vector<1x128xf32>
    %c278 = arith.constant 278 : index
    %1113 = memref.load %arg0[%c278] : memref<389xf32, #tpu.memory_space<smem>>
    %1114 = vector.broadcast %1113 : f32 to vector<1x128xf32>
    %1115 = arith.mulf %1114, %644 : vector<1x128xf32>
    %c279 = arith.constant 279 : index
    %1116 = memref.load %arg0[%c279] : memref<389xf32, #tpu.memory_space<smem>>
    %1117 = vector.broadcast %1116 : f32 to vector<1x128xf32>
    %1118 = arith.mulf %1117, %688 : vector<1x128xf32>
    %c280 = arith.constant 280 : index
    %1119 = memref.load %arg0[%c280] : memref<389xf32, #tpu.memory_space<smem>>
    %1120 = vector.broadcast %1119 : f32 to vector<1x128xf32>
    %1121 = arith.mulf %1120, %732 : vector<1x128xf32>
    %c281 = arith.constant 281 : index
    %1122 = memref.load %arg0[%c281] : memref<389xf32, #tpu.memory_space<smem>>
    %1123 = vector.broadcast %1122 : f32 to vector<1x128xf32>
    %1124 = arith.mulf %1123, %776 : vector<1x128xf32>
    %c282 = arith.constant 282 : index
    %1125 = memref.load %arg0[%c282] : memref<389xf32, #tpu.memory_space<smem>>
    %1126 = vector.broadcast %1125 : f32 to vector<1x128xf32>
    %1127 = arith.mulf %1126, %820 : vector<1x128xf32>
    %c283 = arith.constant 283 : index
    %1128 = memref.load %arg0[%c283] : memref<389xf32, #tpu.memory_space<smem>>
    %1129 = vector.broadcast %1128 : f32 to vector<1x128xf32>
    %1130 = arith.mulf %1129, %864 : vector<1x128xf32>
    %c284 = arith.constant 284 : index
    %1131 = memref.load %arg0[%c284] : memref<389xf32, #tpu.memory_space<smem>>
    %1132 = vector.broadcast %1131 : f32 to vector<1x128xf32>
    %1133 = arith.mulf %1132, %908 : vector<1x128xf32>
    %c285 = arith.constant 285 : index
    %1134 = memref.load %arg0[%c285] : memref<389xf32, #tpu.memory_space<smem>>
    %1135 = vector.broadcast %1134 : f32 to vector<1x128xf32>
    %1136 = arith.mulf %1135, %952 : vector<1x128xf32>
    %c286 = arith.constant 286 : index
    %1137 = memref.load %arg0[%c286] : memref<389xf32, #tpu.memory_space<smem>>
    %1138 = vector.broadcast %1137 : f32 to vector<1x128xf32>
    %1139 = arith.mulf %1138, %996 : vector<1x128xf32>
    %c287 = arith.constant 287 : index
    %1140 = memref.load %arg0[%c287] : memref<389xf32, #tpu.memory_space<smem>>
    %1141 = vector.broadcast %1140 : f32 to vector<1x128xf32>
    %1142 = arith.mulf %1141, %1040 : vector<1x128xf32>
    %1143 = arith.addf %1103, %1106 : vector<1x128xf32>
    %1144 = arith.addf %1109, %1112 : vector<1x128xf32>
    %1145 = arith.addf %1115, %1118 : vector<1x128xf32>
    %1146 = arith.addf %1121, %1124 : vector<1x128xf32>
    %1147 = arith.addf %1127, %1130 : vector<1x128xf32>
    %1148 = arith.addf %1133, %1136 : vector<1x128xf32>
    %1149 = arith.addf %1139, %1142 : vector<1x128xf32>
    %1150 = arith.addf %1143, %1144 : vector<1x128xf32>
    %1151 = arith.addf %1145, %1146 : vector<1x128xf32>
    %1152 = arith.addf %1147, %1148 : vector<1x128xf32>
    %1153 = arith.addf %1150, %1151 : vector<1x128xf32>
    %1154 = arith.addf %1152, %1149 : vector<1x128xf32>
    %1155 = arith.addf %1153, %1154 : vector<1x128xf32>
    %c373 = arith.constant 373 : index
    %1156 = memref.load %arg0[%c373] : memref<389xf32, #tpu.memory_space<smem>>
    %1157 = vector.broadcast %1156 : f32 to vector<1x128xf32>
    %1158 = arith.addf %1155, %1157 : vector<1x128xf32>
    %cst_34 = arith.constant 0.000000e+00 : f32
    %1159 = vector.broadcast %cst_34 : f32 to vector<1x128xf32>
    %1160 = arith.maximumf %1158, %1159 : vector<1x128xf32>
    %c288 = arith.constant 288 : index
    %1161 = memref.load %arg0[%c288] : memref<389xf32, #tpu.memory_space<smem>>
    %1162 = vector.broadcast %1161 : f32 to vector<1x128xf32>
    %1163 = arith.mulf %1162, %468 : vector<1x128xf32>
    %c289 = arith.constant 289 : index
    %1164 = memref.load %arg0[%c289] : memref<389xf32, #tpu.memory_space<smem>>
    %1165 = vector.broadcast %1164 : f32 to vector<1x128xf32>
    %1166 = arith.mulf %1165, %512 : vector<1x128xf32>
    %c290 = arith.constant 290 : index
    %1167 = memref.load %arg0[%c290] : memref<389xf32, #tpu.memory_space<smem>>
    %1168 = vector.broadcast %1167 : f32 to vector<1x128xf32>
    %1169 = arith.mulf %1168, %556 : vector<1x128xf32>
    %c291 = arith.constant 291 : index
    %1170 = memref.load %arg0[%c291] : memref<389xf32, #tpu.memory_space<smem>>
    %1171 = vector.broadcast %1170 : f32 to vector<1x128xf32>
    %1172 = arith.mulf %1171, %600 : vector<1x128xf32>
    %c292 = arith.constant 292 : index
    %1173 = memref.load %arg0[%c292] : memref<389xf32, #tpu.memory_space<smem>>
    %1174 = vector.broadcast %1173 : f32 to vector<1x128xf32>
    %1175 = arith.mulf %1174, %644 : vector<1x128xf32>
    %c293 = arith.constant 293 : index
    %1176 = memref.load %arg0[%c293] : memref<389xf32, #tpu.memory_space<smem>>
    %1177 = vector.broadcast %1176 : f32 to vector<1x128xf32>
    %1178 = arith.mulf %1177, %688 : vector<1x128xf32>
    %c294 = arith.constant 294 : index
    %1179 = memref.load %arg0[%c294] : memref<389xf32, #tpu.memory_space<smem>>
    %1180 = vector.broadcast %1179 : f32 to vector<1x128xf32>
    %1181 = arith.mulf %1180, %732 : vector<1x128xf32>
    %c295 = arith.constant 295 : index
    %1182 = memref.load %arg0[%c295] : memref<389xf32, #tpu.memory_space<smem>>
    %1183 = vector.broadcast %1182 : f32 to vector<1x128xf32>
    %1184 = arith.mulf %1183, %776 : vector<1x128xf32>
    %c296 = arith.constant 296 : index
    %1185 = memref.load %arg0[%c296] : memref<389xf32, #tpu.memory_space<smem>>
    %1186 = vector.broadcast %1185 : f32 to vector<1x128xf32>
    %1187 = arith.mulf %1186, %820 : vector<1x128xf32>
    %c297 = arith.constant 297 : index
    %1188 = memref.load %arg0[%c297] : memref<389xf32, #tpu.memory_space<smem>>
    %1189 = vector.broadcast %1188 : f32 to vector<1x128xf32>
    %1190 = arith.mulf %1189, %864 : vector<1x128xf32>
    %c298 = arith.constant 298 : index
    %1191 = memref.load %arg0[%c298] : memref<389xf32, #tpu.memory_space<smem>>
    %1192 = vector.broadcast %1191 : f32 to vector<1x128xf32>
    %1193 = arith.mulf %1192, %908 : vector<1x128xf32>
    %c299 = arith.constant 299 : index
    %1194 = memref.load %arg0[%c299] : memref<389xf32, #tpu.memory_space<smem>>
    %1195 = vector.broadcast %1194 : f32 to vector<1x128xf32>
    %1196 = arith.mulf %1195, %952 : vector<1x128xf32>
    %c300 = arith.constant 300 : index
    %1197 = memref.load %arg0[%c300] : memref<389xf32, #tpu.memory_space<smem>>
    %1198 = vector.broadcast %1197 : f32 to vector<1x128xf32>
    %1199 = arith.mulf %1198, %996 : vector<1x128xf32>
    %c301 = arith.constant 301 : index
    %1200 = memref.load %arg0[%c301] : memref<389xf32, #tpu.memory_space<smem>>
    %1201 = vector.broadcast %1200 : f32 to vector<1x128xf32>
    %1202 = arith.mulf %1201, %1040 : vector<1x128xf32>
    %1203 = arith.addf %1163, %1166 : vector<1x128xf32>
    %1204 = arith.addf %1169, %1172 : vector<1x128xf32>
    %1205 = arith.addf %1175, %1178 : vector<1x128xf32>
    %1206 = arith.addf %1181, %1184 : vector<1x128xf32>
    %1207 = arith.addf %1187, %1190 : vector<1x128xf32>
    %1208 = arith.addf %1193, %1196 : vector<1x128xf32>
    %1209 = arith.addf %1199, %1202 : vector<1x128xf32>
    %1210 = arith.addf %1203, %1204 : vector<1x128xf32>
    %1211 = arith.addf %1205, %1206 : vector<1x128xf32>
    %1212 = arith.addf %1207, %1208 : vector<1x128xf32>
    %1213 = arith.addf %1210, %1211 : vector<1x128xf32>
    %1214 = arith.addf %1212, %1209 : vector<1x128xf32>
    %1215 = arith.addf %1213, %1214 : vector<1x128xf32>
    %c374 = arith.constant 374 : index
    %1216 = memref.load %arg0[%c374] : memref<389xf32, #tpu.memory_space<smem>>
    %1217 = vector.broadcast %1216 : f32 to vector<1x128xf32>
    %1218 = arith.addf %1215, %1217 : vector<1x128xf32>
    %cst_35 = arith.constant 0.000000e+00 : f32
    %1219 = vector.broadcast %cst_35 : f32 to vector<1x128xf32>
    %1220 = arith.maximumf %1218, %1219 : vector<1x128xf32>
    %c302 = arith.constant 302 : index
    %1221 = memref.load %arg0[%c302] : memref<389xf32, #tpu.memory_space<smem>>
    %1222 = vector.broadcast %1221 : f32 to vector<1x128xf32>
    %1223 = arith.mulf %1222, %468 : vector<1x128xf32>
    %c303 = arith.constant 303 : index
    %1224 = memref.load %arg0[%c303] : memref<389xf32, #tpu.memory_space<smem>>
    %1225 = vector.broadcast %1224 : f32 to vector<1x128xf32>
    %1226 = arith.mulf %1225, %512 : vector<1x128xf32>
    %c304 = arith.constant 304 : index
    %1227 = memref.load %arg0[%c304] : memref<389xf32, #tpu.memory_space<smem>>
    %1228 = vector.broadcast %1227 : f32 to vector<1x128xf32>
    %1229 = arith.mulf %1228, %556 : vector<1x128xf32>
    %c305 = arith.constant 305 : index
    %1230 = memref.load %arg0[%c305] : memref<389xf32, #tpu.memory_space<smem>>
    %1231 = vector.broadcast %1230 : f32 to vector<1x128xf32>
    %1232 = arith.mulf %1231, %600 : vector<1x128xf32>
    %c306 = arith.constant 306 : index
    %1233 = memref.load %arg0[%c306] : memref<389xf32, #tpu.memory_space<smem>>
    %1234 = vector.broadcast %1233 : f32 to vector<1x128xf32>
    %1235 = arith.mulf %1234, %644 : vector<1x128xf32>
    %c307 = arith.constant 307 : index
    %1236 = memref.load %arg0[%c307] : memref<389xf32, #tpu.memory_space<smem>>
    %1237 = vector.broadcast %1236 : f32 to vector<1x128xf32>
    %1238 = arith.mulf %1237, %688 : vector<1x128xf32>
    %c308 = arith.constant 308 : index
    %1239 = memref.load %arg0[%c308] : memref<389xf32, #tpu.memory_space<smem>>
    %1240 = vector.broadcast %1239 : f32 to vector<1x128xf32>
    %1241 = arith.mulf %1240, %732 : vector<1x128xf32>
    %c309 = arith.constant 309 : index
    %1242 = memref.load %arg0[%c309] : memref<389xf32, #tpu.memory_space<smem>>
    %1243 = vector.broadcast %1242 : f32 to vector<1x128xf32>
    %1244 = arith.mulf %1243, %776 : vector<1x128xf32>
    %c310 = arith.constant 310 : index
    %1245 = memref.load %arg0[%c310] : memref<389xf32, #tpu.memory_space<smem>>
    %1246 = vector.broadcast %1245 : f32 to vector<1x128xf32>
    %1247 = arith.mulf %1246, %820 : vector<1x128xf32>
    %c311 = arith.constant 311 : index
    %1248 = memref.load %arg0[%c311] : memref<389xf32, #tpu.memory_space<smem>>
    %1249 = vector.broadcast %1248 : f32 to vector<1x128xf32>
    %1250 = arith.mulf %1249, %864 : vector<1x128xf32>
    %c312 = arith.constant 312 : index
    %1251 = memref.load %arg0[%c312] : memref<389xf32, #tpu.memory_space<smem>>
    %1252 = vector.broadcast %1251 : f32 to vector<1x128xf32>
    %1253 = arith.mulf %1252, %908 : vector<1x128xf32>
    %c313 = arith.constant 313 : index
    %1254 = memref.load %arg0[%c313] : memref<389xf32, #tpu.memory_space<smem>>
    %1255 = vector.broadcast %1254 : f32 to vector<1x128xf32>
    %1256 = arith.mulf %1255, %952 : vector<1x128xf32>
    %c314 = arith.constant 314 : index
    %1257 = memref.load %arg0[%c314] : memref<389xf32, #tpu.memory_space<smem>>
    %1258 = vector.broadcast %1257 : f32 to vector<1x128xf32>
    %1259 = arith.mulf %1258, %996 : vector<1x128xf32>
    %c315 = arith.constant 315 : index
    %1260 = memref.load %arg0[%c315] : memref<389xf32, #tpu.memory_space<smem>>
    %1261 = vector.broadcast %1260 : f32 to vector<1x128xf32>
    %1262 = arith.mulf %1261, %1040 : vector<1x128xf32>
    %1263 = arith.addf %1223, %1226 : vector<1x128xf32>
    %1264 = arith.addf %1229, %1232 : vector<1x128xf32>
    %1265 = arith.addf %1235, %1238 : vector<1x128xf32>
    %1266 = arith.addf %1241, %1244 : vector<1x128xf32>
    %1267 = arith.addf %1247, %1250 : vector<1x128xf32>
    %1268 = arith.addf %1253, %1256 : vector<1x128xf32>
    %1269 = arith.addf %1259, %1262 : vector<1x128xf32>
    %1270 = arith.addf %1263, %1264 : vector<1x128xf32>
    %1271 = arith.addf %1265, %1266 : vector<1x128xf32>
    %1272 = arith.addf %1267, %1268 : vector<1x128xf32>
    %1273 = arith.addf %1270, %1271 : vector<1x128xf32>
    %1274 = arith.addf %1272, %1269 : vector<1x128xf32>
    %1275 = arith.addf %1273, %1274 : vector<1x128xf32>
    %c375 = arith.constant 375 : index
    %1276 = memref.load %arg0[%c375] : memref<389xf32, #tpu.memory_space<smem>>
    %1277 = vector.broadcast %1276 : f32 to vector<1x128xf32>
    %1278 = arith.addf %1275, %1277 : vector<1x128xf32>
    %cst_36 = arith.constant 0.000000e+00 : f32
    %1279 = vector.broadcast %cst_36 : f32 to vector<1x128xf32>
    %1280 = arith.maximumf %1278, %1279 : vector<1x128xf32>
    %c316 = arith.constant 316 : index
    %1281 = memref.load %arg0[%c316] : memref<389xf32, #tpu.memory_space<smem>>
    %1282 = vector.broadcast %1281 : f32 to vector<1x128xf32>
    %1283 = arith.mulf %1282, %468 : vector<1x128xf32>
    %c317 = arith.constant 317 : index
    %1284 = memref.load %arg0[%c317] : memref<389xf32, #tpu.memory_space<smem>>
    %1285 = vector.broadcast %1284 : f32 to vector<1x128xf32>
    %1286 = arith.mulf %1285, %512 : vector<1x128xf32>
    %c318 = arith.constant 318 : index
    %1287 = memref.load %arg0[%c318] : memref<389xf32, #tpu.memory_space<smem>>
    %1288 = vector.broadcast %1287 : f32 to vector<1x128xf32>
    %1289 = arith.mulf %1288, %556 : vector<1x128xf32>
    %c319 = arith.constant 319 : index
    %1290 = memref.load %arg0[%c319] : memref<389xf32, #tpu.memory_space<smem>>
    %1291 = vector.broadcast %1290 : f32 to vector<1x128xf32>
    %1292 = arith.mulf %1291, %600 : vector<1x128xf32>
    %c320 = arith.constant 320 : index
    %1293 = memref.load %arg0[%c320] : memref<389xf32, #tpu.memory_space<smem>>
    %1294 = vector.broadcast %1293 : f32 to vector<1x128xf32>
    %1295 = arith.mulf %1294, %644 : vector<1x128xf32>
    %c321 = arith.constant 321 : index
    %1296 = memref.load %arg0[%c321] : memref<389xf32, #tpu.memory_space<smem>>
    %1297 = vector.broadcast %1296 : f32 to vector<1x128xf32>
    %1298 = arith.mulf %1297, %688 : vector<1x128xf32>
    %c322 = arith.constant 322 : index
    %1299 = memref.load %arg0[%c322] : memref<389xf32, #tpu.memory_space<smem>>
    %1300 = vector.broadcast %1299 : f32 to vector<1x128xf32>
    %1301 = arith.mulf %1300, %732 : vector<1x128xf32>
    %c323 = arith.constant 323 : index
    %1302 = memref.load %arg0[%c323] : memref<389xf32, #tpu.memory_space<smem>>
    %1303 = vector.broadcast %1302 : f32 to vector<1x128xf32>
    %1304 = arith.mulf %1303, %776 : vector<1x128xf32>
    %c324 = arith.constant 324 : index
    %1305 = memref.load %arg0[%c324] : memref<389xf32, #tpu.memory_space<smem>>
    %1306 = vector.broadcast %1305 : f32 to vector<1x128xf32>
    %1307 = arith.mulf %1306, %820 : vector<1x128xf32>
    %c325 = arith.constant 325 : index
    %1308 = memref.load %arg0[%c325] : memref<389xf32, #tpu.memory_space<smem>>
    %1309 = vector.broadcast %1308 : f32 to vector<1x128xf32>
    %1310 = arith.mulf %1309, %864 : vector<1x128xf32>
    %c326 = arith.constant 326 : index
    %1311 = memref.load %arg0[%c326] : memref<389xf32, #tpu.memory_space<smem>>
    %1312 = vector.broadcast %1311 : f32 to vector<1x128xf32>
    %1313 = arith.mulf %1312, %908 : vector<1x128xf32>
    %c327 = arith.constant 327 : index
    %1314 = memref.load %arg0[%c327] : memref<389xf32, #tpu.memory_space<smem>>
    %1315 = vector.broadcast %1314 : f32 to vector<1x128xf32>
    %1316 = arith.mulf %1315, %952 : vector<1x128xf32>
    %c328 = arith.constant 328 : index
    %1317 = memref.load %arg0[%c328] : memref<389xf32, #tpu.memory_space<smem>>
    %1318 = vector.broadcast %1317 : f32 to vector<1x128xf32>
    %1319 = arith.mulf %1318, %996 : vector<1x128xf32>
    %c329 = arith.constant 329 : index
    %1320 = memref.load %arg0[%c329] : memref<389xf32, #tpu.memory_space<smem>>
    %1321 = vector.broadcast %1320 : f32 to vector<1x128xf32>
    %1322 = arith.mulf %1321, %1040 : vector<1x128xf32>
    %1323 = arith.addf %1283, %1286 : vector<1x128xf32>
    %1324 = arith.addf %1289, %1292 : vector<1x128xf32>
    %1325 = arith.addf %1295, %1298 : vector<1x128xf32>
    %1326 = arith.addf %1301, %1304 : vector<1x128xf32>
    %1327 = arith.addf %1307, %1310 : vector<1x128xf32>
    %1328 = arith.addf %1313, %1316 : vector<1x128xf32>
    %1329 = arith.addf %1319, %1322 : vector<1x128xf32>
    %1330 = arith.addf %1323, %1324 : vector<1x128xf32>
    %1331 = arith.addf %1325, %1326 : vector<1x128xf32>
    %1332 = arith.addf %1327, %1328 : vector<1x128xf32>
    %1333 = arith.addf %1330, %1331 : vector<1x128xf32>
    %1334 = arith.addf %1332, %1329 : vector<1x128xf32>
    %1335 = arith.addf %1333, %1334 : vector<1x128xf32>
    %c376 = arith.constant 376 : index
    %1336 = memref.load %arg0[%c376] : memref<389xf32, #tpu.memory_space<smem>>
    %1337 = vector.broadcast %1336 : f32 to vector<1x128xf32>
    %1338 = arith.addf %1335, %1337 : vector<1x128xf32>
    %cst_37 = arith.constant 0.000000e+00 : f32
    %1339 = vector.broadcast %cst_37 : f32 to vector<1x128xf32>
    %1340 = arith.maximumf %1338, %1339 : vector<1x128xf32>
    %c330 = arith.constant 330 : index
    %1341 = memref.load %arg0[%c330] : memref<389xf32, #tpu.memory_space<smem>>
    %1342 = vector.broadcast %1341 : f32 to vector<1x128xf32>
    %1343 = arith.mulf %1342, %468 : vector<1x128xf32>
    %c331 = arith.constant 331 : index
    %1344 = memref.load %arg0[%c331] : memref<389xf32, #tpu.memory_space<smem>>
    %1345 = vector.broadcast %1344 : f32 to vector<1x128xf32>
    %1346 = arith.mulf %1345, %512 : vector<1x128xf32>
    %c332 = arith.constant 332 : index
    %1347 = memref.load %arg0[%c332] : memref<389xf32, #tpu.memory_space<smem>>
    %1348 = vector.broadcast %1347 : f32 to vector<1x128xf32>
    %1349 = arith.mulf %1348, %556 : vector<1x128xf32>
    %c333 = arith.constant 333 : index
    %1350 = memref.load %arg0[%c333] : memref<389xf32, #tpu.memory_space<smem>>
    %1351 = vector.broadcast %1350 : f32 to vector<1x128xf32>
    %1352 = arith.mulf %1351, %600 : vector<1x128xf32>
    %c334 = arith.constant 334 : index
    %1353 = memref.load %arg0[%c334] : memref<389xf32, #tpu.memory_space<smem>>
    %1354 = vector.broadcast %1353 : f32 to vector<1x128xf32>
    %1355 = arith.mulf %1354, %644 : vector<1x128xf32>
    %c335 = arith.constant 335 : index
    %1356 = memref.load %arg0[%c335] : memref<389xf32, #tpu.memory_space<smem>>
    %1357 = vector.broadcast %1356 : f32 to vector<1x128xf32>
    %1358 = arith.mulf %1357, %688 : vector<1x128xf32>
    %c336 = arith.constant 336 : index
    %1359 = memref.load %arg0[%c336] : memref<389xf32, #tpu.memory_space<smem>>
    %1360 = vector.broadcast %1359 : f32 to vector<1x128xf32>
    %1361 = arith.mulf %1360, %732 : vector<1x128xf32>
    %c337 = arith.constant 337 : index
    %1362 = memref.load %arg0[%c337] : memref<389xf32, #tpu.memory_space<smem>>
    %1363 = vector.broadcast %1362 : f32 to vector<1x128xf32>
    %1364 = arith.mulf %1363, %776 : vector<1x128xf32>
    %c338 = arith.constant 338 : index
    %1365 = memref.load %arg0[%c338] : memref<389xf32, #tpu.memory_space<smem>>
    %1366 = vector.broadcast %1365 : f32 to vector<1x128xf32>
    %1367 = arith.mulf %1366, %820 : vector<1x128xf32>
    %c339 = arith.constant 339 : index
    %1368 = memref.load %arg0[%c339] : memref<389xf32, #tpu.memory_space<smem>>
    %1369 = vector.broadcast %1368 : f32 to vector<1x128xf32>
    %1370 = arith.mulf %1369, %864 : vector<1x128xf32>
    %c340 = arith.constant 340 : index
    %1371 = memref.load %arg0[%c340] : memref<389xf32, #tpu.memory_space<smem>>
    %1372 = vector.broadcast %1371 : f32 to vector<1x128xf32>
    %1373 = arith.mulf %1372, %908 : vector<1x128xf32>
    %c341 = arith.constant 341 : index
    %1374 = memref.load %arg0[%c341] : memref<389xf32, #tpu.memory_space<smem>>
    %1375 = vector.broadcast %1374 : f32 to vector<1x128xf32>
    %1376 = arith.mulf %1375, %952 : vector<1x128xf32>
    %c342 = arith.constant 342 : index
    %1377 = memref.load %arg0[%c342] : memref<389xf32, #tpu.memory_space<smem>>
    %1378 = vector.broadcast %1377 : f32 to vector<1x128xf32>
    %1379 = arith.mulf %1378, %996 : vector<1x128xf32>
    %c343 = arith.constant 343 : index
    %1380 = memref.load %arg0[%c343] : memref<389xf32, #tpu.memory_space<smem>>
    %1381 = vector.broadcast %1380 : f32 to vector<1x128xf32>
    %1382 = arith.mulf %1381, %1040 : vector<1x128xf32>
    %1383 = arith.addf %1343, %1346 : vector<1x128xf32>
    %1384 = arith.addf %1349, %1352 : vector<1x128xf32>
    %1385 = arith.addf %1355, %1358 : vector<1x128xf32>
    %1386 = arith.addf %1361, %1364 : vector<1x128xf32>
    %1387 = arith.addf %1367, %1370 : vector<1x128xf32>
    %1388 = arith.addf %1373, %1376 : vector<1x128xf32>
    %1389 = arith.addf %1379, %1382 : vector<1x128xf32>
    %1390 = arith.addf %1383, %1384 : vector<1x128xf32>
    %1391 = arith.addf %1385, %1386 : vector<1x128xf32>
    %1392 = arith.addf %1387, %1388 : vector<1x128xf32>
    %1393 = arith.addf %1390, %1391 : vector<1x128xf32>
    %1394 = arith.addf %1392, %1389 : vector<1x128xf32>
    %1395 = arith.addf %1393, %1394 : vector<1x128xf32>
    %c377 = arith.constant 377 : index
    %1396 = memref.load %arg0[%c377] : memref<389xf32, #tpu.memory_space<smem>>
    %1397 = vector.broadcast %1396 : f32 to vector<1x128xf32>
    %1398 = arith.addf %1395, %1397 : vector<1x128xf32>
    %cst_38 = arith.constant 0.000000e+00 : f32
    %1399 = vector.broadcast %cst_38 : f32 to vector<1x128xf32>
    %1400 = arith.maximumf %1398, %1399 : vector<1x128xf32>
    %c344 = arith.constant 344 : index
    %1401 = memref.load %arg0[%c344] : memref<389xf32, #tpu.memory_space<smem>>
    %1402 = vector.broadcast %1401 : f32 to vector<1x128xf32>
    %1403 = arith.mulf %1402, %468 : vector<1x128xf32>
    %c345 = arith.constant 345 : index
    %1404 = memref.load %arg0[%c345] : memref<389xf32, #tpu.memory_space<smem>>
    %1405 = vector.broadcast %1404 : f32 to vector<1x128xf32>
    %1406 = arith.mulf %1405, %512 : vector<1x128xf32>
    %c346 = arith.constant 346 : index
    %1407 = memref.load %arg0[%c346] : memref<389xf32, #tpu.memory_space<smem>>
    %1408 = vector.broadcast %1407 : f32 to vector<1x128xf32>
    %1409 = arith.mulf %1408, %556 : vector<1x128xf32>
    %c347 = arith.constant 347 : index
    %1410 = memref.load %arg0[%c347] : memref<389xf32, #tpu.memory_space<smem>>
    %1411 = vector.broadcast %1410 : f32 to vector<1x128xf32>
    %1412 = arith.mulf %1411, %600 : vector<1x128xf32>
    %c348 = arith.constant 348 : index
    %1413 = memref.load %arg0[%c348] : memref<389xf32, #tpu.memory_space<smem>>
    %1414 = vector.broadcast %1413 : f32 to vector<1x128xf32>
    %1415 = arith.mulf %1414, %644 : vector<1x128xf32>
    %c349 = arith.constant 349 : index
    %1416 = memref.load %arg0[%c349] : memref<389xf32, #tpu.memory_space<smem>>
    %1417 = vector.broadcast %1416 : f32 to vector<1x128xf32>
    %1418 = arith.mulf %1417, %688 : vector<1x128xf32>
    %c350 = arith.constant 350 : index
    %1419 = memref.load %arg0[%c350] : memref<389xf32, #tpu.memory_space<smem>>
    %1420 = vector.broadcast %1419 : f32 to vector<1x128xf32>
    %1421 = arith.mulf %1420, %732 : vector<1x128xf32>
    %c351 = arith.constant 351 : index
    %1422 = memref.load %arg0[%c351] : memref<389xf32, #tpu.memory_space<smem>>
    %1423 = vector.broadcast %1422 : f32 to vector<1x128xf32>
    %1424 = arith.mulf %1423, %776 : vector<1x128xf32>
    %c352 = arith.constant 352 : index
    %1425 = memref.load %arg0[%c352] : memref<389xf32, #tpu.memory_space<smem>>
    %1426 = vector.broadcast %1425 : f32 to vector<1x128xf32>
    %1427 = arith.mulf %1426, %820 : vector<1x128xf32>
    %c353 = arith.constant 353 : index
    %1428 = memref.load %arg0[%c353] : memref<389xf32, #tpu.memory_space<smem>>
    %1429 = vector.broadcast %1428 : f32 to vector<1x128xf32>
    %1430 = arith.mulf %1429, %864 : vector<1x128xf32>
    %c354 = arith.constant 354 : index
    %1431 = memref.load %arg0[%c354] : memref<389xf32, #tpu.memory_space<smem>>
    %1432 = vector.broadcast %1431 : f32 to vector<1x128xf32>
    %1433 = arith.mulf %1432, %908 : vector<1x128xf32>
    %c355 = arith.constant 355 : index
    %1434 = memref.load %arg0[%c355] : memref<389xf32, #tpu.memory_space<smem>>
    %1435 = vector.broadcast %1434 : f32 to vector<1x128xf32>
    %1436 = arith.mulf %1435, %952 : vector<1x128xf32>
    %c356 = arith.constant 356 : index
    %1437 = memref.load %arg0[%c356] : memref<389xf32, #tpu.memory_space<smem>>
    %1438 = vector.broadcast %1437 : f32 to vector<1x128xf32>
    %1439 = arith.mulf %1438, %996 : vector<1x128xf32>
    %c357 = arith.constant 357 : index
    %1440 = memref.load %arg0[%c357] : memref<389xf32, #tpu.memory_space<smem>>
    %1441 = vector.broadcast %1440 : f32 to vector<1x128xf32>
    %1442 = arith.mulf %1441, %1040 : vector<1x128xf32>
    %1443 = arith.addf %1403, %1406 : vector<1x128xf32>
    %1444 = arith.addf %1409, %1412 : vector<1x128xf32>
    %1445 = arith.addf %1415, %1418 : vector<1x128xf32>
    %1446 = arith.addf %1421, %1424 : vector<1x128xf32>
    %1447 = arith.addf %1427, %1430 : vector<1x128xf32>
    %1448 = arith.addf %1433, %1436 : vector<1x128xf32>
    %1449 = arith.addf %1439, %1442 : vector<1x128xf32>
    %1450 = arith.addf %1443, %1444 : vector<1x128xf32>
    %1451 = arith.addf %1445, %1446 : vector<1x128xf32>
    %1452 = arith.addf %1447, %1448 : vector<1x128xf32>
    %1453 = arith.addf %1450, %1451 : vector<1x128xf32>
    %1454 = arith.addf %1452, %1449 : vector<1x128xf32>
    %1455 = arith.addf %1453, %1454 : vector<1x128xf32>
    %c378 = arith.constant 378 : index
    %1456 = memref.load %arg0[%c378] : memref<389xf32, #tpu.memory_space<smem>>
    %1457 = vector.broadcast %1456 : f32 to vector<1x128xf32>
    %1458 = arith.addf %1455, %1457 : vector<1x128xf32>
    %cst_39 = arith.constant 0.000000e+00 : f32
    %1459 = vector.broadcast %cst_39 : f32 to vector<1x128xf32>
    %1460 = arith.maximumf %1458, %1459 : vector<1x128xf32>
    %c358 = arith.constant 358 : index
    %1461 = memref.load %arg0[%c358] : memref<389xf32, #tpu.memory_space<smem>>
    %1462 = vector.broadcast %1461 : f32 to vector<1x128xf32>
    %1463 = arith.mulf %1462, %468 : vector<1x128xf32>
    %c359 = arith.constant 359 : index
    %1464 = memref.load %arg0[%c359] : memref<389xf32, #tpu.memory_space<smem>>
    %1465 = vector.broadcast %1464 : f32 to vector<1x128xf32>
    %1466 = arith.mulf %1465, %512 : vector<1x128xf32>
    %c360 = arith.constant 360 : index
    %1467 = memref.load %arg0[%c360] : memref<389xf32, #tpu.memory_space<smem>>
    %1468 = vector.broadcast %1467 : f32 to vector<1x128xf32>
    %1469 = arith.mulf %1468, %556 : vector<1x128xf32>
    %c361 = arith.constant 361 : index
    %1470 = memref.load %arg0[%c361] : memref<389xf32, #tpu.memory_space<smem>>
    %1471 = vector.broadcast %1470 : f32 to vector<1x128xf32>
    %1472 = arith.mulf %1471, %600 : vector<1x128xf32>
    %c362 = arith.constant 362 : index
    %1473 = memref.load %arg0[%c362] : memref<389xf32, #tpu.memory_space<smem>>
    %1474 = vector.broadcast %1473 : f32 to vector<1x128xf32>
    %1475 = arith.mulf %1474, %644 : vector<1x128xf32>
    %c363 = arith.constant 363 : index
    %1476 = memref.load %arg0[%c363] : memref<389xf32, #tpu.memory_space<smem>>
    %1477 = vector.broadcast %1476 : f32 to vector<1x128xf32>
    %1478 = arith.mulf %1477, %688 : vector<1x128xf32>
    %c364 = arith.constant 364 : index
    %1479 = memref.load %arg0[%c364] : memref<389xf32, #tpu.memory_space<smem>>
    %1480 = vector.broadcast %1479 : f32 to vector<1x128xf32>
    %1481 = arith.mulf %1480, %732 : vector<1x128xf32>
    %c365 = arith.constant 365 : index
    %1482 = memref.load %arg0[%c365] : memref<389xf32, #tpu.memory_space<smem>>
    %1483 = vector.broadcast %1482 : f32 to vector<1x128xf32>
    %1484 = arith.mulf %1483, %776 : vector<1x128xf32>
    %c366 = arith.constant 366 : index
    %1485 = memref.load %arg0[%c366] : memref<389xf32, #tpu.memory_space<smem>>
    %1486 = vector.broadcast %1485 : f32 to vector<1x128xf32>
    %1487 = arith.mulf %1486, %820 : vector<1x128xf32>
    %c367 = arith.constant 367 : index
    %1488 = memref.load %arg0[%c367] : memref<389xf32, #tpu.memory_space<smem>>
    %1489 = vector.broadcast %1488 : f32 to vector<1x128xf32>
    %1490 = arith.mulf %1489, %864 : vector<1x128xf32>
    %c368 = arith.constant 368 : index
    %1491 = memref.load %arg0[%c368] : memref<389xf32, #tpu.memory_space<smem>>
    %1492 = vector.broadcast %1491 : f32 to vector<1x128xf32>
    %1493 = arith.mulf %1492, %908 : vector<1x128xf32>
    %c369 = arith.constant 369 : index
    %1494 = memref.load %arg0[%c369] : memref<389xf32, #tpu.memory_space<smem>>
    %1495 = vector.broadcast %1494 : f32 to vector<1x128xf32>
    %1496 = arith.mulf %1495, %952 : vector<1x128xf32>
    %c370 = arith.constant 370 : index
    %1497 = memref.load %arg0[%c370] : memref<389xf32, #tpu.memory_space<smem>>
    %1498 = vector.broadcast %1497 : f32 to vector<1x128xf32>
    %1499 = arith.mulf %1498, %996 : vector<1x128xf32>
    %c371 = arith.constant 371 : index
    %1500 = memref.load %arg0[%c371] : memref<389xf32, #tpu.memory_space<smem>>
    %1501 = vector.broadcast %1500 : f32 to vector<1x128xf32>
    %1502 = arith.mulf %1501, %1040 : vector<1x128xf32>
    %1503 = arith.addf %1463, %1466 : vector<1x128xf32>
    %1504 = arith.addf %1469, %1472 : vector<1x128xf32>
    %1505 = arith.addf %1475, %1478 : vector<1x128xf32>
    %1506 = arith.addf %1481, %1484 : vector<1x128xf32>
    %1507 = arith.addf %1487, %1490 : vector<1x128xf32>
    %1508 = arith.addf %1493, %1496 : vector<1x128xf32>
    %1509 = arith.addf %1499, %1502 : vector<1x128xf32>
    %1510 = arith.addf %1503, %1504 : vector<1x128xf32>
    %1511 = arith.addf %1505, %1506 : vector<1x128xf32>
    %1512 = arith.addf %1507, %1508 : vector<1x128xf32>
    %1513 = arith.addf %1510, %1511 : vector<1x128xf32>
    %1514 = arith.addf %1512, %1509 : vector<1x128xf32>
    %1515 = arith.addf %1513, %1514 : vector<1x128xf32>
    %c379 = arith.constant 379 : index
    %1516 = memref.load %arg0[%c379] : memref<389xf32, #tpu.memory_space<smem>>
    %1517 = vector.broadcast %1516 : f32 to vector<1x128xf32>
    %1518 = arith.addf %1515, %1517 : vector<1x128xf32>
    %cst_40 = arith.constant 0.000000e+00 : f32
    %1519 = vector.broadcast %cst_40 : f32 to vector<1x128xf32>
    %1520 = arith.maximumf %1518, %1519 : vector<1x128xf32>
    %c380 = arith.constant 380 : index
    %1521 = memref.load %arg0[%c380] : memref<389xf32, #tpu.memory_space<smem>>
    %1522 = vector.broadcast %1521 : f32 to vector<1x128xf32>
    %1523 = arith.mulf %1522, %1100 : vector<1x128xf32>
    %c381 = arith.constant 381 : index
    %1524 = memref.load %arg0[%c381] : memref<389xf32, #tpu.memory_space<smem>>
    %1525 = vector.broadcast %1524 : f32 to vector<1x128xf32>
    %1526 = arith.mulf %1525, %1160 : vector<1x128xf32>
    %c382 = arith.constant 382 : index
    %1527 = memref.load %arg0[%c382] : memref<389xf32, #tpu.memory_space<smem>>
    %1528 = vector.broadcast %1527 : f32 to vector<1x128xf32>
    %1529 = arith.mulf %1528, %1220 : vector<1x128xf32>
    %c383 = arith.constant 383 : index
    %1530 = memref.load %arg0[%c383] : memref<389xf32, #tpu.memory_space<smem>>
    %1531 = vector.broadcast %1530 : f32 to vector<1x128xf32>
    %1532 = arith.mulf %1531, %1280 : vector<1x128xf32>
    %c384 = arith.constant 384 : index
    %1533 = memref.load %arg0[%c384] : memref<389xf32, #tpu.memory_space<smem>>
    %1534 = vector.broadcast %1533 : f32 to vector<1x128xf32>
    %1535 = arith.mulf %1534, %1340 : vector<1x128xf32>
    %c385 = arith.constant 385 : index
    %1536 = memref.load %arg0[%c385] : memref<389xf32, #tpu.memory_space<smem>>
    %1537 = vector.broadcast %1536 : f32 to vector<1x128xf32>
    %1538 = arith.mulf %1537, %1400 : vector<1x128xf32>
    %c386 = arith.constant 386 : index
    %1539 = memref.load %arg0[%c386] : memref<389xf32, #tpu.memory_space<smem>>
    %1540 = vector.broadcast %1539 : f32 to vector<1x128xf32>
    %1541 = arith.mulf %1540, %1460 : vector<1x128xf32>
    %c387 = arith.constant 387 : index
    %1542 = memref.load %arg0[%c387] : memref<389xf32, #tpu.memory_space<smem>>
    %1543 = vector.broadcast %1542 : f32 to vector<1x128xf32>
    %1544 = arith.mulf %1543, %1520 : vector<1x128xf32>
    %1545 = arith.addf %1523, %1526 : vector<1x128xf32>
    %1546 = arith.addf %1529, %1532 : vector<1x128xf32>
    %1547 = arith.addf %1535, %1538 : vector<1x128xf32>
    %1548 = arith.addf %1541, %1544 : vector<1x128xf32>
    %1549 = arith.addf %1545, %1546 : vector<1x128xf32>
    %1550 = arith.addf %1547, %1548 : vector<1x128xf32>
    %1551 = arith.addf %1549, %1550 : vector<1x128xf32>
    %c388 = arith.constant 388 : index
    %1552 = memref.load %arg0[%c388] : memref<389xf32, #tpu.memory_space<smem>>
    %1553 = vector.broadcast %1552 : f32 to vector<1x128xf32>
    %1554 = arith.addf %1551, %1553 : vector<1x128xf32>
    %c0_41 = arith.constant 0 : index
    %c0_42 = arith.constant 0 : index
    %1555 = vector.load %arg2[%c0_41, %c0_42] : memref<1x128xf32, #tpu.memory_space<vmem>>, vector<1x128xf32>
    tpu.vector_store %arg2[%c0_41, %c0_42], %1554 {strides = array<i32>} : memref<1x128xf32, #tpu.memory_space<vmem>>, vector<1x128xf32>,
    return
  }
}

</mosaic_0001>

<bundles_post_ra>
// kernel: mlp_forward.1
= control target key start
LH: loop header
LB: loop body
LE: loop exit
PB: predicated region body
PF: predicated region fallthrough
CT: control target
= control target key end

     0   :  { %s3680_s0 = inlined_call_operand.vmem [shape: f32[389], index: 0, kind: input, shape index: {}]   ;;  %s3681_s1 = inlined_call_operand.vmem [shape: f32[1,128], index: 1, kind: input, shape index: {}]   ;;  %s3682_s2 = inlined_call_operand.vmem [shape: f32[1,128], index: 2, kind: output, shape index: {}]  }
   0x1   :  { %3692 = sst [smem:[#allocation81_spill]] %s3682_s2 }
   0x2   :  { %7 = vsyncpa [#allocation3], 0  ;;  %s13_s11 = sshll.u32 %s3680_s0, 4  ;;  %s1948_s12 = smov [#allocation2]   ;;  %s14_s11 = int_to_ptr.vmem [resolvable:$true] %s13_s11 }
   0x3   :  { %16 = dma.vmem_to_smem %s14_s11, 64, %s1948_s12, [#allocation3]  }
   0x4   :  { %1946 = dma.done.wait [#allocation3], 64  }
   0x5   :  { %1947 = vsyncadd [#allocation3], 4294967232 }
   0x6   :  { %23 = sfence }
   0x7   :  { %s1967_s13 = sld [smem:[#allocation2]]  ;;  %v24_v0 = vld [vmem:[%s3681_s1] sm:$0x1] }
   0x8   :  { %s1969_s14 = sld [smem:[#allocation2 + $0x8]] }
   0x9   :  { %s1971_s15 = sld [smem:[#allocation2 + $0x1]] }
   0xa   :  { %s1973_s16 = sld [smem:[#allocation2 + $0x9]] }
   0xb   :  { %s1975_s17 = sld [smem:[#allocation2 + $0x2]] }
   0xc   :  { %s1977_s18 = sld [smem:[#allocation2 + $0xa]] }
   0xd   :  { %s1979_s19 = sld [smem:[#allocation2 + $0x3]]  ;;  %v26_v1 = vstv %s1967_s13 }
   0xe   :  { %s1981_s0 = sld [smem:[#allocation2 + $0xb]]  ;;  %v27_v5 = vmul.f32 %v26_v1, %v24_v0  ;;  %v29_v8 = vstv %s1969_s14 }
   0xf   :  { %s1983_s20 = sld [smem:[#allocation2 + $0x4]]  ;;  %v33_v2 = vstv %s1971_s15 }
  0x10   :  { %s1985_s21 = sld [smem:[#allocation2 + $0xc]]  ;;  %v34_v6 = vmul.f32 %v33_v2, %v24_v0  ;;  %v36_v9 = vstv %s1973_s16  ;;  %v30_v17 = vadd.f32 %v29_v8, %v27_v5 }
  0x11   :  { %s1987_s22 = sld [smem:[#allocation2 + $0x5]]  ;;  %v40_v3 = vstv %s1975_s17 }
  0x12   :  { %s1989_s23 = sld [smem:[#allocation2 + $0xd]]  ;;  %v41_v7 = vmul.f32 %v40_v3, %v24_v0  ;;  %v43_v10 = vstv %s1977_s18  ;;  %v37_v18 = vadd.f32 %v36_v9, %v34_v6  ;;  %v2202_v29 = vmax.f32 %v30_v17, 0.0 }
  0x13   :  { %s1991_s24 = sld [smem:[#allocation2 + $0x6]]  ;;  %v47_v4 = vstv %s1979_s19 }
  0x14   :  { %s1993_s25 = sld [smem:[#allocation2 + $0xe]]  ;;  %v48_v11 = vmul.f32 %v47_v4, %v24_v0  ;;  %v50_v12 = vstv %s1981_s0  ;;  %v44_v19 = vadd.f32 %v43_v10, %v41_v7  ;;  %v2206_v30 = vmax.f32 %v37_v18, 0.0 }
  0x15   :  { %s1995_s26 = sld [smem:[#allocation2 + $0x7]]  ;;  %v54_v13 = vstv %s1983_s20 }
  0x16   :  { %s1997_s27 = sld [smem:[#allocation2 + $0xf]]  ;;  %v51_v20 = vadd.f32 %v50_v12, %v48_v11  ;;  %v55_v21 = vmul.f32 %v54_v13, %v24_v0  ;;  %v57_v24 = vstv %s1985_s21  ;;  %v2210_v34 = vmax.f32 %v44_v19, 0.0 }
  0x17   :  { %s1999_s28 = sld [smem:[#allocation2 + $0x10]]  ;;  %v61_v14 = vstv %s1987_s22 }
  0x18   :  { %s2001_s29 = sld [smem:[#allocation2 + $0x11]]  ;;  %v62_v22 = vmul.f32 %v61_v14, %v24_v0  ;;  %v64_v25 = vstv %s1989_s23  ;;  %v58_v31 = vadd.f32 %v57_v24, %v55_v21  ;;  %v2212_v35 = vmax.f32 %v51_v20, 0.0 }
  0x19   :  { %s2003_s30 = sld [smem:[#allocation2 + $0x12]]  ;;  %v68_v15 = vstv %s1991_s24 }
  0x1a   :  { %s2005_s3 = sld [smem:[#allocation2 + $0x13]]  ;;  %v69_v23 = vmul.f32 %v68_v15, %v24_v0  ;;  %v71_v26 = vstv %s1993_s25  ;;  %v65_v32 = vadd.f32 %v64_v25, %v62_v22  ;;  %v2224_v41 = vmax.f32 %v58_v31, 0.0 }
  0x1b   :  { %s2007_s4 = sld [smem:[#allocation2 + $0x14]]  ;;  %v75_v16 = vstv %s1995_s26 }
  0x1c   :  { %s2009_s5 = sld [smem:[#allocation2 + $0x15]]  ;;  %v76_v27 = vmul.f32 %v75_v16, %v24_v0  ;;  %v78_v28 = vstv %s1997_s27  ;;  %v72_v33 = vadd.f32 %v71_v26, %v69_v23  ;;  %v2226_v42 = vmax.f32 %v65_v32, 0.0 }
  0x1d   :  { %s2011_s6 = sld [smem:[#allocation2 + $0x16]]  ;;  %v82_v37 = vstv %s1999_s28 }
  0x1e   :  { %s2013_s7 = sld [smem:[#allocation2 + $0x17]]  ;;  %v79_v36 = vadd.f32 %v78_v28, %v76_v27  ;;  %v85_v38 = vstv %s2001_s29  ;;  %v2228_v43 = vmax.f32 %v72_v33, 0.0  ;;  %v83_v44 = vmul.f32 %v82_v37, %v2202_v29 }
  0x1f   :  { %s2015_s8 = sld [smem:[#allocation2 + $0x60]]  ;;  %v88_v39 = vstv %s2003_s30  ;;  %v86_v46 = vmul.f32 %v85_v38, %v2206_v30 }
  0x20   :  { %3693 = sst [smem:[#allocation5_spill]] %s2005_s3  ;;  %v2233_v45 = vmax.f32 %v79_v36, 0.0  ;;  %v89_v47 = vmul.f32 %v88_v39, %v2210_v34 }
  0x21   :  { %3694 = sst [smem:[#allocation6_spill]] %s2007_s4  ;;  %v105_v13 = vadd.f32 %v86_v46, %v83_v44 }
  0x22   :  { %3695 = sst [smem:[#allocation7_spill]] %s2009_s5 }
  0x23   :  { %3696 = sst [smem:[#allocation8_spill]] %s2011_s6 }
  0x24   :  { %3697 = sst [smem:[#allocation9_spill]] %s2013_s7 }
  0x25   :  { %3698 = sst [smem:[#allocation10_spill]] %s2015_s8 }
  0x26   :  { %s2017_s9 = sld [smem:[#allocation2 + $0x18]] }
  0x27   :  { %s2019_s10 = sld [smem:[#allocation2 + $0x19]] }
  0x28   :  { %s2021_s11 = sld [smem:[#allocation2 + $0x1a]] }
  0x29   :  { %s2023_s12 = sld [smem:[#allocation2 + $0x1b]] }
  0x2a   :  { %s2025_s2 = sld [smem:[#allocation2 + $0x1c]] }
  0x2b   :  { %s2027_s3 = sld [smem:[#allocation2 + $0x1d]] }
  0x2c   :  { %3699 = sst [smem:[#allocation11_spill]] %s2017_s9 }
  0x2d   :  { %3700 = sst [smem:[#allocation12_spill]] %s2019_s10 }
  0x2e   :  { %3701 = sst [smem:[#allocation13_spill]] %s2021_s11 }
  0x2f   :  { %3702 = sst [smem:[#allocation14_spill]] %s2023_s12 }
  0x30   :  { %3703 = sst [smem:[#allocation15_spill]] %s2025_s2 }
  0x31   :  { %3704 = sst [smem:[#allocation16_spill]] %s2027_s3 }
  0x32   :  { %s2029_s4 = sld [smem:[#allocation2 + $0x1e]] }
  0x33   :  { %s2031_s5 = sld [smem:[#allocation2 + $0x1f]] }
  0x34   :  { %s2033_s6 = sld [smem:[#allocation2 + $0x61]] }
  0x35   :  { %s2035_s7 = sld [smem:[#allocation2 + $0x20]] }
  0x36   :  { %s2037_s8 = sld [smem:[#allocation2 + $0x21]] }
  0x37   :  { %s2039_s9 = sld [smem:[#allocation2 + $0x22]] }
  0x38   :  { %3705 = sst [smem:[#allocation17_spill]] %s2029_s4 }
  0x39   :  { %3706 = sst [smem:[#allocation18_spill]] %s2031_s5 }
  0x3a   :  { %3707 = sst [smem:[#allocation19_spill]] %s2033_s6 }
  0x3b   :  { %3708 = sst [smem:[#allocation20_spill]] %s2035_s7 }
  0x3c   :  { %3709 = sst [smem:[#allocation21_spill]] %s2037_s8 }
  0x3d   :  { %3710 = sst [smem:[#allocation22_spill]] %s2039_s9 }
  0x3e   :  { %s2041_s10 = sld [smem:[#allocation2 + $0x23]] }
  0x3f   :  { %s2043_s11 = sld [smem:[#allocation2 + $0x24]] }
  0x40   :  { %s2045_s12 = sld [smem:[#allocation2 + $0x25]] }
  0x41   :  { %s2047_s2 = sld [smem:[#allocation2 + $0x26]] }
  0x42   :  { %s2049_s3 = sld [smem:[#allocation2 + $0x27]] }
  0x43   :  { %s2051_s4 = sld [smem:[#allocation2 + $0x62]] }
  0x44   :  { %3711 = sst [smem:[#allocation23_spill]] %s2041_s10 }
  0x45   :  { %3712 = sst [smem:[#allocation24_spill]] %s2043_s11 }
  0x46   :  { %3713 = sst [smem:[#allocation25_spill]] %s2045_s12 }
  0x47   :  { %3714 = sst [smem:[#allocation26_spill]] %s2047_s2 }
  0x48   :  { %3715 = sst [smem:[#allocation27_spill]] %s2049_s3 }
  0x49   :  { %3716 = sst [smem:[#allocation28_spill]] %s2051_s4 }
  0x4a   :  { %s2053_s5 = sld [smem:[#allocation2 + $0x28]] }
  0x4b   :  { %s2055_s6 = sld [smem:[#allocation2 + $0x29]] }
  0x4c   :  { %s2057_s7 = sld [smem:[#allocation2 + $0x2a]] }
  0x4d   :  { %s2059_s8 = sld [smem:[#allocation2 + $0x2b]] }
  0x4e   :  { %s2061_s9 = sld [smem:[#allocation2 + $0x2c]] }
  0x4f   :  { %s2063_s10 = sld [smem:[#allocation2 + $0x2d]] }
  0x50   :  { %3717 = sst [smem:[#allocation29_spill]] %s2053_s5 }
  0x51   :  { %3718 = sst [smem:[#allocation30_spill]] %s2055_s6 }
  0x52   :  { %3719 = sst [smem:[#allocation31_spill]] %s2057_s7 }
  0x53   :  { %3720 = sst [smem:[#allocation32_spill]] %s2059_s8 }
  0x54   :  { %3721 = sst [smem:[#allocation33_spill]] %s2061_s9 }
  0x55   :  { %3722 = sst [smem:[#allocation34_spill]] %s2063_s10 }
  0x56   :  { %s2065_s11 = sld [smem:[#allocation2 + $0x2e]] }
  0x57   :  { %s2067_s12 = sld [smem:[#allocation2 + $0x2f]] }
  0x58   :  { %s2069_s2 = sld [smem:[#allocation2 + $0x63]] }
  0x59   :  { %s2071_s3 = sld [smem:[#allocation2 + $0x30]] }
  0x5a   :  { %s2073_s4 = sld [smem:[#allocation2 + $0x31]] }
  0x5b   :  { %s2075_s5 = sld [smem:[#allocation2 + $0x32]] }
  0x5c   :  { %3723 = sst [smem:[#allocation35_spill]] %s2065_s11 }
  0x5d   :  { %3724 = sst [smem:[#allocation36_spill]] %s2067_s12 }
  0x5e   :  { %3725 = sst [smem:[#allocation37_spill]] %s2069_s2 }
  0x5f   :  { %3726 = sst [smem:[#allocation38_spill]] %s2071_s3 }
  0x60   :  { %3727 = sst [smem:[#allocation39_spill]] %s2073_s4 }
  0x61   :  { %3728 = sst [smem:[#allocation40_spill]] %s2075_s5 }
  0x62   :  { %s2077_s6 = sld [smem:[#allocation2 + $0x33]] }
  0x63   :  { %s2079_s7 = sld [smem:[#allocation2 + $0x34]] }
  0x64   :  { %s2081_s8 = sld [smem:[#allocation2 + $0x35]] }
  0x65   :  { %s2083_s9 = sld [smem:[#allocation2 + $0x36]] }
  0x66   :  { %s2085_s10 = sld [smem:[#allocation2 + $0x37]] }
  0x67   :  { %s2087_s11 = sld [smem:[#allocation2 + $0x64]] }
  0x68   :  { %3729 = sst [smem:[#allocation41_spill]] %s2077_s6 }
  0x69   :  { %3730 = sst [smem:[#allocation42_spill]] %s2079_s7 }
  0x6a   :  { %3731 = sst [smem:[#allocation43_spill]] %s2081_s8 }
  0x6b   :  { %3732 = sst [smem:[#allocation44_spill]] %s2083_s9 }
  0x6c   :  { %3733 = sst [smem:[#allocation45_spill]] %s2085_s10 }
  0x6d   :  { %3734 = sst [smem:[#allocation46_spill]] %s2087_s11 }
  0x6e   :  { %s2089_s12 = sld [smem:[#allocation2 + $0x38]] }
  0x6f   :  { %s2091_s2 = sld [smem:[#allocation2 + $0x39]] }
  0x70   :  { %s2093_s3 = sld [smem:[#allocation2 + $0x3a]] }
  0x71   :  { %s2095_s4 = sld [smem:[#allocation2 + $0x3b]] }
  0x72   :  { %s2097_s5 = sld [smem:[#allocation2 + $0x3c]] }
  0x73   :  { %s2099_s6 = sld [smem:[#allocation2 + $0x3d]] }
  0x74   :  { %3735 = sst [smem:[#allocation47_spill]] %s2089_s12 }
  0x75   :  { %3736 = sst [smem:[#allocation48_spill]] %s2091_s2 }
  0x76   :  { %3737 = sst [smem:[#allocation49_spill]] %s2093_s3 }
  0x77   :  { %3738 = sst [smem:[#allocation50_spill]] %s2095_s4 }
  0x78   :  { %3739 = sst [smem:[#allocation51_spill]] %s2097_s5 }
  0x79   :  { %3740 = sst [smem:[#allocation52_spill]] %s2099_s6 }
  0x7a   :  { %s2101_s7 = sld [smem:[#allocation2 + $0x3e]] }
  0x7b   :  { %s2103_s8 = sld [smem:[#allocation2 + $0x3f]] }
  0x7c   :  { %s2105_s9 = sld [smem:[#allocation2 + $0x65]] }
  0x7d   :  { %s2107_s10 = sld [smem:[#allocation2 + $0x40]] }
  0x7e   :  { %s2109_s11 = sld [smem:[#allocation2 + $0x41]] }
  0x7f   :  { %s2111_s12 = sld [smem:[#allocation2 + $0x42]] }
  0x80   :  { %3741 = sst [smem:[#allocation53_spill]] %s2101_s7 }
  0x81   :  { %3742 = sst [smem:[#allocation54_spill]] %s2103_s8 }
  0x82   :  { %3743 = sst [smem:[#allocation55_spill]] %s2105_s9 }
  0x83   :  { %3744 = sst [smem:[#allocation56_spill]] %s2107_s10 }
  0x84   :  { %3745 = sst [smem:[#allocation57_spill]] %s2109_s11 }
  0x85   :  { %s2113_s2 = sld [smem:[#allocation2 + $0x43]] }
  0x86   :  { %s2115_s3 = sld [smem:[#allocation2 + $0x44]] }
  0x87   :  { %s2117_s4 = sld [smem:[#allocation2 + $0x45]] }
  0x88   :  { %s2119_s5 = sld [smem:[#allocation2 + $0x46]] }
  0x89   :  { %s2121_s6 = sld [smem:[#allocation2 + $0x47]] }
  0x8a   :  { %s2123_s7 = sld [smem:[#allocation2 + $0x66]] }
  0x8b   :  { %3746 = sst [smem:[#allocation58_spill]] %s2113_s2 }
  0x8c   :  { %3747 = sst [smem:[#allocation59_spill]] %s2115_s3 }
  0x8d   :  { %3748 = sst [smem:[#allocation60_spill]] %s2117_s4 }
  0x8e   :  { %3749 = sst [smem:[#allocation61_spill]] %s2119_s5 }
  0x8f   :  { %3750 = sst [smem:[#allocation62_spill]] %s2121_s6 }
  0x90   :  { %3751 = sst [smem:[#allocation63_spill]] %s2123_s7 }
  0x91   :  { %s2125_s8 = sld [smem:[#allocation2 + $0x48]] }
  0x92   :  { %s2127_s9 = sld [smem:[#allocation2 + $0x49]] }
  0x93   :  { %s2129_s10 = sld [smem:[#allocation2 + $0x4a]] }
  0x94   :  { %s2131_s11 = sld [smem:[#allocation2 + $0x4b]] }
  0x95   :  { %s2133_s2 = sld [smem:[#allocation2 + $0x4c]] }
  0x96   :  { %s2135_s3 = sld [smem:[#allocation2 + $0x4d]] }
  0x97   :  { %3752 = sst [smem:[#allocation64_spill]] %s2125_s8 }
  0x98   :  { %3753 = sst [smem:[#allocation65_spill]] %s2127_s9 }
  0x99   :  { %3754 = sst [smem:[#allocation66_spill]] %s2129_s10 }
  0x9a   :  { %3755 = sst [smem:[#allocation67_spill]] %s2131_s11 }
  0x9b   :  { %3756 = sst [smem:[#allocation68_spill]] %s2133_s2 }
  0x9c   :  { %3757 = sst [smem:[#allocation69_spill]] %s2135_s3 }
  0x9d   :  { %s2137_s5 = sld [smem:[#allocation2 + $0x4e]] }
  0x9e   :  { %s2139_s6 = sld [smem:[#allocation2 + $0x4f]] }
  0x9f   :  { %s2141_s7 = sld [smem:[#allocation2 + $0x67]] }
  0xa0   :  { %s2143_s8 = sld [smem:[#allocation2 + $0x50]] }
  0xa1   :  { %s2145_s9 = sld [smem:[#allocation2 + $0x51]] }
  0xa2   :  { %s2147_s10 = sld [smem:[#allocation2 + $0x52]] }
  0xa3   :  { %3758 = sst [smem:[#allocation70_spill]] %s2137_s5 }
  0xa4   :  { %3759 = sst [smem:[#allocation71_spill]] %s2139_s6 }
  0xa5   :  { %3760 = sst [smem:[#allocation72_spill]] %s2141_s7 }
  0xa6   :  { %3761 = sst [smem:[#allocation73_spill]] %s2143_s8 }
  0xa7   :  { %s2149_s11 = sld [smem:[#allocation2 + $0x53]] }
  0xa8   :  { %s2151_s2 = sld [smem:[#allocation2 + $0x54]] }
  0xa9   :  { %s2153_s4 = sld [smem:[#allocation2 + $0x55]] }
  0xaa   :  { %s2155_s3 = sld [smem:[#allocation2 + $0x56]] }
  0xab   :  { %s2157_s6 = sld [smem:[#allocation2 + $0x57]] }
  0xac   :  { %s2159_s7 = sld [smem:[#allocation2 + $0x68]] }
  0xad   :  { %s2174_s5 = sld [smem:[#allocation2 + $0x5b]] }
  0xae   :  { %s2179_s1 = sld [smem:[#allocation2 + $0x5c]] }
  0xaf   :  { %3762 = sst [smem:[#allocation74_spill]] %s2153_s4 }
  0xb0   :  { %3763 = sst [smem:[#allocation75_spill]] %s2155_s3 }
  0xb1   :  { %3764 = sst [smem:[#allocation76_spill]] %s2157_s6 }
  0xb2   :  { %s2167_s4 = sld [smem:[#allocation2 + $0x58]] }
  0xb3   :  { %s2170_s3 = sld [smem:[#allocation2 + $0x59]] }
  0xb4   :  { %s2172_s6 = sld [smem:[#allocation2 + $0x5a]] }
  0xb5   :  { %s2185_s13 = sld [smem:[#allocation2 + $0x5d]] }
  0xb6   :  { %s2188_s15 = sld [smem:[#allocation2 + $0x5e]] }
  0xb7   :  { %s2190_s14 = sld [smem:[#allocation2 + $0x5f]] }
  0xb8   :  { %s2192_s16 = sld [smem:[#allocation2 + $0x69]] }
  0xb9   :  { %s2197_s17 = sld [smem:[#allocation2 + $0x6a]] }
  0xba   :  { %s3766_s18 = sld [smem:[#allocation5_spill]] }
  0xbb   :  { %s2200_s19 = sld [smem:[#allocation2 + $0x6b]] }
  0xbc   :  { %s2204_s0 = sld [smem:[#allocation2 + $0x6c]] }
  0xbd   :  { %s2208_s20 = sld [smem:[#allocation2 + $0x6d]] }
  0xbe   :  { %3765 = sst [smem:[#allocation77_spill]] %s2192_s16 }
  0xbf   :  { %s2215_s21 = sld [smem:[#allocation2 + $0x6e]] }
  0xc0   :  { %s3771_s22 = sld [smem:[#allocation6_spill]]  ;;  %v91_v40 = vstv %s3766_s18 }
  0xc1   :  { %3767 = sst [smem:[#allocation5_spill]] %s2200_s19  ;;  %v92_v48 = vmul.f32 %v91_v40, %v2212_v35 }
  0xc2   :  { %3768 = sst [smem:[#allocation78_spill]] %s2204_s0 }
  0xc3   :  { %3769 = sst [smem:[#allocation79_spill]] %s2208_s20  ;;  %v106_v14 = vadd.f32 %v92_v48, %v89_v47 }
  0xc4   :  { %s3772_s23 = sld [smem:[#allocation7_spill]] }
  0xc5   :  { %3770 = sst [smem:[#allocation80_spill]] %s2215_s21 }
  0xc6   :  { %s3773_s24 = sld [smem:[#allocation8_spill]]  ;;  %v94_v49 = vstv %s3771_s22 }
  0xc7   :  { %s3774_s25 = sld [smem:[#allocation9_spill]]  ;;  %v95_v61 = vmul.f32 %v94_v49, %v2224_v41 }
  0xc8   :  { %s2220_s26 = sld [smem:[#allocation2 + $0x6f]] }
  0xc9   :  { %s2222_s27 = sld [smem:[#allocation2 + $0x70]] }
  0xca   :  { %s3777_s8 = sld [smem:[#allocation11_spill]]  ;;  %v97_v50 = vstv %s3772_s23 }
  0xcb   :  { %s3778_s16 = sld [smem:[#allocation12_spill]]  ;;  %v98_v62 = vmul.f32 %v97_v50, %v2226_v42 }
  0xcc   :  { %s3779_s28 = sld [smem:[#allocation13_spill]]  ;;  %v100_v51 = vstv %s3773_s24 }
  0xcd   :  { %s3780_s29 = sld [smem:[#allocation14_spill]]  ;;  %v103_v52 = vstv %s3774_s25  ;;  %v101_v63 = vmul.f32 %v100_v51, %v2228_v43  ;;  %v107_v15 = vadd.f32 %v98_v62, %v95_v61 }
  0xce   :  { %3775 = sst [smem:[#allocation6_spill]] %s2220_s26  ;;  %v104_v0 = vmul.f32 %v103_v52, %v2233_v45 }
  0xcf   :  { %3776 = sst [smem:[#allocation7_spill]] %s2222_s27 }
  0xd0   :  { %s2231_s30 = sld [smem:[#allocation2 + $0x71]]  ;;  %v117_v53 = vstv %s3777_s8  ;;  %v108_v16 = vadd.f32 %v104_v0, %v101_v63 }
  0xd1   :  { %s3782_s18 = sld [smem:[#allocation15_spill]]  ;;  %v120_v54 = vstv %s3778_s16  ;;  %v118_v1 = vmul.f32 %v117_v53, %v2202_v29 }
  0xd2   :  { %s3783_s26 = sld [smem:[#allocation16_spill]]  ;;  %v123_v55 = vstv %s3779_s28  ;;  %v121_v2 = vmul.f32 %v120_v54, %v2206_v30 }
  0xd3   :  { %s3784_s27 = sld [smem:[#allocation17_spill]]  ;;  %v126_v56 = vstv %s3780_s29  ;;  %v124_v3 = vmul.f32 %v123_v55, %v2210_v34 }
  0xd4   :  { %s3785_s21 = sld [smem:[#allocation18_spill]]  ;;  %v127_v4 = vmul.f32 %v126_v56, %v2212_v35  ;;  %v140_v17 = vadd.f32 %v121_v2, %v118_v1 }
  0xd5   :  { %s2238_s20 = sld [smem:[#allocation2 + $0x72]] }
  0xd6   :  { %3781 = sst [smem:[#allocation8_spill]] %s2231_s30  ;;  %v141_v18 = vadd.f32 %v127_v4, %v124_v3 }
  0xd7   :  { %s2244_s0 = sld [smem:[#allocation2 + $0x73]]  ;;  %v129_v57 = vstv %s3782_s18 }
  0xd8   :  { %s2250_s30 = sld [smem:[#allocation2 + $0xf6]]  ;;  %v132_v58 = vstv %s3783_s26  ;;  %v130_v5 = vmul.f32 %v129_v57, %v2224_v41  ;;  %v109_v57 = vadd.f32 %v106_v14, %v105_v13 }
  0xd9   :  { %v135_v59 = vstv %s3784_s27  ;;  %s2256_s19 = sld [smem:[#allocation2 + $0x74]]  ;;  %v133_v6 = vmul.f32 %v132_v58, %v2226_v42  ;;  %v110_v58 = vadd.f32 %v108_v16, %v107_v15 }
  0xda   :  { %v138_v60 = vstv %s3785_s21  ;;  %s3790_s22 = sld [smem:[#allocation20_spill]]  ;;  %v136_v7 = vmul.f32 %v135_v59, %v2228_v43  ;;  %v144_v59 = vadd.f32 %v141_v18, %v140_v17 }
  0xdb   :  { %3786 = sst [smem:[#allocation9_spill]] %s2238_s20  ;;  %v139_v8 = vmul.f32 %v138_v60, %v2233_v45  ;;  %v142_v19 = vadd.f32 %v133_v6, %v130_v5 }
  0xdc   :  { %s3791_s23 = sld [smem:[#allocation21_spill]] }
  0xdd   :  { %3787 = sst [smem:[#allocation11_spill]] %s2244_s0  ;;  %v143_v20 = vadd.f32 %v139_v8, %v136_v7 }
  0xde   :  { %3788 = sst [smem:[#allocation12_spill]] %s2250_s30 }
  0xdf   :  { %3789 = sst [smem:[#allocation13_spill]] %s2256_s19  ;;  %v145_v60 = vadd.f32 %v143_v20, %v142_v19 }
  0xe0   :  { %s3792_s16 = sld [smem:[#allocation22_spill]]  ;;  %v152_v9 = vstv %s3790_s22 }
  0xe1   :  { %s3793_s24 = sld [smem:[#allocation23_spill]]  ;;  %v153_v21 = vmul.f32 %v152_v9, %v2202_v29  ;;  %v111_v9 = vadd.f32 %v110_v58, %v109_v57  ;;  %v298_v57 = vstv %s2111_s12 }
  0xe2   :  { %s2262_s25 = sld [smem:[#allocation2 + $0x75]]  ;;  %v155_v10 = vstv %s3791_s23 }
  0xe3   :  { %s2268_s21 = sld [smem:[#allocation2 + $0x76]]  ;;  %v156_v22 = vmul.f32 %v155_v10, %v2206_v30 }
  0xe4   :  { %s2274_s26 = sld [smem:[#allocation2 + $0x77]] }
  0xe5   :  { %s2276_s27 = sld [smem:[#allocation2 + $0x78]]  ;;  %v175_v61 = vadd.f32 %v156_v22, %v153_v21 }
  0xe6   :  { %v158_v11 = vstv %s3792_s16  ;;  %s2282_s8 = sld [smem:[#allocation2 + $0x79]] }
  0xe7   :  { %v161_v12 = vstv %s3793_s24  ;;  %s3799_s28 = sld [smem:[#allocation24_spill]]  ;;  %v159_v23 = vmul.f32 %v158_v11, %v2210_v34  ;;  %v146_v11 = vadd.f32 %v145_v60, %v144_v59 }
  0xe8   :  { %3794 = sst [smem:[#allocation14_spill]] %s2262_s25  ;;  %v162_v24 = vmul.f32 %v161_v12, %v2212_v35 }
  0xe9   :  { %3795 = sst [smem:[#allocation15_spill]] %s2268_s21 }
  0xea   :  { %3796 = sst [smem:[#allocation16_spill]] %s2274_s26  ;;  %v176_v62 = vadd.f32 %v162_v24, %v159_v23 }
  0xeb   :  { %3797 = sst [smem:[#allocation17_spill]] %s2276_s27 }
  0xec   :  { %3798 = sst [smem:[#allocation18_spill]] %s2282_s8  ;;  %v179_v13 = vadd.f32 %v176_v62, %v175_v61 }
  0xed   :  { %s3800_s29 = sld [smem:[#allocation25_spill]]  ;;  %v164_v25 = vstv %s3799_s28 }
  0xee   :  { %s3801_s18 = sld [smem:[#allocation26_spill]]  ;;  %v165_v44 = vmul.f32 %v164_v25, %v2224_v41 }
  0xef   :  { %s3802_s30 = sld [smem:[#allocation27_spill]] }
  0xf0   :  { %s2284_s0 = sld [smem:[#allocation2 + $0x7a]] }
  0xf1   :  { %s3804_s20 = sld [smem:[#allocation29_spill]] }
  0xf2   :  { %s3805_s26 = sld [smem:[#allocation30_spill]] }
  0xf3   :  { %s3806_s22 = sld [smem:[#allocation31_spill]]  ;;  %v167_v26 = vstv %s3800_s29 }
  0xf4   :  { %s3807_s23 = sld [smem:[#allocation32_spill]]  ;;  %v170_v27 = vstv %s3801_s18  ;;  %v168_v46 = vmul.f32 %v167_v26, %v2226_v42 }
  0xf5   :  { %s2286_s16 = sld [smem:[#allocation2 + $0x7b]]  ;;  %v173_v28 = vstv %s3802_s30  ;;  %v171_v47 = vmul.f32 %v170_v27, %v2228_v43 }
  0xf6   :  { %3803 = sst [smem:[#allocation20_spill]] %s2284_s0  ;;  %v174_v48 = vmul.f32 %v173_v28, %v2233_v45  ;;  %v177_v63 = vadd.f32 %v168_v46, %v165_v44 }
  0xf7   :  { %s3809_s24 = sld [smem:[#allocation33_spill]]  ;;  %v187_v31 = vstv %s3804_s20 }
  0xf8   :  { %s3810_s8 = sld [smem:[#allocation34_spill]]  ;;  %v190_v32 = vstv %s3805_s26  ;;  %v188_v49 = vmul.f32 %v187_v31, %v2202_v29  ;;  %v178_v0 = vadd.f32 %v174_v48, %v171_v47 }
  0xf9   :  { %s3811_s27 = sld [smem:[#allocation35_spill]]  ;;  %v193_v33 = vstv %s3806_s22  ;;  %v191_v50 = vmul.f32 %v190_v32, %v2206_v30 }
  0xfa   :  { %s3812_s0 = sld [smem:[#allocation36_spill]]  ;;  %v196_v36 = vstv %s3807_s23  ;;  %v194_v51 = vmul.f32 %v193_v33, %v2210_v34  ;;  %v180_v14 = vadd.f32 %v178_v0, %v177_v63 }
  0xfb   :  { %3808 = sst [smem:[#allocation21_spill]] %s2286_s16  ;;  %v197_v52 = vmul.f32 %v196_v36, %v2212_v35  ;;  %v210_v1 = vadd.f32 %v191_v50, %v188_v49 }
  0xfc   :  { %s2292_s21 = sld [smem:[#allocation2 + $0x7c]]  ;;  %v2368_v27 = vadd.f32 %v180_v14, %v179_v13 }
  0xfd   :  { %s2298_s25 = sld [smem:[#allocation2 + $0x7d]]  ;;  %v199_v37 = vstv %s3809_s24  ;;  %v211_v2 = vadd.f32 %v197_v52, %v194_v51 }
  0xfe   :  { %s2304_s16 = sld [smem:[#allocation2 + $0xf7]]  ;;  %v202_v38 = vstv %s3810_s8  ;;  %v200_v53 = vmul.f32 %v199_v37, %v2224_v41 }
  0xff   :  { %v205_v39 = vstv %s3811_s27  ;;  %s2310_s19 = sld [smem:[#allocation2 + $0x7e]]  ;;  %v203_v54 = vmul.f32 %v202_v38, %v2226_v42  ;;  %v214_v17 = vadd.f32 %v211_v2, %v210_v1 }
 0x100   :  { %v208_v40 = vstv %s3812_s0  ;;  %s2316_s20 = sld [smem:[#allocation2 + $0x7f]]  ;;  %v206_v55 = vmul.f32 %v205_v39, %v2228_v43 }
 0x101   :  { %s2322_s0 = sld [smem:[#allocation2 + $0x80]]  ;;  %v209_v56 = vmul.f32 %v208_v40, %v2233_v45  ;;  %v212_v3 = vadd.f32 %v203_v54, %v200_v53 }
 0x102   :  { %3813 = sst [smem:[#allocation22_spill]] %s2292_s21 }
 0x103   :  { %3814 = sst [smem:[#allocation23_spill]] %s2298_s25  ;;  %v213_v4 = vadd.f32 %v209_v56, %v206_v55 }
 0x104   :  { %3815 = sst [smem:[#allocation24_spill]] %s2304_s16 }
 0x105   :  { %3816 = sst [smem:[#allocation25_spill]] %s2310_s19  ;;  %v215_v18 = vadd.f32 %v213_v4, %v212_v3  ;;  %v299_v3 = vmul.f32 %v298_v57, %v2210_v34 }
 0x106   :  { %3817 = sst [smem:[#allocation26_spill]] %s2316_s20 }
 0x107   :  { %3818 = sst [smem:[#allocation27_spill]] %s2322_s0  ;;  %v2376_v33 = vadd.f32 %v215_v18, %v214_v17 }
 0x108   :  { %s2328_s30 = sld [smem:[#allocation2 + $0x81]] }
 0x109   :  { %s3820_s26 = sld [smem:[#allocation38_spill]] }
 0x10a   :  { %s3821_s27 = sld [smem:[#allocation39_spill]] }
 0x10b   :  { %s2330_s8 = sld [smem:[#allocation2 + $0x82]] }
 0x10c   :  { %s3823_s28 = sld [smem:[#allocation40_spill]] }
 0x10d   :  { %s3824_s29 = sld [smem:[#allocation41_spill]] }
 0x10e   :  { %3819 = sst [smem:[#allocation29_spill]] %s2328_s30 }
 0x10f   :  { %s3825_s18 = sld [smem:[#allocation10_spill]]  ;;  %v222_v5 = vstv %s3820_s26 }
 0x110   :  { %s2332_s22 = sld [smem:[#allocation2 + $0x83]]  ;;  %v225_v6 = vstv %s3821_s27  ;;  %v223_v15 = vmul.f32 %v222_v5, %v2202_v29 }
 0x111   :  { %3822 = sst [smem:[#allocation30_spill]] %s2330_s8  ;;  %v226_v16 = vmul.f32 %v225_v6, %v2206_v30 }
 0x112   :  { %s3827_s23 = sld [smem:[#allocation19_spill]]  ;;  %v228_v7 = vstv %s3823_s28 }
 0x113   :  { %s2334_s24 = sld [smem:[#allocation2 + $0x84]]  ;;  %v231_v8 = vstv %s3824_s29  ;;  %v229_v19 = vmul.f32 %v228_v7, %v2210_v34  ;;  %v2372_v32 = vadd.f32 %v226_v16, %v223_v15 }
 0x114   :  { %s2338_s16 = sld [smem:[#allocation2 + $0x85]]  ;;  %v232_v20 = vmul.f32 %v231_v8, %v2212_v35 }
 0x115   :  { %s2342_s8 = sld [smem:[#allocation2 + $0x86]]  ;;  %v113_v10 = vstv %s3825_s18 }
 0x116   :  { %3826 = sst [smem:[#allocation31_spill]] %s2332_s22  ;;  %v2360_v23 = vadd.f32 %v113_v10, %v111_v9  ;;  %v2384_v38 = vadd.f32 %v232_v20, %v229_v19 }
 0x117   :  { %s3831_s30 = sld [smem:[#allocation42_spill]] }
 0x118   :  { %s3832_s22 = sld [smem:[#allocation43_spill]]  ;;  %v148_v12 = vstv %s3827_s23 }
 0x119   :  { %3828 = sst [smem:[#allocation32_spill]] %s2334_s24  ;;  %v2362_v24 = vadd.f32 %v148_v12, %v146_v11 }
 0x11a   :  { %3829 = sst [smem:[#allocation33_spill]] %s2338_s16 }
 0x11b   :  { %3830 = sst [smem:[#allocation34_spill]] %s2342_s8 }
 0x11c   :  { %s2346_s0 = sld [smem:[#allocation2 + $0x87]] }
 0x11d   :  { %s3834_s20 = sld [smem:[#allocation44_spill]]  ;;  %v234_v21 = vstv %s3831_s30 }
 0x11e   :  { %s3835_s24 = sld [smem:[#allocation45_spill]]  ;;  %v237_v22 = vstv %s3832_s22  ;;  %v2379_v36 = vmul.f32 %v234_v21, %v2224_v41 }
 0x11f   :  { %s3836_s26 = sld [smem:[#allocation28_spill]]  ;;  %v2382_v37 = vmul.f32 %v237_v22, %v2226_v42 }
 0x120   :  { %s2350_s27 = sld [smem:[#allocation2 + $0xf8]] }
 0x121   :  { %s3838_s28 = sld [smem:[#allocation37_spill]] }
 0x122   :  { %3833 = sst [smem:[#allocation35_spill]] %s2346_s0 }
 0x123   :  { %s2354_s29 = sld [smem:[#allocation2 + $0x88]]  ;;  %v240_v25 = vstv %s3834_s20 }
 0x124   :  { %s2358_s18 = sld [smem:[#allocation2 + $0x89]]  ;;  %v243_v26 = vstv %s3835_s24  ;;  %v241_v39 = vmul.f32 %v240_v25, %v2228_v43 }
 0x125   :  { %s3841_s23 = sld [smem:[#allocation47_spill]]  ;;  %v183_v28 = vstv %s3836_s26  ;;  %v244_v40 = vmul.f32 %v243_v26, %v2233_v45 }
 0x126   :  { %3837 = sst [smem:[#allocation36_spill]] %s2350_s27 }
 0x127   :  { %s3842_s27 = sld [smem:[#allocation48_spill]]  ;;  %v218_v31 = vstv %s3838_s28 }
 0x128   :  { %s2366_s0 = sld [smem:[#allocation2 + $0x8a]] }
 0x129   :  { %3839 = sst [smem:[#allocation38_spill]] %s2354_s29 }
 0x12a   :  { %3840 = sst [smem:[#allocation39_spill]] %s2358_s18 }
 0x12b   :  { %s3844_s8 = sld [smem:[#allocation49_spill]]  ;;  %v257_v44 = vstv %s3841_s23 }
 0x12c   :  { %s3845_s16 = sld [smem:[#allocation50_spill]]  ;;  %v258_v55 = vmul.f32 %v257_v44, %v2202_v29 }
 0x12d   :  { %s3846_s29 = sld [smem:[#allocation51_spill]]  ;;  %v260_v46 = vstv %s3842_s27 }
 0x12e   :  { %3843 = sst [smem:[#allocation40_spill]] %s2366_s0  ;;  %v261_v56 = vmul.f32 %v260_v46, %v2206_v30 }
 0x12f   :  { %s3847_s30 = sld [smem:[#allocation52_spill]] }
 0x130   :  { %s2374_s22 = sld [smem:[#allocation2 + $0x8b]] }
 0x131   :  { %s3849_s18 = sld [smem:[#allocation53_spill]]  ;;  %v263_v47 = vstv %s3844_s8 }
 0x132   :  { %s3850_s20 = sld [smem:[#allocation54_spill]]  ;;  %v266_v48 = vstv %s3845_s16  ;;  %v264_v59 = vmul.f32 %v263_v47, %v2210_v34  ;;  %v247_v47 = vadd.f32 %v2382_v37, %v2379_v36 }
 0x133   :  { %s3851_s24 = sld [smem:[#allocation56_spill]]  ;;  %v269_v49 = vstv %s3846_s29  ;;  %v267_v60 = vmul.f32 %v266_v48, %v2212_v35  ;;  %v248_v48 = vadd.f32 %v244_v40, %v241_v39 }
 0x134   :  { %s3852_s0 = sld [smem:[#allocation57_spill]]  ;;  %v270_v61 = vmul.f32 %v269_v49, %v2224_v41 }
 0x135   :  { %s2386_s19 = sld [smem:[#allocation2 + $0x8c]]  ;;  %v272_v50 = vstv %s3847_s30 }
 0x136   :  { %3848 = sst [smem:[#allocation41_spill]] %s2374_s22  ;;  %v273_v62 = vmul.f32 %v272_v50, %v2226_v42 }
 0x137   :  { %s3854_s22 = sld [smem:[#allocation58_spill]]  ;;  %v275_v51 = vstv %s3849_s18 }
 0x138   :  { %s2392_s25 = sld [smem:[#allocation2 + $0x8d]]  ;;  %v278_v52 = vstv %s3850_s20  ;;  %v276_v63 = vmul.f32 %v275_v51, %v2228_v43  ;;  %v280_v51 = vadd.f32 %v261_v56, %v258_v55 }
 0x139   :  { %s2398_s21 = sld [smem:[#allocation2 + $0x8e]]  ;;  %v292_v53 = vstv %s3851_s24  ;;  %v279_v0 = vmul.f32 %v278_v52, %v2233_v45  ;;  %v281_v52 = vadd.f32 %v267_v60, %v264_v59  ;;  %v365_v60 = vstv %s2145_s9 }
 0x13a   :  { %v295_v54 = vstv %s3852_s0  ;;  %s3858_s23 = sld [smem:[#allocation59_spill]]  ;;  %v293_v1 = vmul.f32 %v292_v53, %v2202_v29  ;;  %v282_v53 = vadd.f32 %v273_v62, %v270_v61  ;;  %v368_v61 = vstv %s2147_s10 }
 0x13b   :  { %3853 = sst [smem:[#allocation10_spill]] %s2386_s19  ;;  %v296_v2 = vmul.f32 %v295_v54, %v2206_v30  ;;  %v283_v54 = vadd.f32 %v279_v0, %v276_v63  ;;  %v371_v62 = vstv %s2149_s11  ;;  %v374_v63 = vstv %s2151_s2 }
 0x13c   :  { %s2404_s19 = sld [smem:[#allocation2 + $0x8f]] }
 0x13d   :  { %s3859_s27 = sld [smem:[#allocation60_spill]]  ;;  %v301_v58 = vstv %s3854_s22  ;;  %v315_v57 = vadd.f32 %v296_v2, %v293_v1 }
 0x13e   :  { %3855 = sst [smem:[#allocation19_spill]] %s2392_s25  ;;  %v302_v4 = vmul.f32 %v301_v58, %v2212_v35 }
 0x13f   :  { %3856 = sst [smem:[#allocation42_spill]] %s2398_s21 }
 0x140   :  { %s2410_s8 = sld [smem:[#allocation2 + $0x90]]  ;;  %v304_v5 = vstv %s3858_s23  ;;  %v316_v36 = vadd.f32 %v302_v4, %v299_v3  ;;  %v249_v3 = vadd.f32 %v2384_v38, %v2372_v32  ;;  %v250_v4 = vadd.f32 %v248_v48, %v247_v47 }
 0x141   :  { %s3861_s16 = sld [smem:[#allocation61_spill]]  ;;  %v305_v15 = vmul.f32 %v304_v5, %v2224_v41  ;;  %v284_v5 = vadd.f32 %v281_v52, %v280_v51  ;;  %v375_v32 = vmul.f32 %v374_v63, %v2224_v41 }
 0x142   :  { %3857 = sst [smem:[#allocation43_spill]] %s2404_s19 }
 0x143   :  { %s3862_s29 = sld [smem:[#allocation62_spill]]  ;;  %v307_v6 = vstv %s3859_s27 }
 0x144   :  { %s3863_s0 = sld [smem:[#allocation64_spill]]  ;;  %v308_v16 = vmul.f32 %v307_v6, %v2226_v42  ;;  %v285_v6 = vadd.f32 %v283_v54, %v282_v53 }
 0x145   :  { %s3864_s18 = sld [smem:[#allocation65_spill]] }
 0x146   :  { %3860 = sst [smem:[#allocation44_spill]] %s2410_s8  ;;  %v317_v37 = vadd.f32 %v308_v16, %v305_v15 }
 0x147   :  { %s2416_s30 = sld [smem:[#allocation2 + $0x91]]  ;;  %v310_v7 = vstv %s3861_s16 }
 0x148   :  { %s3866_s12 = sld [smem:[#allocation66_spill]]  ;;  %v311_v19 = vmul.f32 %v310_v7, %v2228_v43 }
 0x149   :  { %s3867_s22 = sld [smem:[#allocation67_spill]]  ;;  %v313_v8 = vstv %s3862_s29 }
 0x14a   :  { %s3868_s20 = sld [smem:[#allocation68_spill]]  ;;  %v327_v9 = vstv %s3863_s0  ;;  %v314_v20 = vmul.f32 %v313_v8, %v2233_v45  ;;  %v366_v8 = vmul.f32 %v365_v60, %v2206_v30 }
 0x14b   :  { %s3869_s24 = sld [smem:[#allocation69_spill]]  ;;  %v330_v10 = vstv %s3864_s18  ;;  %v328_v21 = vmul.f32 %v327_v9, %v2202_v29  ;;  %v369_v9 = vmul.f32 %v368_v61, %v2210_v34 }
 0x14c   :  { %s2422_s8 = sld [smem:[#allocation2 + $0xf9]]  ;;  %v331_v22 = vmul.f32 %v330_v10, %v2206_v30  ;;  %v318_v39 = vadd.f32 %v314_v20, %v311_v19  ;;  %v372_v10 = vmul.f32 %v371_v62, %v2212_v35  ;;  %v403_v19 = vstv %s2172_s6 }
 0x14d   :  { %3865 = sst [smem:[#allocation45_spill]] %s2416_s30  ;;  %v406_v20 = vstv %s2174_s5  ;;  %v404_v51 = vmul.f32 %v403_v19, %v2210_v34 }
 0x14e   :  { %s3871_s19 = sld [smem:[#allocation70_spill]]  ;;  %v333_v11 = vstv %s3866_s12  ;;  %v350_v40 = vadd.f32 %v331_v22, %v328_v21  ;;  %v409_v21 = vstv %s2179_s1  ;;  %v412_v22 = vstv %s2185_s13 }
 0x14f   :  { %s3872_s30 = sld [smem:[#allocation71_spill]]  ;;  %v336_v12 = vstv %s3867_s22  ;;  %v334_v25 = vmul.f32 %v333_v11, %v2210_v34  ;;  %v407_v52 = vmul.f32 %v406_v20, %v2212_v35  ;;  %v410_v53 = vmul.f32 %v409_v21, %v2224_v41 }
 0x150   :  { %s2428_s21 = sld [smem:[#allocation2 + $0x92]]  ;;  %v339_v13 = vstv %s3868_s20  ;;  %v337_v26 = vmul.f32 %v336_v12, %v2212_v35  ;;  %v413_v54 = vmul.f32 %v412_v22, %v2226_v42  ;;  %v251_v34 = vadd.f32 %v250_v4, %v249_v3 }
 0x151   :  { %s2434_s25 = sld [smem:[#allocation2 + $0x93]]  ;;  %v342_v14 = vstv %s3869_s24  ;;  %v340_v44 = vmul.f32 %v339_v13, %v2224_v41  ;;  %v319_v13 = vadd.f32 %v316_v36, %v315_v57  ;;  %v286_v41 = vadd.f32 %v285_v6, %v284_v5 }
 0x152   :  { %3870 = sst [smem:[#allocation28_spill]] %s2422_s8  ;;  %v343_v46 = vmul.f32 %v342_v14, %v2226_v42  ;;  %v351_v55 = vadd.f32 %v337_v26, %v334_v25  ;;  %v320_v14 = vadd.f32 %v318_v39, %v317_v37  ;;  %v415_v25 = vstv %s2188_s15 }
 0x153   :  { %s2440_s8 = sld [smem:[#allocation2 + $0x94]]  ;;  %v418_v26 = vstv %s2190_s14  ;;  %v416_v57 = vmul.f32 %v415_v25, %v2228_v43  ;;  %v432_v3 = vstv %s2197_s17 }
 0x154   :  { %v345_v17 = vstv %s3871_s19  ;;  %s2446_s23 = sld [smem:[#allocation2 + $0x95]]  ;;  %v352_v56 = vadd.f32 %v343_v46, %v340_v44  ;;  %v354_v15 = vadd.f32 %v351_v55, %v350_v40  ;;  %v386_v46 = vadd.f32 %v372_v10, %v369_v9 }
 0x155   :  { %v348_v18 = vstv %s3872_s30  ;;  %s2452_s27 = sld [smem:[#allocation2 + $0x96]]  ;;  %v346_v49 = vmul.f32 %v345_v17, %v2228_v43  ;;  %v397_v17 = vstv %s2167_s4  ;;  %v419_v36 = vmul.f32 %v418_v26, %v2233_v45 }
 0x156   :  { %s2458_s19 = sld [smem:[#allocation2 + $0x97]]  ;;  %v349_v50 = vmul.f32 %v348_v18, %v2233_v45  ;;  %v400_v18 = vstv %s2170_s3  ;;  %v321_v39 = vadd.f32 %v320_v14, %v319_v13 }
 0x157   :  { %s3873_s16 = sld [smem:[#allocation73_spill]] }
 0x158   :  { %s2464_s29 = sld [smem:[#allocation2 + $0x98]]  ;;  %v353_v59 = vadd.f32 %v349_v50, %v346_v49  ;;  %v398_v49 = vmul.f32 %v397_v17, %v2202_v29  ;;  %v401_v50 = vmul.f32 %v400_v18, %v2206_v30  ;;  %v219_v30 = vadd.f32 %v218_v31, %v2376_v33 }
 0x159   :  { %s2466_s0 = sld [smem:[#allocation2 + $0x99]]  ;;  %v422_v31 = vadd.f32 %v413_v54, %v410_v53  ;;  %v423_v33 = vadd.f32 %v419_v36, %v416_v57 }
 0x15a   :  { %s3875_s18 = sld [smem:[#allocation74_spill]]  ;;  %v355_v16 = vadd.f32 %v353_v59, %v352_v56  ;;  %v2552_v59 = vmax.f32 %v2362_v24, 0.0  ;;  %v2558_v63 = vmax.f32 %v219_v30, 0.0 }
 0x15b   :  { %s3876_s30 = sld [smem:[#allocation75_spill]]  ;;  %v425_v24 = vadd.f32 %v423_v33, %v422_v31 }
 0x15c   :  { %s3877_s12 = sld [smem:[#allocation76_spill]] }
 0x15d   :  { %s2468_s22 = sld [smem:[#allocation2 + $0x9a]]  ;;  %v362_v58 = vstv %s3873_s16 }
 0x15e   :  { %s2471_s20 = sld [smem:[#allocation2 + $0x9b]]  ;;  %v363_v7 = vmul.f32 %v362_v58, %v2202_v29  ;;  %v184_v29 = vadd.f32 %v183_v28, %v2368_v27  ;;  %v420_v27 = vadd.f32 %v401_v50, %v398_v49  ;;  %v421_v28 = vadd.f32 %v407_v52, %v404_v51 }
 0x15f   :  { %3874 = sst [smem:[#allocation37_spill]] %s2466_s0  ;;  %v2549_v58 = vmax.f32 %v2360_v23, 0.0  ;;  %v393_v23 = vstv %s2159_s7 }
 0x160   :  { %s2476_s24 = sld [smem:[#allocation2 + $0xfa]]  ;;  %v377_v0 = vstv %s3875_s18  ;;  %v385_v44 = vadd.f32 %v366_v8, %v363_v7  ;;  %v2556_v62 = vmax.f32 %v184_v29, 0.0 }
 0x161   :  { %v380_v1 = vstv %s3876_s30  ;;  %s2482_s0 = sld [smem:[#allocation2 + $0x9c]]  ;;  %v378_v38 = vmul.f32 %v377_v0, %v2226_v42 }
 0x162   :  { %v383_v2 = vstv %s3877_s12  ;;  %s2486_s16 = sld [smem:[#allocation2 + $0x9d]]  ;;  %v381_v11 = vmul.f32 %v380_v1, %v2228_v43  ;;  %v356_v43 = vadd.f32 %v355_v16, %v354_v15  ;;  %v389_v40 = vadd.f32 %v386_v46, %v385_v44 }
 0x163   :  { %s2492_s2 = sld [smem:[#allocation2 + $0x9e]]  ;;  %v384_v12 = vmul.f32 %v383_v2, %v2233_v45  ;;  %v387_v47 = vadd.f32 %v378_v38, %v375_v32  ;;  %v424_v2 = vadd.f32 %v421_v28, %v420_v27 }
 0x164   :  { %3878 = sst [smem:[#allocation47_spill]] %s2471_s20 }
 0x165   :  { %s2498_s9 = sld [smem:[#allocation2 + $0x9f]]  ;;  %v388_v48 = vadd.f32 %v384_v12, %v381_v11  ;;  %v433_v12 = vmul.f32 %v432_v3, %v2549_v58  ;;  %v426_v13 = vadd.f32 %v425_v24, %v424_v2 }
 0x166   :  { %3879 = sst [smem:[#allocation48_spill]] %s2476_s24 }
 0x167   :  { %s2500_s10 = sld [smem:[#allocation2 + $0xa0]]  ;;  %v390_v55 = vadd.f32 %v388_v48, %v387_v47 }
 0x168   :  { %s2506_s11 = sld [smem:[#allocation2 + $0xa1]] }
 0x169   :  { %s2512_s18 = sld [smem:[#allocation2 + $0xa2]]  ;;  %v391_v1 = vadd.f32 %v390_v55, %v389_v40 }
 0x16a   :  { %s3880_s30 = sld [smem:[#allocation46_spill]] }
 0x16b   :  { %s2514_s12 = sld [smem:[#allocation2 + $0xa3]]  ;;  %v394_v38 = vadd.f32 %v393_v23, %v391_v1 }
 0x16c   :  { %s3881_s3 = sld [smem:[#allocation55_spill]] }
 0x16d   :  { %s3882_s4 = sld [smem:[#allocation63_spill]] }
 0x16e   :  { %s2520_s6 = sld [smem:[#allocation2 + $0xa4]] }
 0x16f   :  { %s3884_s5 = sld [smem:[#allocation72_spill]] }
 0x170   :  { %s2526_s1 = sld [smem:[#allocation2 + $0xa5]]  ;;  %v253_v35 = vstv %s3880_s30 }
 0x171   :  { %s2535_s13 = sld [smem:[#allocation2 + $0xfb]]  ;;  %v254_v56 = vadd.f32 %v253_v35, %v251_v34 }
 0x172   :  { %v288_v37 = vstv %s3881_s3  ;;  %s2539_s15 = sld [smem:[#allocation2 + $0xa6]] }
 0x173   :  { %v323_v42 = vstv %s3882_s4  ;;  %s2542_s14 = sld [smem:[#allocation2 + $0xa7]]  ;;  %v289_v60 = vadd.f32 %v288_v37, %v286_v41  ;;  %v2566_v4 = vmax.f32 %v254_v56, 0.0  ;;  %v2626_v41 = vmax.f32 %v394_v38, 0.0 }
 0x174   :  { %3883 = sst [smem:[#allocation49_spill]] %s2520_s6  ;;  %v324_v61 = vadd.f32 %v323_v42, %v321_v39 }
 0x175   :  { %v358_v45 = vstv %s3884_s5  ;;  %s2544_s26 = sld [smem:[#allocation2 + $0xa8]]  ;;  %v2573_v8 = vmax.f32 %v289_v60, 0.0 }
 0x176   :  { %3885 = sst [smem:[#allocation50_spill]] %s2526_s1  ;;  %v359_v0 = vadd.f32 %v358_v45, %v356_v43  ;;  %v2575_v9 = vmax.f32 %v324_v61, 0.0 }
 0x177   :  { %3886 = sst [smem:[#allocation51_spill]] %s2535_s13 }
 0x178   :  { %3887 = sst [smem:[#allocation52_spill]] %s2539_s15  ;;  %v2580_v32 = vmax.f32 %v359_v0, 0.0 }
 0x179   :  { %3888 = sst [smem:[#allocation53_spill]] %s2542_s14 }
 0x17a   :  { %s2546_s28 = sld [smem:[#allocation2 + $0xa9]] }
 0x17b   :  { %3889 = sst [smem:[#allocation54_spill]] %s2544_s26 }
 0x17c   :  { %s3891_s30 = sld [smem:[#allocation5_spill]] }
 0x17d   :  { %s3892_s3 = sld [smem:[#allocation78_spill]] }
 0x17e   :  { %s3893_s4 = sld [smem:[#allocation79_spill]] }
 0x17f   :  { %s2554_s5 = sld [smem:[#allocation2 + $0xaa]] }
 0x180   :  { %3890 = sst [smem:[#allocation56_spill]] %s2546_s28 }
 0x181   :  { %s3895_s13 = sld [smem:[#allocation80_spill]] }
 0x182   :  { %s2560_s24 = sld [smem:[#allocation2 + $0xab]]  ;;  %v435_v5 = vstv %s3891_s30 }
 0x183   :  { %s3897_s28 = sld [smem:[#allocation77_spill]]  ;;  %v438_v6 = vstv %s3892_s3  ;;  %v436_v14 = vmul.f32 %v435_v5, %v2552_v59 }
 0x184   :  { %s2564_s26 = sld [smem:[#allocation2 + $0xac]]  ;;  %v441_v7 = vstv %s3893_s4  ;;  %v439_v15 = vmul.f32 %v438_v6, %v2556_v62 }
 0x185   :  { %3894 = sst [smem:[#allocation57_spill]] %s2554_s5  ;;  %v442_v16 = vmul.f32 %v441_v7, %v2558_v63  ;;  %v461_v37 = vadd.f32 %v436_v14, %v433_v12 }
 0x186   :  { %s2571_s5 = sld [smem:[#allocation2 + $0xad]] }
 0x187   :  { %s3900_s14 = sld [smem:[#allocation6_spill]]  ;;  %v444_v10 = vstv %s3895_s13  ;;  %v462_v43 = vadd.f32 %v442_v16, %v439_v15 }
 0x188   :  { %3896 = sst [smem:[#allocation58_spill]] %s2560_s24  ;;  %v445_v17 = vmul.f32 %v444_v10, %v2566_v4 }
 0x189   :  { %s3901_s15 = sld [smem:[#allocation7_spill]]  ;;  %v428_v11 = vstv %s3897_s28  ;;  %v466_v0 = vadd.f32 %v462_v43, %v461_v37 }
 0x18a   :  { %3898 = sst [smem:[#allocation59_spill]] %s2564_s26  ;;  %v429_v49 = vadd.f32 %v428_v11, %v426_v13 }
 0x18b   :  { %s3902_s7 = sld [smem:[#allocation8_spill]] }
 0x18c   :  { %3899 = sst [smem:[#allocation60_spill]] %s2571_s5  ;;  %v2630_v39 = vmax.f32 %v429_v49, 0.0 }
 0x18d   :  { %s2578_s24 = sld [smem:[#allocation2 + $0xae]]  ;;  %v447_v18 = vstv %s3900_s14 }
 0x18e   :  { %s3904_s17 = sld [smem:[#allocation13_spill]]  ;;  %v448_v50 = vmul.f32 %v447_v18, %v2573_v8 }
 0x18f   :  { %s3905_s26 = sld [smem:[#allocation14_spill]]  ;;  %v450_v19 = vstv %s3901_s15 }
 0x190   :  { %s3906_s30 = sld [smem:[#allocation15_spill]]  ;;  %v451_v51 = vmul.f32 %v450_v19, %v2575_v9  ;;  %v463_v45 = vadd.f32 %v448_v50, %v445_v17 }
 0x191   :  { %s3907_s3 = sld [smem:[#allocation16_spill]]  ;;  %v453_v20 = vstv %s3902_s7 }
 0x192   :  { %s2584_s4 = sld [smem:[#allocation2 + $0xaf]]  ;;  %v454_v52 = vmul.f32 %v453_v20, %v2580_v32 }
 0x193   :  { %3903 = sst [smem:[#allocation61_spill]] %s2578_s24 }
 0x194   :  { %s3909_s5 = sld [smem:[#allocation17_spill]]  ;;  %v475_v21 = vstv %s3904_s17  ;;  %v464_v55 = vadd.f32 %v454_v52, %v451_v51 }
 0x195   :  { %s3910_s1 = sld [smem:[#allocation18_spill]]  ;;  %v478_v22 = vstv %s3905_s26  ;;  %v476_v53 = vmul.f32 %v475_v21, %v2549_v58 }
 0x196   :  { %s3911_s13 = sld [smem:[#allocation20_spill]]  ;;  %v481_v25 = vstv %s3906_s30  ;;  %v479_v54 = vmul.f32 %v478_v22, %v2552_v59  ;;  %v467_v23 = vadd.f32 %v464_v55, %v463_v45 }
 0x197   :  { %s3912_s24 = sld [smem:[#allocation21_spill]]  ;;  %v484_v26 = vstv %s3907_s3  ;;  %v482_v57 = vmul.f32 %v481_v25, %v2556_v62 }
 0x198   :  { %3908 = sst [smem:[#allocation62_spill]] %s2584_s4  ;;  %v485_v36 = vmul.f32 %v484_v26, %v2558_v63  ;;  %v504_v27 = vadd.f32 %v479_v54, %v476_v53  ;;  %v468_v12 = vadd.f32 %v467_v23, %v466_v0 }
 0x199   :  { %s2589_s6 = sld [smem:[#allocation2 + $0xfc]] }
 0x19a   :  { %s2595_s28 = sld [smem:[#allocation2 + $0xb0]]  ;;  %v487_v44 = vstv %s3909_s5  ;;  %v505_v28 = vadd.f32 %v485_v36, %v482_v57 }
 0x19b   :  { %s2601_s4 = sld [smem:[#allocation2 + $0xb1]]  ;;  %v490_v46 = vstv %s3910_s1  ;;  %v488_v29 = vmul.f32 %v487_v44, %v2566_v4 }
 0x19c   :  { %v493_v47 = vstv %s3911_s13  ;;  %s2607_s20 = sld [smem:[#allocation2 + $0xb2]]  ;;  %v491_v30 = vmul.f32 %v490_v46, %v2573_v8  ;;  %v509_v3 = vadd.f32 %v505_v28, %v504_v27 }
 0x19d   :  { %v496_v48 = vstv %s3912_s24  ;;  %s3917_s15 = sld [smem:[#allocation9_spill]]  ;;  %v494_v34 = vmul.f32 %v493_v47, %v2575_v9 }
 0x19e   :  { %s2612_s14 = sld [smem:[#allocation2 + $0xb3]]  ;;  %v497_v35 = vmul.f32 %v496_v48, %v2580_v32  ;;  %v506_v56 = vadd.f32 %v491_v30, %v488_v29 }
 0x19f   :  { %3913 = sst [smem:[#allocation64_spill]] %s2589_s6 }
 0x1a0   :  { %3914 = sst [smem:[#allocation65_spill]] %s2595_s28  ;;  %v507_v60 = vadd.f32 %v497_v35, %v494_v34 }
 0x1a1   :  { %3915 = sst [smem:[#allocation66_spill]] %s2601_s4 }
 0x1a2   :  { %3916 = sst [smem:[#allocation67_spill]] %s2607_s20  ;;  %v510_v5 = vadd.f32 %v507_v60, %v506_v56 }
 0x1a3   :  { %s3919_s24 = sld [smem:[#allocation11_spill]]  ;;  %v456_v42 = vstv %s3917_s15 }
 0x1a4   :  { %3918 = sst [smem:[#allocation68_spill]] %s2612_s14  ;;  %v457_v61 = vmul.f32 %v456_v42, %v2626_v41  ;;  %v511_v15 = vadd.f32 %v510_v5, %v509_v3  ;;  %v610_v3 = vstv %s2440_s8  ;;  %v613_v5 = vstv %s2446_s23 }
 0x1a5   :  { %s2618_s1 = sld [smem:[#allocation2 + $0xb4]] }
 0x1a6   :  { %s3921_s26 = sld [smem:[#allocation22_spill]] }
 0x1a7   :  { %s3922_s5 = sld [smem:[#allocation23_spill]] }
 0x1a8   :  { %s2624_s7 = sld [smem:[#allocation2 + $0xb5]] }
 0x1a9   :  { %s2628_s17 = sld [smem:[#allocation2 + $0xb6]]  ;;  %v459_v40 = vstv %s3919_s24 }
 0x1aa   :  { %s2633_s30 = sld [smem:[#allocation2 + $0xb7]]  ;;  %v460_v1 = vmul.f32 %v459_v40, %v2630_v39 }
 0x1ab   :  { %3920 = sst [smem:[#allocation69_spill]] %s2618_s1 }
 0x1ac   :  { %s2636_s3 = sld [smem:[#allocation2 + $0xb8]]  ;;  %v499_v31 = vstv %s3921_s26  ;;  %v465_v11 = vadd.f32 %v460_v1, %v457_v61 }
 0x1ad   :  { %s3927_s13 = sld [smem:[#allocation25_spill]]  ;;  %v502_v33 = vstv %s3922_s5  ;;  %v500_v2 = vmul.f32 %v499_v31, %v2626_v41 }
 0x1ae   :  { %3923 = sst [smem:[#allocation70_spill]] %s2624_s7  ;;  %v503_v24 = vmul.f32 %v502_v33, %v2630_v39  ;;  %v469_v25 = vadd.f32 %v468_v12, %v465_v11 }
 0x1af   :  { %3924 = sst [smem:[#allocation71_spill]] %s2628_s17 }
 0x1b0   :  { %3925 = sst [smem:[#allocation73_spill]] %s2633_s30  ;;  %v508_v13 = vadd.f32 %v503_v24, %v500_v2  ;;  %v604_v2 = vstv %s2428_s21  ;;  %v607_v24 = vstv %s2434_s25 }
 0x1b1   :  { %s3928_s6 = sld [smem:[#allocation26_spill]] }
 0x1b2   :  { %3926 = sst [smem:[#allocation74_spill]] %s2636_s3  ;;  %v512_v49 = vadd.f32 %v511_v15, %v508_v13  ;;  %v605_v15 = vmul.f32 %v604_v2, %v2549_v58 }
 0x1b3   :  { %s3929_s17 = sld [smem:[#allocation27_spill]]  ;;  %v518_v6 = vstv %s3927_s13 }
 0x1b4   :  { %s2640_s7 = sld [smem:[#allocation2 + $0xb9]]  ;;  %v519_v14 = vmul.f32 %v518_v6, %v2549_v58 }
 0x1b5   :  { %s3931_s15 = sld [smem:[#allocation29_spill]] }
 0x1b6   :  { %s2642_s1 = sld [smem:[#allocation2 + $0xfd]] }
 0x1b7   :  { %s2645_s24 = sld [smem:[#allocation2 + $0xba]]  ;;  %v521_v7 = vstv %s3928_s6 }
 0x1b8   :  { %s2650_s26 = sld [smem:[#allocation2 + $0xbb]]  ;;  %v522_v16 = vmul.f32 %v521_v7, %v2552_v59 }
 0x1b9   :  { %s2653_s5 = sld [smem:[#allocation2 + $0xbc]]  ;;  %v524_v10 = vstv %s3929_s17 }
 0x1ba   :  { %3930 = sst [smem:[#allocation75_spill]] %s2640_s7  ;;  %v525_v17 = vmul.f32 %v524_v10, %v2556_v62  ;;  %v547_v51 = vadd.f32 %v522_v16, %v519_v14  ;;  %v608_v16 = vmul.f32 %v607_v24, %v2552_v59 }
 0x1bb   :  { %s3937_s7 = sld [smem:[#allocation31_spill]]  ;;  %v527_v38 = vstv %s3931_s15 }
 0x1bc   :  { %3932 = sst [smem:[#allocation76_spill]] %s2642_s1  ;;  %v528_v18 = vmul.f32 %v527_v38, %v2558_v63 }
 0x1bd   :  { %3933 = sst [smem:[#allocation46_spill]] %s2645_s24 }
 0x1be   :  { %3934 = sst [smem:[#allocation55_spill]] %s2650_s26  ;;  %v548_v52 = vadd.f32 %v528_v18, %v525_v17  ;;  %v611_v17 = vmul.f32 %v610_v3, %v2556_v62  ;;  %v614_v18 = vmul.f32 %v613_v5, %v2558_v63 }
 0x1bf   :  { %3935 = sst [smem:[#allocation63_spill]] %s2653_s5 }
 0x1c0   :  { %s3936_s1 = sld [smem:[#allocation30_spill]]  ;;  %v552_v23 = vadd.f32 %v548_v52, %v547_v51 }
 0x1c1   :  { %s3938_s3 = sld [smem:[#allocation32_spill]]  ;;  %v533_v20 = vstv %s3937_s7 }
 0x1c2   :  { %s3939_s24 = sld [smem:[#allocation33_spill]]  ;;  %v534_v46 = vmul.f32 %v533_v20, %v2573_v8  ;;  %v619_v20 = vstv %s2458_s19 }
 0x1c3   :  { %s2658_s30 = sld [smem:[#allocation2 + $0xbd]]  ;;  %v620_v52 = vmul.f32 %v619_v20, %v2573_v8 }
 0x1c4   :  { %s2660_s14 = sld [smem:[#allocation2 + $0xbe]] }
 0x1c5   :  { %s3942_s20 = sld [smem:[#allocation12_spill]] }
 0x1c6   :  { %s2663_s13 = sld [smem:[#allocation2 + $0xbf]]  ;;  %v530_v19 = vstv %s3936_s1 }
 0x1c7   :  { %s2668_s6 = sld [smem:[#allocation2 + $0xc0]]  ;;  %v536_v21 = vstv %s3938_s3  ;;  %v531_v44 = vmul.f32 %v530_v19, %v2566_v4  ;;  %v616_v19 = vstv %s2452_s27 }
 0x1c8   :  { %s3945_s17 = sld [smem:[#allocation24_spill]]  ;;  %v539_v22 = vstv %s3939_s24  ;;  %v537_v47 = vmul.f32 %v536_v21, %v2575_v9  ;;  %v622_v21 = vstv %s2464_s29  ;;  %v617_v51 = vmul.f32 %v616_v19, %v2566_v4 }
 0x1c9   :  { %3940 = sst [smem:[#allocation72_spill]] %s2658_s30  ;;  %v540_v48 = vmul.f32 %v539_v22, %v2580_v32  ;;  %v549_v43 = vadd.f32 %v534_v46, %v531_v44  ;;  %v653_v44 = vstv %s2492_s2  ;;  %v656_v46 = vstv %s2498_s9 }
 0x1ca   :  { %3941 = sst [smem:[#allocation5_spill]] %s2660_s14  ;;  %v635_v2 = vadd.f32 %v620_v52, %v617_v51 }
 0x1cb   :  { %s3946_s15 = sld [smem:[#allocation38_spill]]  ;;  %v471_v26 = vstv %s3942_s20  ;;  %v550_v45 = vadd.f32 %v540_v48, %v537_v47  ;;  %v659_v47 = vstv %s2500_s10  ;;  %v662_v48 = vstv %s2506_s11 }
 0x1cc   :  { %3943 = sst [smem:[#allocation78_spill]] %s2663_s13  ;;  %v2718_v61 = vadd.f32 %v471_v26, %v469_v25  ;;  %v647_v25 = vstv %s2482_s0  ;;  %v650_v26 = vstv %s2486_s16 }
 0x1cd   :  { %3944 = sst [smem:[#allocation79_spill]] %s2668_s6  ;;  %v553_v7 = vadd.f32 %v550_v45, %v549_v43 }
 0x1ce   :  { %s2674_s14 = sld [smem:[#allocation2 + $0xc1]]  ;;  %v514_v50 = vstv %s3945_s17 }
 0x1cf   :  { %s3948_s30 = sld [smem:[#allocation39_spill]]  ;;  %v2720_v0 = vadd.f32 %v514_v50, %v512_v49  ;;  %v665_v49 = vstv %s2512_s18  ;;  %v668_v50 = vstv %s2514_s12 }
 0x1d0   :  { %s2676_s5 = sld [smem:[#allocation2 + $0xc2]] }
 0x1d1   :  { %s3950_s13 = sld [smem:[#allocation40_spill]]  ;;  %v561_v53 = vstv %s3946_s15 }
 0x1d2   :  { %s3951_s26 = sld [smem:[#allocation41_spill]]  ;;  %v562_v40 = vmul.f32 %v561_v53, %v2549_v58  ;;  %v623_v53 = vmul.f32 %v622_v21, %v2575_v9 }
 0x1d3   :  { %s2679_s4 = sld [smem:[#allocation2 + $0xc3]] }
 0x1d4   :  { %3947 = sst [smem:[#allocation80_spill]] %s2674_s14 }
 0x1d5   :  { %s3953_s28 = sld [smem:[#allocation10_spill]]  ;;  %v564_v54 = vstv %s3948_s30 }
 0x1d6   :  { %3949 = sst [smem:[#allocation77_spill]] %s2676_s5  ;;  %v565_v55 = vmul.f32 %v564_v54, %v2552_v59 }
 0x1d7   :  { %s3954_s1 = sld [smem:[#allocation19_spill]]  ;;  %v567_v57 = vstv %s3950_s13 }
 0x1d8   :  { %s3955_s7 = sld [smem:[#allocation42_spill]]  ;;  %v570_v36 = vstv %s3951_s26  ;;  %v568_v27 = vmul.f32 %v567_v57, %v2556_v62  ;;  %v590_v10 = vadd.f32 %v565_v55, %v562_v40  ;;  %v648_v57 = vmul.f32 %v647_v25, %v2549_v58 }
 0x1d9   :  { %3952 = sst [smem:[#allocation6_spill]] %s2679_s4  ;;  %v571_v28 = vmul.f32 %v570_v36, %v2558_v63  ;;  %v651_v36 = vmul.f32 %v650_v26, %v2552_v59 }
 0x1da   :  { %s3956_s3 = sld [smem:[#allocation43_spill]] }
 0x1db   :  { %s2685_s24 = sld [smem:[#allocation2 + $0xfe]]  ;;  %v573_v29 = vstv %s3953_s28  ;;  %v591_v38 = vadd.f32 %v571_v28, %v568_v27  ;;  %v554_v28 = vadd.f32 %v553_v7, %v552_v23  ;;  %v676_v3 = vadd.f32 %v651_v36, %v648_v57 }
 0x1dc   :  { %s3958_s5 = sld [smem:[#allocation34_spill]]  ;;  %v574_v31 = vmul.f32 %v573_v29, %v2566_v4  ;;  %v654_v29 = vmul.f32 %v653_v44, %v2556_v62 }
 0x1dd   :  { %s3959_s14 = sld [smem:[#allocation35_spill]]  ;;  %v576_v30 = vstv %s3954_s1  ;;  %v595_v40 = vadd.f32 %v591_v38, %v590_v10 }
 0x1de   :  { %s2688_s20 = sld [smem:[#allocation2 + $0xc4]]  ;;  %v579_v34 = vstv %s3955_s7  ;;  %v577_v33 = vmul.f32 %v576_v30, %v2573_v8  ;;  %v657_v30 = vmul.f32 %v656_v46, %v2558_v63 }
 0x1df   :  { %s2694_s4 = sld [smem:[#allocation2 + $0xc5]]  ;;  %v580_v56 = vmul.f32 %v579_v34, %v2575_v9  ;;  %v660_v34 = vmul.f32 %v659_v47, %v2566_v4 }
 0x1e0   :  { %v582_v35 = vstv %s3956_s3  ;;  %s2700_s6 = sld [smem:[#allocation2 + $0xc6]]  ;;  %v592_v13 = vadd.f32 %v577_v33, %v574_v31  ;;  %v633_v31 = vadd.f32 %v608_v16, %v605_v15  ;;  %v634_v33 = vadd.f32 %v614_v18, %v611_v17 }
 0x1e1   :  { %3957 = sst [smem:[#allocation7_spill]] %s2685_s24  ;;  %v583_v60 = vmul.f32 %v582_v35, %v2580_v32  ;;  %v663_v35 = vmul.f32 %v662_v48, %v2573_v8  ;;  %v677_v5 = vadd.f32 %v657_v30, %v654_v29 }
 0x1e2   :  { %v542_v37 = vstv %s3958_s5  ;;  %s2704_s17 = sld [smem:[#allocation2 + $0xc7]]  ;;  %v638_v17 = vadd.f32 %v634_v33, %v633_v31 }
 0x1e3   :  { %v545_v42 = vstv %s3959_s14  ;;  %s2710_s28 = sld [smem:[#allocation2 + $0xc8]]  ;;  %v543_v1 = vmul.f32 %v542_v37, %v2626_v41  ;;  %v593_v14 = vadd.f32 %v583_v60, %v580_v56  ;;  %v666_v37 = vmul.f32 %v665_v49, %v2575_v9 }
 0x1e4   :  { %s2716_s14 = sld [smem:[#allocation2 + $0xc9]]  ;;  %v546_v6 = vmul.f32 %v545_v42, %v2630_v39  ;;  %v669_v42 = vmul.f32 %v668_v50, %v2580_v32  ;;  %v628_v56 = vstv %s2468_s22  ;;  %v681_v21 = vadd.f32 %v677_v5, %v676_v3 }
 0x1e5   :  { %s3960_s30 = sld [smem:[#allocation44_spill]]  ;;  %v596_v55 = vadd.f32 %v593_v14, %v592_v13  ;;  %v629_v15 = vmul.f32 %v628_v56, %v2626_v41 }
 0x1e6   :  { %s3961_s26 = sld [smem:[#allocation45_spill]]  ;;  %v551_v27 = vadd.f32 %v546_v6, %v543_v1  ;;  %v678_v1 = vadd.f32 %v663_v35, %v660_v34  ;;  %v679_v23 = vadd.f32 %v669_v42, %v666_v37 }
 0x1e7   :  { %s2723_s5 = sld [smem:[#allocation2 + $0xca]]  ;;  %v597_v7 = vadd.f32 %v596_v55, %v595_v40 }
 0x1e8   :  { %s2729_s13 = sld [smem:[#allocation2 + $0xcb]]  ;;  %v2816_v47 = vadd.f32 %v554_v28, %v551_v27 }
 0x1e9   :  { %s3962_s15 = sld [smem:[#allocation37_spill]] }
 0x1ea   :  { %s2732_s1 = sld [smem:[#allocation2 + $0xcc]] }
 0x1eb   :  { %v585_v11 = vstv %s3960_s30  ;;  %s2736_s25 = sld [smem:[#allocation2 + $0xcd]] }
 0x1ec   :  { %v588_v12 = vstv %s3961_s26  ;;  %s2742_s21 = sld [smem:[#allocation2 + $0xff]]  ;;  %v586_v43 = vmul.f32 %v585_v11, %v2626_v41 }
 0x1ed   :  { %s2748_s8 = sld [smem:[#allocation2 + $0xce]]  ;;  %v589_v45 = vmul.f32 %v588_v12, %v2630_v39 }
 0x1ee   :  { %s2754_s23 = sld [smem:[#allocation2 + $0xcf]] }
 0x1ef   :  { %v625_v22 = vstv %s3962_s15  ;;  %s2760_s7 = sld [smem:[#allocation2 + $0xd0]]  ;;  %v594_v6 = vadd.f32 %v589_v45, %v586_v43 }
 0x1f0   :  { %v626_v54 = vmul.f32 %v625_v22, %v2580_v32  ;;  %s2766_s27 = sld [smem:[#allocation2 + $0xd1]]  ;;  %v682_v22 = vadd.f32 %v679_v23, %v678_v1 }
 0x1f1   :  { %s2772_s19 = sld [smem:[#allocation2 + $0xd2]]  ;;  %v2823_v51 = vadd.f32 %v597_v7, %v594_v6 }
 0x1f2   :  { %3963 = sst [smem:[#allocation8_spill]] %s2742_s21  ;;  %v636_v24 = vadd.f32 %v626_v54, %v623_v53  ;;  %v2836_v30 = vadd.f32 %v682_v22, %v681_v21 }
 0x1f3   :  { %s3964_s29 = sld [smem:[#allocation47_spill]] }
 0x1f4   :  { %s2778_s0 = sld [smem:[#allocation2 + $0xd3]]  ;;  %v639_v18 = vadd.f32 %v636_v24, %v635_v2 }
 0x1f5   :  { %s2782_s16 = sld [smem:[#allocation2 + $0xd4]] }
 0x1f6   :  { %s3966_s2 = sld [smem:[#allocation49_spill]]  ;;  %v2832_v36 = vadd.f32 %v639_v18, %v638_v17 }
 0x1f7   :  { %s3967_s9 = sld [smem:[#allocation50_spill]] }
 0x1f8   :  { %s2784_s10 = sld [smem:[#allocation2 + $0xd5]] }
 0x1f9   :  { %s3969_s11 = sld [smem:[#allocation52_spill]]  ;;  %v631_v60 = vstv %s3964_s29 }
 0x1fa   :  { %s3970_s18 = sld [smem:[#allocation53_spill]]  ;;  %v632_v16 = vmul.f32 %v631_v60, %v2630_v39 }
 0x1fb   :  { %3965 = sst [smem:[#allocation13_spill]] %s2782_s16 }
 0x1fc   :  { %s3971_s12 = sld [smem:[#allocation54_spill]]  ;;  %v671_v10 = vstv %s3966_s2  ;;  %v2830_v57 = vadd.f32 %v632_v16, %v629_v15 }
 0x1fd   :  { %s3972_s3 = sld [smem:[#allocation56_spill]]  ;;  %v674_v38 = vstv %s3967_s9  ;;  %v672_v19 = vmul.f32 %v671_v10, %v2626_v41 }
 0x1fe   :  { %3968 = sst [smem:[#allocation14_spill]] %s2784_s10  ;;  %v675_v20 = vmul.f32 %v674_v38, %v2630_v39 }
 0x1ff   :  { %s2788_s30 = sld [smem:[#allocation2 + $0xd6]]  ;;  %v690_v11 = vstv %s3969_s11 }
 0x200   :  { %s2790_s26 = sld [smem:[#allocation2 + $0xd7]]  ;;  %v693_v12 = vstv %s3970_s18  ;;  %v691_v25 = vmul.f32 %v690_v11, %v2549_v58  ;;  %v2834_v29 = vadd.f32 %v675_v20, %v672_v19 }
 0x201   :  { %s2794_s15 = sld [smem:[#allocation2 + $0x100]]  ;;  %v694_v26 = vmul.f32 %v693_v12, %v2552_v59 }
 0x202   :  { %v696_v13 = vstv %s3971_s12  ;;  %s2800_s22 = sld [smem:[#allocation2 + $0xd8]] }
 0x203   :  { %v699_v14 = vstv %s3972_s3  ;;  %s3977_s29 = sld [smem:[#allocation36_spill]]  ;;  %v697_v44 = vmul.f32 %v696_v13, %v2556_v62  ;;  %v2842_v37 = vadd.f32 %v694_v26, %v691_v25 }
 0x204   :  { %s3978_s21 = sld [smem:[#allocation57_spill]]  ;;  %v700_v46 = vmul.f32 %v699_v14, %v2558_v63 }
 0x205   :  { %3973 = sst [smem:[#allocation15_spill]] %s2788_s30 }
 0x206   :  { %3974 = sst [smem:[#allocation16_spill]] %s2790_s26  ;;  %v2844_v42 = vadd.f32 %v700_v46, %v697_v44 }
 0x207   :  { %3975 = sst [smem:[#allocation17_spill]] %s2794_s15 }
 0x208   :  { %3976 = sst [smem:[#allocation18_spill]] %s2800_s22 }
 0x209   :  { %s3979_s26 = sld [smem:[#allocation58_spill]]  ;;  %v557_v48 = vstv %s3977_s29 }
 0x20a   :  { %s2804_s30 = sld [smem:[#allocation2 + $0xd9]]  ;;  %v702_v49 = vstv %s3978_s21 }
 0x20b   :  { %s3981_s2 = sld [smem:[#allocation28_spill]]  ;;  %v703_v34 = vmul.f32 %v702_v49, %v2566_v4 }
 0x20c   :  { %s3982_s9 = sld [smem:[#allocation48_spill]] }
 0x20d   :  { %s3983_s11 = sld [smem:[#allocation59_spill]] }
 0x20e   :  { %s2808_s18 = sld [smem:[#allocation2 + $0xda]] }
 0x20f   :  { %s2814_s12 = sld [smem:[#allocation2 + $0xdb]]  ;;  %v705_v50 = vstv %s3979_s26 }
 0x210   :  { %3980 = sst [smem:[#allocation20_spill]] %s2804_s30  ;;  %v706_v35 = vmul.f32 %v705_v50, %v2573_v8 }
 0x211   :  { %s2821_s3 = sld [smem:[#allocation2 + $0xdc]]  ;;  %v600_v52 = vstv %s3981_s2 }
 0x212   :  { %s3987_s15 = sld [smem:[#allocation60_spill]]  ;;  %v643_v53 = vstv %s3982_s9  ;;  %v721_v23 = vadd.f32 %v706_v35, %v703_v34 }
 0x213   :  { %s3989_s30 = sld [smem:[#allocation62_spill]]  ;;  %v708_v54 = vstv %s3983_s11 }
 0x214   :  { %3984 = sst [smem:[#allocation21_spill]] %s2808_s18  ;;  %v709_v43 = vmul.f32 %v708_v54, %v2575_v9 }
 0x215   :  { %3985 = sst [smem:[#allocation9_spill]] %s2814_s12 }
 0x216   :  { %s3988_s18 = sld [smem:[#allocation61_spill]] }
 0x217   :  { %3986 = sst [smem:[#allocation11_spill]] %s2821_s3 }
 0x218   :  { %s2828_s22 = sld [smem:[#allocation2 + $0xdd]]  ;;  %v711_v45 = vstv %s3987_s15 }
 0x219   :  { %s3991_s10 = sld [smem:[#allocation65_spill]]  ;;  %v717_v55 = vstv %s3989_s30  ;;  %v712_v3 = vmul.f32 %v711_v45, %v2580_v32 }
 0x21a   :  { %s3992_s12 = sld [smem:[#allocation66_spill]]  ;;  %v718_v1 = vmul.f32 %v717_v55, %v2630_v39  ;;  %v2912_v55 = vadd.f32 %v2832_v36, %v2830_v57 }
 0x21b   :  { %s3993_s21 = sld [smem:[#allocation67_spill]]  ;;  %v722_v25 = vadd.f32 %v712_v3, %v709_v43 }
 0x21c   :  { %s3994_s26 = sld [smem:[#allocation68_spill]]  ;;  %v714_v40 = vstv %s3988_s18 }
 0x21d   :  { %s2838_s29 = sld [smem:[#allocation2 + $0xde]]  ;;  %v715_v5 = vmul.f32 %v714_v40, %v2626_v41  ;;  %v725_v36 = vadd.f32 %v722_v25, %v721_v23 }
 0x21e   :  { %3990 = sst [smem:[#allocation22_spill]] %s2828_s22 }
 0x21f   :  { %s3996_s9 = sld [smem:[#allocation69_spill]]  ;;  %v733_v27 = vstv %s3991_s10  ;;  %v2927_v57 = vadd.f32 %v718_v1, %v715_v5 }
 0x220   :  { %s3997_s11 = sld [smem:[#allocation70_spill]]  ;;  %v736_v28 = vstv %s3992_s12  ;;  %v734_v6 = vmul.f32 %v733_v27, %v2549_v58 }
 0x221   :  { %s3998_s2 = sld [smem:[#allocation71_spill]]  ;;  %v739_v31 = vstv %s3993_s21  ;;  %v737_v7 = vmul.f32 %v736_v28, %v2552_v59 }
 0x222   :  { %s3999_s22 = sld [smem:[#allocation73_spill]]  ;;  %v742_v33 = vstv %s3994_s26  ;;  %v740_v10 = vmul.f32 %v739_v31, %v2556_v62 }
 0x223   :  { %3995 = sst [smem:[#allocation23_spill]] %s2838_s29  ;;  %v743_v38 = vmul.f32 %v742_v33, %v2558_v63  ;;  %v762_v44 = vadd.f32 %v737_v7, %v734_v6  ;;  %v2919_v33 = vadd.f32 %v2836_v30, %v2834_v29  ;;  %v819_v7 = vstv %s2688_s20 }
 0x224   :  { %s2846_s3 = sld [smem:[#allocation2 + $0xdf]] }
 0x225   :  { %s2852_s29 = sld [smem:[#allocation2 + $0xe0]]  ;;  %v745_v56 = vstv %s3996_s9  ;;  %v763_v46 = vadd.f32 %v743_v38, %v740_v10  ;;  %v822_v10 = vstv %s2694_s4  ;;  %v825_v38 = vstv %s2700_s6 }
 0x226   :  { %s2858_s16 = sld [smem:[#allocation2 + $0xe1]]  ;;  %v748_v60 = vstv %s3997_s11  ;;  %v746_v11 = vmul.f32 %v745_v56, %v2566_v4  ;;  %v724_v56 = vadd.f32 %v2844_v42, %v2842_v37 }
 0x227   :  { %v751_v2 = vstv %s3998_s2  ;;  %s2864_s24 = sld [smem:[#allocation2 + $0x101]]  ;;  %v749_v12 = vmul.f32 %v748_v60, %v2573_v8  ;;  %v767_v29 = vadd.f32 %v763_v46, %v762_v44 }
 0x228   :  { %v754_v24 = vstv %s3999_s22  ;;  %s4005_s15 = sld [smem:[#allocation55_spill]]  ;;  %v752_v13 = vmul.f32 %v751_v2, %v2575_v9 }
 0x229   :  { %s4006_s30 = sld [smem:[#allocation63_spill]]  ;;  %v755_v14 = vmul.f32 %v754_v24, %v2580_v32  ;;  %v764_v28 = vadd.f32 %v749_v12, %v746_v11  ;;  %v828_v11 = vstv %s2704_s17  ;;  %v831_v12 = vstv %s2710_s28 }
 0x22a   :  { %4000 = sst [smem:[#allocation25_spill]] %s2846_s3  ;;  %v829_v25 = vmul.f32 %v828_v11, %v2558_v63 }
 0x22b   :  { %4001 = sst [smem:[#allocation26_spill]] %s2852_s29  ;;  %v765_v31 = vadd.f32 %v755_v14, %v752_v13  ;;  %v834_v13 = vstv %s2716_s14  ;;  %v837_v14 = vstv %s2723_s5 }
 0x22c   :  { %4002 = sst [smem:[#allocation27_spill]] %s2858_s16  ;;  %v835_v44 = vmul.f32 %v834_v13, %v2573_v8  ;;  %v838_v46 = vmul.f32 %v837_v14, %v2575_v9 }
 0x22d   :  { %4003 = sst [smem:[#allocation29_spill]] %s2864_s24  ;;  %v768_v1 = vadd.f32 %v765_v31, %v764_v28  ;;  %v871_v28 = vstv %s2766_s27 }
 0x22e   :  { %s4004_s3 = sld [smem:[#allocation46_spill]]  ;;  %v779_v16 = vstv %s4005_s15 }
 0x22f   :  { %s4007_s10 = sld [smem:[#allocation72_spill]]  ;;  %v782_v17 = vstv %s4006_s30  ;;  %v780_v50 = vmul.f32 %v779_v16, %v2552_v59 }
 0x230   :  { %s2869_s18 = sld [smem:[#allocation2 + $0xe2]]  ;;  %v783_v54 = vmul.f32 %v782_v17, %v2556_v62 }
 0x231   :  { %s4008_s9 = sld [smem:[#allocation5_spill]] }
 0x232   :  { %s4009_s22 = sld [smem:[#allocation78_spill]] }
 0x233   :  { %s4010_s2 = sld [smem:[#allocation79_spill]] }
 0x234   :  { %s4011_s12 = sld [smem:[#allocation80_spill]]  ;;  %v776_v15 = vstv %s4004_s3 }
 0x235   :  { %s2875_s21 = sld [smem:[#allocation2 + $0xe3]]  ;;  %v785_v18 = vstv %s4007_s10  ;;  %v777_v49 = vmul.f32 %v776_v15, %v2549_v58  ;;  %v840_v15 = vstv %s2729_s13 }
 0x236   :  { %s4013_s26 = sld [smem:[#allocation74_spill]]  ;;  %v786_v34 = vmul.f32 %v785_v18, %v2558_v63 }
 0x237   :  { %s2881_s11 = sld [smem:[#allocation2 + $0xe4]]  ;;  %v788_v19 = vstv %s4008_s9  ;;  %v805_v30 = vadd.f32 %v780_v50, %v777_v49  ;;  %v841_v49 = vmul.f32 %v840_v15, %v2580_v32  ;;  %v726_v50 = vadd.f32 %v725_v36, %v724_v56 }
 0x238   :  { %s2887_s24 = sld [smem:[#allocation2 + $0xe5]]  ;;  %v791_v20 = vstv %s4009_s22  ;;  %v789_v35 = vmul.f32 %v788_v19, %v2566_v4  ;;  %v806_v37 = vadd.f32 %v786_v34, %v783_v54  ;;  %v862_v34 = vstv %s2748_s8 }
 0x239   :  { %v794_v21 = vstv %s4010_s2  ;;  %s2893_s16 = sld [smem:[#allocation2 + $0xe6]]  ;;  %v792_v43 = vmul.f32 %v791_v20, %v2573_v8  ;;  %v820_v20 = vmul.f32 %v819_v7, %v2549_v58  ;;  %v851_v36 = vadd.f32 %v841_v49, %v838_v46 }
 0x23a   :  { %v797_v22 = vstv %s4011_s12  ;;  %s4014_s29 = sld [smem:[#allocation51_spill]]  ;;  %v795_v45 = vmul.f32 %v794_v21, %v2575_v9  ;;  %v810_v18 = vadd.f32 %v806_v37, %v805_v30  ;;  %v823_v21 = vmul.f32 %v822_v10, %v2552_v59 }
 0x23b   :  { %4012 = sst [smem:[#allocation30_spill]] %s2875_s21  ;;  %v798_v40 = vmul.f32 %v797_v22, %v2580_v32  ;;  %v807_v42 = vadd.f32 %v792_v43, %v789_v35  ;;  %v826_v22 = vmul.f32 %v825_v38, %v2556_v62  ;;  %v865_v35 = vstv %s2754_s23 }
 0x23c   :  { %v757_v26 = vstv %s4013_s26  ;;  %s2896_s21 = sld [smem:[#allocation2 + $0xe7]]  ;;  %v769_v43 = vadd.f32 %v768_v1, %v767_v29  ;;  %v848_v30 = vadd.f32 %v823_v21, %v820_v20  ;;  %v866_v29 = vmul.f32 %v865_v35, %v2552_v59 }
 0x23d   :  { %s4015_s3 = sld [smem:[#allocation64_spill]]  ;;  %v758_v24 = vmul.f32 %v757_v26, %v2626_v41  ;;  %v808_v3 = vadd.f32 %v798_v40, %v795_v45  ;;  %v832_v26 = vmul.f32 %v831_v12, %v2566_v4  ;;  %v868_v40 = vstv %s2760_s7 }
 0x23e   :  { %s4016_s15 = sld [smem:[#allocation75_spill]]  ;;  %v849_v37 = vadd.f32 %v829_v25, %v826_v22  ;;  %v874_v1 = vstv %s2772_s19  ;;  %v877_v10 = vstv %s2778_s0 }
 0x23f   :  { %s2902_s30 = sld [smem:[#allocation2 + $0xe8]]  ;;  %v811_v19 = vadd.f32 %v808_v3, %v807_v42  ;;  %v850_v56 = vadd.f32 %v835_v44, %v832_v26  ;;  %v846_v42 = vstv %s2736_s25  ;;  %v869_v3 = vmul.f32 %v868_v40, %v2556_v62 }
 0x240   :  { %s2908_s10 = sld [smem:[#allocation2 + $0xe9]]  ;;  %v686_v27 = vstv %s4014_s29  ;;  %v853_v13 = vadd.f32 %v849_v37, %v848_v30  ;;  %v875_v15 = vmul.f32 %v874_v1, %v2566_v4  ;;  %v954_v1 = vstv %s2881_s11 }
 0x241   :  { %s2915_s9 = sld [smem:[#allocation2 + $0xea]]  ;;  %v812_v31 = vadd.f32 %v811_v19, %v810_v18  ;;  %v854_v14 = vadd.f32 %v851_v36, %v850_v56 }
 0x242   :  { %s4017_s22 = sld [smem:[#allocation77_spill]] }
 0x243   :  { %v729_v60 = vstv %s4015_s3  ;;  %s4018_s2 = sld [smem:[#allocation6_spill]]  ;;  %v3043_v36 = vadd.f32 %v854_v14, %v853_v13 }
 0x244   :  { %v760_v2 = vstv %s4016_s15  ;;  %s2925_s12 = sld [smem:[#allocation2 + $0xeb]] }
 0x245   :  { %s2930_s26 = sld [smem:[#allocation2 + $0x102]]  ;;  %v761_v5 = vmul.f32 %v760_v2, %v2630_v39  ;;  %v843_v2 = vstv %s2732_s1 }
 0x246   :  { %s2932_s15 = sld [smem:[#allocation2 + $0xec]]  ;;  %v844_v12 = vmul.f32 %v843_v2, %v2626_v41 }
 0x247   :  { %s2937_s3 = sld [smem:[#allocation2 + $0xed]]  ;;  %v766_v54 = vadd.f32 %v761_v5, %v758_v24  ;;  %v863_v24 = vmul.f32 %v862_v34, %v2549_v58  ;;  %v872_v5 = vmul.f32 %v871_v28, %v2558_v63 }
 0x248   :  { %v800_v23 = vstv %s4017_s22  ;;  %s2949_s29 = sld [smem:[#allocation2 + $0xef]] }
 0x249   :  { %v803_v6 = vstv %s4018_s2  ;;  %v801_v16 = vmul.f32 %v800_v23, %v2626_v41  ;;  %s2953_s20 = sld [smem:[#allocation2 + $0xf0]]  ;;  %v2989_v23 = vadd.f32 %v726_v50, %v2927_v57  ;;  %v847_v57 = vmul.f32 %v846_v42, %v2630_v39 }
 0x24a   :  { %4019 = sst [smem:[#allocation31_spill]] %s2925_s12  ;;  %v804_v17 = vmul.f32 %v803_v6, %v2630_v39  ;;  %v2991_v6 = vadd.f32 %v769_v43, %v766_v54  ;;  %v892_v20 = vadd.f32 %v872_v5, %v869_v3  ;;  %v948_v3 = vstv %s2869_s18 }
 0x24b   :  { %4020 = sst [smem:[#allocation32_spill]] %s2930_s26  ;;  %v3024_v54 = vadd.f32 %v847_v57, %v844_v12 }
 0x24c   :  { %s2943_s26 = sld [smem:[#allocation2 + $0xee]]  ;;  %v809_v45 = vadd.f32 %v804_v17, %v801_v16  ;;  %v891_v16 = vadd.f32 %v866_v29, %v863_v24  ;;  %v878_v17 = vmul.f32 %v877_v10, %v2573_v8  ;;  %v957_v10 = vstv %s2887_s24 }
 0x24d   :  { %s2959_s4 = sld [smem:[#allocation2 + $0xf1]] }
 0x24e   :  { %s2965_s6 = sld [smem:[#allocation2 + $0xf2]]  ;;  %v2997_v38 = vadd.f32 %v812_v31, %v809_v45  ;;  %v893_v29 = vadd.f32 %v878_v17, %v875_v15  ;;  %v3048_v42 = vadd.f32 %v892_v20, %v891_v16 }
 0x24f   :  { %s2969_s17 = sld [smem:[#allocation2 + $0xf3]] }
 0x250   :  { %s2973_s28 = sld [smem:[#allocation2 + $0xf4]] }
 0x251   :  { %s4022_s14 = sld [smem:[#allocation76_spill]] }
 0x252   :  { %s2976_s5 = sld [smem:[#allocation2 + $0xf5]] }
 0x253   :  { %s4024_s13 = sld [smem:[#allocation7_spill]] }
 0x254   :  { %s2980_s8 = sld [smem:[#allocation2 + $0x103]] }
 0x255   :  { %s2986_s1 = sld [smem:[#allocation2 + $0x104]] }
 0x256   :  { %4021 = sst [smem:[#allocation33_spill]] %s2973_s28 }
 0x257   :  { %s4027_s23 = sld [smem:[#allocation13_spill]]  ;;  %v772_v7 = vstv %s4022_s14 }
 0x258   :  { %4023 = sst [smem:[#allocation12_spill]] %s2976_s5 }
 0x259   :  { %s4028_s7 = sld [smem:[#allocation14_spill]]  ;;  %v815_v11 = vstv %s4024_s13 }
 0x25a   :  { %4025 = sst [smem:[#allocation24_spill]] %s2980_s8 }
 0x25b   :  { %4026 = sst [smem:[#allocation38_spill]] %s2986_s1 }
 0x25c   :  { %s2995_s27 = sld [smem:[#allocation2 + $0x105]] }
 0x25d   :  { %s4030_s22 = sld [smem:[#allocation18_spill]]  ;;  %v880_v18 = vstv %s4027_s23 }
 0x25e   :  { %s4031_s25 = sld [smem:[#allocation20_spill]]  ;;  %v881_v34 = vmul.f32 %v880_v18, %v2575_v9 }
 0x25f   :  { %s4032_s19 = sld [smem:[#allocation21_spill]]  ;;  %v883_v19 = vstv %s4028_s7 }
 0x260   :  { %s4033_s2 = sld [smem:[#allocation9_spill]]  ;;  %v884_v35 = vmul.f32 %v883_v19, %v2580_v32  ;;  %v949_v19 = vmul.f32 %v948_v3, %v2549_v58 }
 0x261   :  { %s3001_s8 = sld [smem:[#allocation2 + $0x106]] }
 0x262   :  { %4029 = sst [smem:[#allocation39_spill]] %s2995_s27  ;;  %v894_v13 = vadd.f32 %v884_v35, %v881_v34  ;;  %v997_v34 = vstv %s2943_s26  ;;  %v1000_v35 = vstv %s2949_s29 }
 0x263   :  { %s4035_s1 = sld [smem:[#allocation11_spill]]  ;;  %v905_v21 = vstv %s4030_s22 }
 0x264   :  { %s4036_s5 = sld [smem:[#allocation22_spill]]  ;;  %v908_v22 = vstv %s4031_s25  ;;  %v906_v45 = vmul.f32 %v905_v21, %v2549_v58  ;;  %v955_v21 = vmul.f32 %v954_v1, %v2556_v62  ;;  %v1001_v1 = vmul.f32 %v1000_v35, %v2558_v63 }
 0x265   :  { %s4037_s0 = sld [smem:[#allocation23_spill]]  ;;  %v911_v25 = vstv %s4032_s19  ;;  %v909_v40 = vmul.f32 %v908_v22, %v2552_v59  ;;  %v958_v22 = vmul.f32 %v957_v10, %v2558_v63 }
 0x266   :  { %s4038_s27 = sld [smem:[#allocation25_spill]]  ;;  %v914_v26 = vstv %s4033_s2  ;;  %v912_v28 = vmul.f32 %v911_v25, %v2556_v62  ;;  %v960_v25 = vstv %s2893_s16 }
 0x267   :  { %4034 = sst [smem:[#allocation40_spill]] %s3001_s8  ;;  %v915_v31 = vmul.f32 %v914_v26, %v2558_v63  ;;  %v934_v57 = vadd.f32 %v909_v40, %v906_v45  ;;  %v963_v26 = vstv %s2896_s21  ;;  %v1006_v45 = vstv %s2959_s4 }
 0x268   :  { %s3005_s14 = sld [smem:[#allocation2 + $0x107]]  ;;  %v1009_v40 = vstv %s2965_s6 }
 0x269   :  { %s4039_s13 = sld [smem:[#allocation15_spill]]  ;;  %v917_v44 = vstv %s4035_s1  ;;  %v935_v14 = vadd.f32 %v915_v31, %v912_v28  ;;  %v1012_v28 = vstv %s2969_s17  ;;  %v961_v31 = vmul.f32 %v960_v25, %v2566_v4 }
 0x26a   :  { %s3010_s28 = sld [smem:[#allocation2 + $0x108]]  ;;  %v920_v46 = vstv %s4036_s5  ;;  %v918_v2 = vmul.f32 %v917_v44, %v2566_v4  ;;  %v966_v44 = vstv %s2902_s30  ;;  %v1007_v25 = vmul.f32 %v1006_v45, %v2573_v8 }
 0x26b   :  { %s3016_s8 = sld [smem:[#allocation2 + $0x109]]  ;;  %v923_v49 = vstv %s4037_s0  ;;  %v921_v30 = vmul.f32 %v920_v46, %v2573_v8  ;;  %v969_v46 = vstv %s2908_s10  ;;  %v939_v63 = vadd.f32 %v935_v14, %v934_v57 }
 0x26c   :  { %v926_v50 = vstv %s4038_s27  ;;  %s3022_s12 = sld [smem:[#allocation2 + $0x10a]]  ;;  %v924_v37 = vmul.f32 %v923_v49, %v2575_v9  ;;  %v991_v49 = vstv %s2932_s15 }
 0x26d   :  { %s3029_s23 = sld [smem:[#allocation2 + $0x10b]]  ;;  %v927_v56 = vmul.f32 %v926_v50, %v2580_v32  ;;  %v936_v17 = vadd.f32 %v921_v30, %v918_v2  ;;  %v994_v50 = vstv %s2937_s3  ;;  %v964_v2 = vmul.f32 %v963_v26, %v2573_v8 }
 0x26e   :  { %s4040_s7 = sld [smem:[#allocation30_spill]]  ;;  %v967_v30 = vmul.f32 %v966_v44, %v2575_v9  ;;  %v995_v3 = vmul.f32 %v994_v50, %v2552_v59  ;;  %v1010_v26 = vmul.f32 %v1009_v40, %v2575_v9  ;;  %v1013_v44 = vmul.f32 %v1012_v28, %v2580_v32 }
 0x26f   :  { %v886_v43 = vstv %s4039_s13  ;;  %s3035_s5 = sld [smem:[#allocation2 + $0x10c]]  ;;  %v937_v18 = vadd.f32 %v927_v56, %v924_v37  ;;  %v970_v37 = vmul.f32 %v969_v46, %v2580_v32  ;;  %v992_v56 = vmul.f32 %v991_v49, %v2549_v58 }
 0x270   :  { %s4041_s1 = sld [smem:[#allocation16_spill]]  ;;  %v3046_v24 = vmul.f32 %v886_v43, %v2626_v41  ;;  %v1003_v43 = vstv %s2953_s20  ;;  %v978_v9 = vadd.f32 %v958_v22, %v955_v21  ;;  %v972_v32 = vstv %s2915_s9 }
 0x271   :  { %s3041_s13 = sld [smem:[#allocation2 + $0x10d]]  ;;  %v1004_v10 = vmul.f32 %v1003_v43, %v2566_v4  ;;  %v940_v4 = vadd.f32 %v937_v18, %v936_v17  ;;  %v979_v50 = vadd.f32 %v964_v2, %v961_v31  ;;  %v1023_v14 = vadd.f32 %v1013_v44, %v1010_v26 }
 0x272   :  { %s4042_s27 = sld [smem:[#allocation26_spill]]  ;;  %v558_v40 = vadd.f32 %v557_v48, %v2816_v47  ;;  %v601_v28 = vadd.f32 %v600_v52, %v2823_v51  ;;  %v644_v31 = vadd.f32 %v643_v53, %v2912_v55  ;;  %v773_v2 = vadd.f32 %v772_v7, %v2991_v6 }
 0x273   :  { %s4043_s22 = sld [smem:[#allocation27_spill]]  ;;  %v1022_v57 = vadd.f32 %v1007_v25, %v1004_v10  ;;  %v941_v22 = vadd.f32 %v940_v4, %v939_v63  ;;  %v816_v47 = vadd.f32 %v815_v11, %v2997_v38  ;;  %v1043_v63 = vstv %s3005_s14 }
 0x274   :  { %s3050_s25 = sld [smem:[#allocation2 + $0x10e]]  ;;  %v951_v5 = vstv %s4040_s7  ;;  %v3176_v6 = vmax.f32 %v558_v40, 0.0  ;;  %v3178_v7 = vmax.f32 %v601_v28, 0.0  ;;  %v3182_v38 = vmax.f32 %v644_v31, 0.0 }
 0x275   :  { %s3056_s19 = sld [smem:[#allocation2 + $0x10f]]  ;;  %v952_v20 = vmul.f32 %v951_v5, %v2552_v59  ;;  %v998_v5 = vmul.f32 %v997_v34, %v2556_v62  ;;  %v897_v59 = vadd.f32 %v894_v13, %v893_v29  ;;  %v1020_v29 = vadd.f32 %v995_v3, %v992_v56 }
 0x276   :  { %v889_v12 = vstv %s4041_s1  ;;  %s3059_s2 = sld [smem:[#allocation2 + $0x110]]  ;;  %v1026_v45 = vadd.f32 %v1023_v14, %v1022_v57  ;;  %v3188_v56 = vmax.f32 %v773_v2, 0.0  ;;  %v1049_v4 = vstv %s3016_s8 }
 0x277   :  { %s3063_s24 = sld [smem:[#allocation2 + $0x111]]  ;;  %v890_v58 = vmul.f32 %v889_v12, %v2630_v39  ;;  %v977_v8 = vadd.f32 %v952_v20, %v949_v19  ;;  %v980_v12 = vadd.f32 %v970_v37, %v967_v30  ;;  %v1021_v13 = vadd.f32 %v1001_v1, %v998_v5 }
 0x278   :  { %v929_v15 = vstv %s4042_s27  ;;  %s3069_s18 = sld [smem:[#allocation2 + $0x174]]  ;;  %v898_v20 = vadd.f32 %v897_v59, %v3048_v42  ;;  %v1044_v14 = vmul.f32 %v1043_v63, %v3178_v7 }
 0x279   :  { %v932_v16 = vstv %s4043_s22  ;;  %s3075_s11 = sld [smem:[#allocation2 + $0x112]]  ;;  %v930_v62 = vmul.f32 %v929_v15, %v2626_v41  ;;  %v856_v15 = vadd.f32 %v3043_v36, %v3024_v54  ;;  %v895_v19 = vadd.f32 %v890_v58, %v3046_v24 }
 0x27a   :  { %s3081_s0 = sld [smem:[#allocation2 + $0x113]]  ;;  %v933_v46 = vmul.f32 %v932_v16, %v2630_v39  ;;  %v973_v54 = vmul.f32 %v972_v32, %v2626_v41  ;;  %v982_v34 = vadd.f32 %v978_v9, %v977_v8  ;;  %v983_v35 = vadd.f32 %v980_v12, %v979_v50 }
 0x27b   :  { %s3087_s7 = sld [smem:[#allocation2 + $0x114]]  ;;  %v1025_v43 = vadd.f32 %v1021_v13, %v1020_v29  ;;  %v899_v51 = vadd.f32 %v898_v20, %v895_v19  ;;  %v1052_v8 = vstv %s3022_s12  ;;  %v1055_v9 = vstv %s3029_s23 }
 0x27c   :  { %s3093_s16 = sld [smem:[#allocation2 + $0x115]]  ;;  %v938_v21 = vadd.f32 %v933_v46, %v930_v62  ;;  %v984_v55 = vadd.f32 %v983_v35, %v982_v34  ;;  %v1046_v46 = vstv %s3010_s28  ;;  %v1058_v19 = vstv %s3035_s5 }
 0x27d   :  { %s3099_s29 = sld [smem:[#allocation2 + $0x116]]  ;;  %v1027_v37 = vadd.f32 %v1026_v45, %v1025_v43  ;;  %v1061_v20 = vstv %s3041_s13  ;;  %v1070_v40 = vstv %s3059_s2  ;;  %v1073_v28 = vstv %s3063_s24 }
 0x27e   :  { %4044 = sst [smem:[#allocation41_spill]] %s3069_s18  ;;  %v942_v52 = vadd.f32 %v941_v22, %v938_v21  ;;  %v1064_v21 = vstv %s3050_s25  ;;  %v1067_v22 = vstv %s3056_s19 }
 0x27f   :  { %s4045_s21 = sld [smem:[#allocation31_spill]] }
 0x280   :  { %s3105_s3 = sld [smem:[#allocation2 + $0x117]]  ;;  %v1096_v2 = vstv %s3081_s0 }
 0x281   :  { %s3109_s30 = sld [smem:[#allocation2 + $0x118]] }
 0x282   :  { %s4046_s10 = sld [smem:[#allocation8_spill]] }
 0x283   :  { %s4047_s26 = sld [smem:[#allocation33_spill]] }
 0x284   :  { %s4048_s15 = sld [smem:[#allocation12_spill]] }
 0x285   :  { %s3112_s20 = sld [smem:[#allocation2 + $0x119]]  ;;  %v975_v49 = vstv %s4045_s21 }
 0x286   :  { %s3116_s4 = sld [smem:[#allocation2 + $0x11a]]  ;;  %v976_v36 = vmul.f32 %v975_v49, %v2630_v39 }
 0x287   :  { %s3118_s6 = sld [smem:[#allocation2 + $0x11b]] }
 0x288   :  { %v858_v16 = vstv %s4046_s10  ;;  %s3125_s17 = sld [smem:[#allocation2 + $0x11c]]  ;;  %v981_v53 = vadd.f32 %v976_v36, %v973_v54 }
 0x289   :  { %v1015_v17 = vstv %s4047_s26  ;;  %s3129_s21 = sld [smem:[#allocation2 + $0x11d]]  ;;  %v859_v48 = vadd.f32 %v858_v16, %v856_v15  ;;  %v1047_v15 = vmul.f32 %v1046_v46, %v3182_v38 }
 0x28a   :  { %v1018_v18 = vstv %s4048_s15  ;;  %s3133_s15 = sld [smem:[#allocation2 + $0x11e]]  ;;  %v1016_v24 = vmul.f32 %v1015_v17, %v2626_v41  ;;  %v687_v41 = vadd.f32 %v686_v27, %v2919_v33  ;;  %v985_v1 = vadd.f32 %v984_v55, %v981_v53 }
 0x28b   :  { %v1019_v42 = vmul.f32 %v1018_v18, %v2630_v39  ;;  %v730_v39 = vadd.f32 %v729_v60, %v2989_v23  ;;  %s3162_s9 = sld [smem:[#allocation2 + $0x120]]  ;;  %v3171_v60 = vmax.f32 %v2718_v61, 0.0  ;;  %v3174_v23 = vmax.f32 %v2720_v0, 0.0 }
 0x28c   :  { %s3164_s1 = sld [smem:[#allocation2 + $0x121]]  ;;  %v3184_v11 = vmax.f32 %v687_v41, 0.0  ;;  %v3192_v0 = vmax.f32 %v816_v47, 0.0  ;;  %v3196_v10 = vmax.f32 %v859_v48, 0.0  ;;  %v1056_v18 = vmul.f32 %v1055_v9, %v3188_v56 }
 0x28d   :  { %4049 = sst [smem:[#allocation10_spill]] %s3118_s6  ;;  %v1024_v30 = vadd.f32 %v1019_v42, %v1016_v24  ;;  %v3186_v61 = vmax.f32 %v730_v39, 0.0  ;;  %v1093_v39 = vstv %s3075_s11  ;;  %v1099_v47 = vstv %s3087_s7 }
 0x28e   :  { %4050 = sst [smem:[#allocation19_spill]] %s3125_s17  ;;  %v1050_v16 = vmul.f32 %v1049_v4, %v3184_v11  ;;  %v1059_v24 = vmul.f32 %v1058_v19, %v3192_v0  ;;  %v1062_v42 = vmul.f32 %v1061_v20, %v3196_v10  ;;  %v1102_v48 = vstv %s3093_s16 }
 0x28f   :  { %4055 = sst [smem:[#allocation42_spill]] %s3129_s21  ;;  %v1028_v26 = vadd.f32 %v1027_v37, %v1024_v30  ;;  %v1053_v17 = vmul.f32 %v1052_v8, %v3186_v61  ;;  %v1111_v53 = vstv %s3109_s30  ;;  %v1114_v55 = vstv %s3112_s20 }
 0x290   :  { %4059 = sst [smem:[#allocation43_spill]] %s3133_s15  ;;  %v1077_v31 = vadd.f32 %v1050_v16, %v1047_v15  ;;  %v1079_v30 = vadd.f32 %v1062_v42, %v1059_v24 }
 0x291   :  { %s3137_s17 = sld [smem:[#allocation2 + $0x11f]]  ;;  %v1078_v41 = vadd.f32 %v1056_v18, %v1053_v17 }
 0x292   :  { %s4060_s21 = sld [smem:[#allocation17_spill]] }
 0x293   :  { %s4061_s6 = sld [smem:[#allocation29_spill]]  ;;  %v1083_v9 = vadd.f32 %v1078_v41, %v1077_v31 }
 0x294   :  { %s3151_s15 = sld [smem:[#allocation2 + $0x175]] }
 0x295   :  { %4063 = sst [smem:[#allocation35_spill]] %s3164_s1 }
 0x296   :  { %s3168_s18 = sld [smem:[#allocation2 + $0x122]] }
 0x297   :  { %s4065_s27 = sld [smem:[#allocation32_spill]]  ;;  %v1132_v18 = vstv %s3137_s17 }
 0x298   :  { %v901_v27 = vstv %s4060_s21  ;;  %s4066_s22 = sld [smem:[#allocation38_spill]] }
 0x299   :  { %v944_v33 = vstv %s4061_s6  ;;  %s3180_s10 = sld [smem:[#allocation2 + $0x123]]  ;;  %v902_v3 = vadd.f32 %v901_v27, %v899_v51  ;;  %v1105_v51 = vstv %s3099_s29 }
 0x29a   :  { %4062 = sst [smem:[#allocation34_spill]] %s3151_s15  ;;  %v945_v5 = vadd.f32 %v944_v33, %v942_v52  ;;  %v1108_v52 = vstv %s3105_s3 }
 0x29b   :  { %s4068_s21 = sld [smem:[#allocation24_spill]]  ;;  %v3214_v32 = vmax.f32 %v902_v3, 0.0  ;;  %v1094_v3 = vmul.f32 %v1093_v39, %v3171_v60 }
 0x29c   :  { %4064 = sst [smem:[#allocation44_spill]] %s3168_s18  ;;  %v3216_v49 = vmax.f32 %v945_v5, 0.0  ;;  %v1097_v5 = vmul.f32 %v1096_v2, %v3174_v23 }
 0x29d   :  { %s4069_s6 = sld [smem:[#allocation39_spill]]  ;;  %v987_v25 = vstv %s4065_s27  ;;  %v1065_v43 = vmul.f32 %v1064_v21, %v3214_v32  ;;  %v1152_v21 = vstv %s3162_s9 }
 0x29e   :  { %s4070_s26 = sld [smem:[#allocation40_spill]]  ;;  %v1034_v44 = vstv %s4066_s22  ;;  %v988_v50 = vadd.f32 %v987_v25, %v985_v1  ;;  %v1068_v45 = vmul.f32 %v1067_v22, %v3216_v49  ;;  %v1100_v1 = vmul.f32 %v1099_v47, %v3176_v6 }
 0x29f   :  { %4067 = sst [smem:[#allocation45_spill]] %s3180_s10  ;;  %v1035_v12 = vmul.f32 %v1034_v44, %v3171_v60  ;;  %v1103_v25 = vmul.f32 %v1102_v48, %v3178_v7  ;;  %v1109_v44 = vmul.f32 %v1108_v52, %v3184_v11  ;;  %v1153_v31 = vmul.f32 %v1152_v21, %v3171_v60 }
 0x2a0   :  { %s3190_s15 = sld [smem:[#allocation2 + $0x124]]  ;;  %v3240_v54 = vmax.f32 %v988_v50, 0.0  ;;  %v1080_v37 = vadd.f32 %v1068_v45, %v1065_v43 }
 0x2a1   :  { %s3194_s10 = sld [smem:[#allocation2 + $0x125]]  ;;  %v1030_v58 = vstv %s4068_s21 }
 0x2a2   :  { %s3200_s18 = sld [smem:[#allocation2 + $0x126]]  ;;  %v1031_v29 = vadd.f32 %v1030_v58, %v1028_v26  ;;  %v1071_v27 = vmul.f32 %v1070_v40, %v3240_v54  ;;  %v1106_v26 = vmul.f32 %v1105_v51, %v3182_v38  ;;  %v1112_v58 = vmul.f32 %v1111_v53, %v3186_v61 }
 0x2a3   :  { %v1037_v59 = vstv %s4069_s6  ;;  %s3212_s1 = sld [smem:[#allocation2 + $0x128]] }
 0x2a4   :  { %v1040_v62 = vstv %s4070_s26  ;;  %s3219_s14 = sld [smem:[#allocation2 + $0x129]]  ;;  %v1038_v13 = vmul.f32 %v1037_v59, %v3174_v23  ;;  %v3242_v36 = vmax.f32 %v1031_v29, 0.0  ;;  %v1115_v59 = vmul.f32 %v1114_v55, %v3188_v56 }
 0x2a5   :  { %v1041_v57 = vmul.f32 %v1040_v62, %v3176_v6  ;;  %s3224_s12 = sld [smem:[#allocation2 + $0x12a]]  ;;  %v1117_v62 = vstv %s3116_s4  ;;  %v1134_v29 = vadd.f32 %v1097_v5, %v1094_v3  ;;  %v1136_v19 = vadd.f32 %v1109_v44, %v1106_v26 }
 0x2a6   :  { %4071 = sst [smem:[#allocation37_spill]] %s3190_s15  ;;  %v1075_v34 = vadd.f32 %v1038_v13, %v1035_v12  ;;  %v1074_v33 = vmul.f32 %v1073_v28, %v3242_v36  ;;  %v1084_v12 = vadd.f32 %v1080_v37, %v1079_v30  ;;  %v1135_v13 = vadd.f32 %v1103_v25, %v1100_v1 }
 0x2a7   :  { %s3206_s15 = sld [smem:[#allocation2 + $0x127]]  ;;  %v1076_v35 = vadd.f32 %v1044_v14, %v1041_v57  ;;  %v1118_v57 = vmul.f32 %v1117_v62, %v3192_v0  ;;  %v1137_v20 = vadd.f32 %v1115_v59, %v1112_v58  ;;  %v1133_v45 = vmul.f32 %v1132_v18, %v3242_v36 }
 0x2a8   :  { %s3230_s28 = sld [smem:[#allocation2 + $0x12b]]  ;;  %v1081_v50 = vadd.f32 %v1074_v33, %v1071_v27  ;;  %v3326_v47 = vadd.f32 %v1135_v13, %v1134_v29  ;;  %v1167_v52 = vstv %s3194_s10  ;;  %v1170_v53 = vstv %s3200_s18 }
 0x2a9   :  { %s3236_s8 = sld [smem:[#allocation2 + $0x12c]]  ;;  %v1082_v8 = vadd.f32 %v1076_v35, %v1075_v34  ;;  %v3328_v48 = vadd.f32 %v1137_v20, %v1136_v19  ;;  %v1176_v27 = vstv %s3212_s1  ;;  %v1168_v25 = vmul.f32 %v1167_v52, %v3184_v11 }
 0x2aa   :  { %s3238_s23 = sld [smem:[#allocation2 + $0x12d]]  ;;  %v3312_v42 = vadd.f32 %v1084_v12, %v1081_v50  ;;  %v1179_v33 = vstv %s3219_s14  ;;  %v1171_v58 = vmul.f32 %v1170_v53, %v3186_v61  ;;  %v1177_v62 = vmul.f32 %v1176_v27, %v3192_v0 }
 0x2ab   :  { %s3244_s5 = sld [smem:[#allocation2 + $0x176]]  ;;  %v3310_v24 = vadd.f32 %v1083_v9, %v1082_v8  ;;  %v1182_v3 = vstv %s3224_s12 }
 0x2ac   :  { %s3250_s13 = sld [smem:[#allocation2 + $0x12e]] }
 0x2ad   :  { %s3254_s25 = sld [smem:[#allocation2 + $0x12f]]  ;;  %v1173_v55 = vstv %s3206_s15 }
 0x2ae   :  { %s3260_s19 = sld [smem:[#allocation2 + $0x130]]  ;;  %v1185_v5 = vstv %s3230_s28  ;;  %v1174_v59 = vmul.f32 %v1173_v55, %v3188_v56 }
 0x2af   :  { %s3266_s27 = sld [smem:[#allocation2 + $0x131]]  ;;  %v1188_v8 = vstv %s3236_s8 }
 0x2b0   :  { %s4072_s2 = sld [smem:[#allocation10_spill]]  ;;  %v1191_v9 = vstv %s3238_s23  ;;  %v1196_v52 = vadd.f32 %v1174_v59, %v1171_v58  ;;  %v1189_v27 = vmul.f32 %v1188_v8, %v3240_v54 }
 0x2b1   :  { %s4073_s24 = sld [smem:[#allocation19_spill]] }
 0x2b2   :  { %s4074_s11 = sld [smem:[#allocation42_spill]]  ;;  %v1211_v50 = vstv %s3250_s13 }
 0x2b3   :  { %s3270_s0 = sld [smem:[#allocation2 + $0x132]]  ;;  %v1214_v12 = vstv %s3254_s25  ;;  %v1212_v21 = vmul.f32 %v1211_v50, %v3171_v60 }
 0x2b4   :  { %s3276_s7 = sld [smem:[#allocation2 + $0x133]]  ;;  %v1217_v29 = vstv %s3260_s19 }
 0x2b5   :  { %s3282_s16 = sld [smem:[#allocation2 + $0x134]]  ;;  %v1220_v13 = vstv %s3266_s27 }
 0x2b6   :  { %v1120_v63 = vstv %s4072_s2  ;;  %s4075_s29 = sld [smem:[#allocation43_spill]] }
 0x2b7   :  { %v1123_v46 = vstv %s4073_s24  ;;  %s3288_s3 = sld [smem:[#allocation2 + $0x135]]  ;;  %v1121_v14 = vmul.f32 %v1120_v63, %v3196_v10  ;;  %v1180_v63 = vmul.f32 %v1179_v33, %v3196_v10  ;;  %v1192_v33 = vmul.f32 %v1191_v9, %v3242_v36 }
 0x2b8   :  { %v1126_v4 = vstv %s4074_s11  ;;  %s3290_s30 = sld [smem:[#allocation2 + $0x136]]  ;;  %v1124_v15 = vmul.f32 %v1123_v46, %v3214_v32  ;;  %v1183_v46 = vmul.f32 %v1182_v3, %v3214_v32 }
 0x2b9   :  { %s4076_s20 = sld [smem:[#allocation35_spill]]  ;;  %v1127_v16 = vmul.f32 %v1126_v4, %v3216_v49  ;;  %v1138_v40 = vadd.f32 %v1121_v14, %v1118_v57  ;;  %v1186_v4 = vmul.f32 %v1185_v5, %v3216_v49  ;;  %v1223_v57 = vstv %s3270_s0 }
 0x2ba   :  { %s4077_s22 = sld [smem:[#allocation44_spill]]  ;;  %v1226_v14 = vstv %s3276_s7  ;;  %v1197_v3 = vadd.f32 %v1180_v63, %v1177_v62  ;;  %v1144_v62 = vadd.f32 %v3328_v48, %v3326_v47  ;;  %v1087_v47 = vadd.f32 %v3312_v42, %v3310_v24 }
 0x2bb   :  { %s4078_s21 = sld [smem:[#allocation45_spill]]  ;;  %v1139_v28 = vadd.f32 %v1127_v16, %v1124_v15  ;;  %v1229_v15 = vstv %s3282_s16  ;;  %v1198_v5 = vadd.f32 %v1186_v4, %v1183_v46  ;;  %v1199_v46 = vadd.f32 %v1192_v33, %v1189_v27 }
 0x2bc   :  { %s3292_s4 = sld [smem:[#allocation2 + $0x137]]  ;;  %v1129_v17 = vstv %s4075_s29  ;;  %v1207_v27 = vstv %s3244_s5 }
 0x2bd   :  { %s3298_s6 = sld [smem:[#allocation2 + $0x138]]  ;;  %v1130_v43 = vmul.f32 %v1129_v17, %v3240_v54  ;;  %v3342_v37 = vadd.f32 %v1139_v28, %v1138_v40  ;;  %v1232_v16 = vstv %s3288_s3  ;;  %v1230_v40 = vmul.f32 %v1229_v15, %v3186_v61 }
 0x2be   :  { %s3302_s26 = sld [smem:[#allocation2 + $0x139]]  ;;  %v1235_v17 = vstv %s3290_s30  ;;  %v1233_v28 = vmul.f32 %v1232_v16, %v3188_v56  ;;  %v1202_v9 = vadd.f32 %v1198_v5, %v1197_v3 }
 0x2bf   :  { %v1155_v22 = vstv %s4076_s20  ;;  %s3308_s2 = sld [smem:[#allocation2 + $0x13a]]  ;;  %v3340_v30 = vadd.f32 %v1133_v45, %v1130_v43  ;;  %v1224_v43 = vmul.f32 %v1223_v57, %v3182_v38  ;;  %v1227_v45 = vmul.f32 %v1226_v14, %v3184_v11 }
 0x2c0   :  { %v1158_v34 = vstv %s4077_s22  ;;  %s4079_s24 = sld [smem:[#allocation37_spill]]  ;;  %v1156_v41 = vmul.f32 %v1155_v22, %v3174_v23  ;;  %v1215_v22 = vmul.f32 %v1214_v12, %v3174_v23  ;;  %v1204_v42 = vadd.f32 %v1202_v9, %v1199_v46 }
 0x2c1   :  { %v1161_v35 = vstv %s4078_s21  ;;  %s3314_s11 = sld [smem:[#allocation2 + $0x13b]]  ;;  %v1159_v39 = vmul.f32 %v1158_v34, %v3176_v6  ;;  %v1218_v34 = vmul.f32 %v1217_v29, %v3176_v6  ;;  %v1254_v29 = vadd.f32 %v1227_v45, %v1224_v43 }
 0x2c2   :  { %s3318_s17 = sld [smem:[#allocation2 + $0x177]]  ;;  %v1162_v2 = vmul.f32 %v1161_v35, %v3178_v7  ;;  %v3350_v26 = vadd.f32 %v1156_v41, %v1153_v31  ;;  %v1238_v18 = vstv %s3292_s4  ;;  %v1221_v35 = vmul.f32 %v1220_v13, %v3178_v7 }
 0x2c3   :  { %s3324_s9 = sld [smem:[#allocation2 + $0x13c]]  ;;  %v1241_v19 = vstv %s3298_s6  ;;  %v1236_v31 = vmul.f32 %v1235_v17, %v3192_v0  ;;  %v1239_v41 = vmul.f32 %v1238_v18, %v3196_v10  ;;  %v1252_v50 = vadd.f32 %v1215_v22, %v1212_v21 }
 0x2c4   :  { %s3332_s29 = sld [smem:[#allocation2 + $0x13d]]  ;;  %v3352_v44 = vadd.f32 %v1162_v2, %v1159_v39  ;;  %v1244_v20 = vstv %s3302_s26  ;;  %v1242_v39 = vmul.f32 %v1241_v19, %v3214_v32  ;;  %v1253_v12 = vadd.f32 %v1221_v35, %v1218_v34 }
 0x2c5   :  { %s3338_s20 = sld [smem:[#allocation2 + $0x13e]]  ;;  %v1245_v2 = vmul.f32 %v1244_v20, %v3216_v49  ;;  %v1247_v53 = vstv %s3308_s2  ;;  %v1255_v13 = vadd.f32 %v1233_v28, %v1230_v40  ;;  %v1256_v58 = vadd.f32 %v1239_v41, %v1236_v31 }
 0x2c6   :  { %v1164_v51 = vstv %s4079_s24  ;;  %s3346_s22 = sld [smem:[#allocation2 + $0x13f]]  ;;  %v1145_v63 = vadd.f32 %v3342_v37, %v3340_v30  ;;  %v1200_v4 = vadd.f32 %v3352_v44, %v3350_v26  ;;  %v1259_v57 = vadd.f32 %v1253_v12, %v1252_v50 }
 0x2c7   :  { %v1165_v1 = vmul.f32 %v1164_v51, %v3182_v38  ;;  %s3354_s15 = sld [smem:[#allocation2 + $0x140]]  ;;  %v1250_v55 = vstv %s3314_s11  ;;  %v1257_v59 = vadd.f32 %v1245_v2, %v1242_v39  ;;  %v1260_v30 = vadd.f32 %v1255_v13, %v1254_v29 }
 0x2c8   :  { %s3360_s1 = sld [smem:[#allocation2 + $0x141]]  ;;  %v1146_v15 = vadd.f32 %v1145_v63, %v1144_v62  ;;  %v1266_v5 = vstv %s3318_s17 }
 0x2c9   :  { %s3366_s18 = sld [smem:[#allocation2 + $0x142]]  ;;  %v1195_v51 = vadd.f32 %v1168_v25, %v1165_v1  ;;  %v1248_v1 = vmul.f32 %v1247_v53, %v3240_v54  ;;  %v1251_v25 = vmul.f32 %v1250_v55, %v3242_v36  ;;  %v1261_v26 = vadd.f32 %v1257_v59, %v1256_v58 }
 0x2ca   :  { %s3372_s10 = sld [smem:[#allocation2 + $0x143]]  ;;  %v1270_v44 = vstv %s3324_s9  ;;  %v1273_v16 = vstv %s3332_s29  ;;  %v1262_v21 = vadd.f32 %v1260_v30, %v1259_v57 }
 0x2cb   :  { %s3378_s14 = sld [smem:[#allocation2 + $0x144]]  ;;  %v1201_v8 = vadd.f32 %v1196_v52, %v1195_v51  ;;  %v1258_v14 = vadd.f32 %v1251_v25, %v1248_v1  ;;  %v1276_v17 = vstv %s3338_s20  ;;  %v1271_v22 = vmul.f32 %v1270_v44, %v3171_v60 }
 0x2cc   :  { %s3384_s12 = sld [smem:[#allocation2 + $0x145]]  ;;  %v1279_v18 = vstv %s3346_s22  ;;  %v1274_v45 = vmul.f32 %v1273_v16, %v3174_v23  ;;  %v1277_v40 = vmul.f32 %v1276_v17, %v3176_v6 }
 0x2cd   :  { %s3390_s28 = sld [smem:[#allocation2 + $0x146]]  ;;  %v1203_v24 = vadd.f32 %v1201_v8, %v1200_v4  ;;  %v1282_v19 = vstv %s3354_s15  ;;  %v1263_v43 = vadd.f32 %v1261_v26, %v1258_v14  ;;  %v1280_v28 = vmul.f32 %v1279_v18, %v3178_v7 }
 0x2ce   :  { %s3396_s8 = sld [smem:[#allocation2 + $0x147]]  ;;  %v1285_v20 = vstv %s3360_s1  ;;  %v1283_v31 = vmul.f32 %v1282_v19, %v3182_v38  ;;  %v1311_v50 = vadd.f32 %v1274_v45, %v1271_v22 }
 0x2cf   :  { %s3402_s23 = sld [smem:[#allocation2 + $0x148]]  ;;  %v1288_v34 = vstv %s3366_s18  ;;  %v1286_v41 = vmul.f32 %v1285_v20, %v3184_v11  ;;  %v1205_v55 = vadd.f32 %v1204_v42, %v1203_v24  ;;  %v1264_v3 = vadd.f32 %v1263_v43, %v1262_v21 }
 0x2d0   :  { %s3406_s13 = sld [smem:[#allocation2 + $0x149]]  ;;  %v1291_v35 = vstv %s3372_s10  ;;  %v1289_v2 = vmul.f32 %v1288_v34, %v3186_v61  ;;  %v1312_v12 = vadd.f32 %v1280_v28, %v1277_v40 }
 0x2d1   :  { %s3410_s25 = sld [smem:[#allocation2 + $0x178]]  ;;  %v1292_v51 = vmul.f32 %v1291_v35, %v3188_v56  ;;  %v1294_v52 = vstv %s3378_s14  ;;  %v1313_v25 = vadd.f32 %v1286_v41, %v1283_v31  ;;  %v3516_v21 = vadd.f32 %v1207_v27, %v1205_v55 }
 0x2d2   :  { %s4080_s19 = sld [smem:[#allocation41_spill]]  ;;  %v1297_v33 = vstv %s3384_s12  ;;  %v1295_v29 = vmul.f32 %v1294_v52, %v3192_v0  ;;  %v3518_v22 = vadd.f32 %v1266_v5, %v1264_v3  ;;  %v3522_v35 = vadd.f32 %v1312_v12, %v1311_v50 }
 0x2d3   :  { %s3412_s27 = sld [smem:[#allocation2 + $0x14a]]  ;;  %v1300_v13 = vstv %s3390_s28  ;;  %v1298_v58 = vmul.f32 %v1297_v33, %v3196_v10  ;;  %v1314_v59 = vadd.f32 %v1292_v51, %v1289_v2 }
 0x2d4   :  { %s4081_s0 = sld [smem:[#allocation34_spill]]  ;;  %v1303_v1 = vstv %s3396_s8 }
 0x2d5   :  { %s3416_s7 = sld [smem:[#allocation2 + $0x14b]]  ;;  %v3520_v34 = vadd.f32 %v1298_v58, %v1295_v29  ;;  %v3532_v40 = vadd.f32 %v1314_v59, %v1313_v25 }
 0x2d6   :  { %s3422_s16 = sld [smem:[#allocation2 + $0x14c]]  ;;  %v1309_v14 = vstv %s3406_s13 }
 0x2d7   :  { %s3426_s3 = sld [smem:[#allocation2 + $0x14d]]  ;;  %v3530_v45 = vmul.f32 %v1309_v14, %v3242_v36 }
 0x2d8   :  { %v1089_v48 = vstv %s4080_s19  ;;  %s3431_s30 = sld [smem:[#allocation2 + $0x14e]] }
 0x2d9   :  { %s3435_s21 = sld [smem:[#allocation2 + $0x14f]]  ;;  %v3460_v39 = vadd.f32 %v1089_v48, %v1087_v47  ;;  %v1329_v62 = vstv %s3412_s27  ;;  %v1301_v47 = vmul.f32 %v1300_v13, %v3214_v32  ;;  %v1304_v48 = vmul.f32 %v1303_v1, %v3216_v49 }
 0x2da   :  { %v1148_v37 = vstv %s4081_s0  ;;  %s3440_s4 = sld [smem:[#allocation2 + $0x150]]  ;;  %v1330_v26 = vmul.f32 %v1329_v62, %v3171_v60 }
 0x2db   :  { %s3444_s6 = sld [smem:[#allocation2 + $0x151]]  ;;  %v3467_v53 = vadd.f32 %v1148_v37, %v1146_v15  ;;  %v1332_v63 = vstv %s3416_s7  ;;  %v1306_v37 = vstv %s3402_s23  ;;  %v3537_v31 = vadd.f32 %v1304_v48, %v1301_v47 }
 0x2dc   :  { %s3449_s26 = sld [smem:[#allocation2 + $0x152]]  ;;  %v1335_v46 = vstv %s3422_s16  ;;  %v1333_v44 = vmul.f32 %v1332_v63, %v3174_v23  ;;  %v3527_v43 = vmul.f32 %v1306_v37, %v3240_v54 }
 0x2dd   :  { %s3454_s2 = sld [smem:[#allocation2 + $0x153]]  ;;  %v1338_v4 = vstv %s3426_s3  ;;  %v1336_v15 = vmul.f32 %v1335_v46, %v3176_v6 }
 0x2de   :  { %s3458_s24 = sld [smem:[#allocation2 + $0x154]]  ;;  %v1341_v8 = vstv %s3431_s30  ;;  %v1339_v16 = vmul.f32 %v1338_v4, %v3178_v7  ;;  %v1370_v52 = vadd.f32 %v1333_v44, %v1330_v26 }
 0x2df   :  { %s3465_s11 = sld [smem:[#allocation2 + $0x155]]  ;;  %v1344_v9 = vstv %s3435_s21  ;;  %v1342_v17 = vmul.f32 %v1341_v8, %v3182_v38 }
 0x2e0   :  { %s3471_s9 = sld [smem:[#allocation2 + $0x156]]  ;;  %v1347_v57 = vstv %s3440_s4  ;;  %v1345_v18 = vmul.f32 %v1344_v9, %v3184_v11  ;;  %v1371_v55 = vadd.f32 %v1339_v16, %v1336_v15 }
 0x2e1   :  { %s3474_s29 = sld [smem:[#allocation2 + $0x157]]  ;;  %v1350_v30 = vstv %s3444_s6  ;;  %v1348_v24 = vmul.f32 %v1347_v57, %v3186_v61 }
 0x2e2   :  { %s3479_s5 = sld [smem:[#allocation2 + $0x179]]  ;;  %v1351_v42 = vmul.f32 %v1350_v30, %v3188_v56  ;;  %v1353_v19 = vstv %s3449_s26  ;;  %v1372_v27 = vadd.f32 %v1345_v18, %v1342_v17 }
 0x2e3   :  { %s3484_s17 = sld [smem:[#allocation2 + $0x158]]  ;;  %v1356_v20 = vstv %s3454_s2  ;;  %v1354_v41 = vmul.f32 %v1353_v19, %v3192_v0 }
 0x2e4   :  { %s3490_s20 = sld [smem:[#allocation2 + $0x159]]  ;;  %v1359_v28 = vstv %s3458_s24  ;;  %v1357_v2 = vmul.f32 %v1356_v20, %v3196_v10  ;;  %v1373_v33 = vadd.f32 %v1351_v42, %v1348_v24 }
 0x2e5   :  { %s3496_s22 = sld [smem:[#allocation2 + $0x15a]]  ;;  %v1362_v51 = vstv %s3465_s11  ;;  %v1360_v3 = vmul.f32 %v1359_v28, %v3214_v32 }
 0x2e6   :  { %s3502_s15 = sld [smem:[#allocation2 + $0x15b]]  ;;  %v1363_v29 = vmul.f32 %v1362_v51, %v3216_v49  ;;  %v1365_v58 = vstv %s3471_s9  ;;  %v1374_v62 = vadd.f32 %v1357_v2, %v1354_v41 }
 0x2e7   :  { %s3508_s1 = sld [smem:[#allocation2 + $0x15c]]  ;;  %v1368_v59 = vstv %s3474_s29  ;;  %v1366_v15 = vmul.f32 %v1365_v58, %v3240_v54  ;;  %v1320_v58 = vadd.f32 %v3537_v31, %v3520_v34 }
 0x2e8   :  { %s3514_s18 = sld [smem:[#allocation2 + $0x15d]]  ;;  %v1369_v16 = vmul.f32 %v1368_v59, %v3242_v36  ;;  %v1375_v24 = vadd.f32 %v1363_v29, %v1360_v3  ;;  %v1317_v29 = vadd.f32 %v3530_v45, %v3527_v43  ;;  %v1377_v59 = vadd.f32 %v1371_v55, %v1370_v52 }
 0x2e9   :  { %s3524_s10 = sld [smem:[#allocation2 + $0x15e]]  ;;  %v1388_v5 = vstv %s3484_s17 }
 0x2ea   :  { %s3535_s14 = sld [smem:[#allocation2 + $0x15f]]  ;;  %v1391_v50 = vstv %s3490_s20  ;;  %v1389_v46 = vmul.f32 %v1388_v5, %v3171_v60  ;;  %v1379_v43 = vadd.f32 %v1375_v24, %v1374_v62 }
 0x2eb   :  { %s3542_s12 = sld [smem:[#allocation2 + $0x160]]  ;;  %v1394_v12 = vstv %s3496_s22  ;;  %v1392_v4 = vmul.f32 %v1391_v50, %v3174_v23 }
 0x2ec   :  { %s3544_s28 = sld [smem:[#allocation2 + $0x161]]  ;;  %v1397_v13 = vstv %s3502_s15  ;;  %v1395_v8 = vmul.f32 %v1394_v12, %v3176_v6 }
 0x2ed   :  { %s3550_s8 = sld [smem:[#allocation2 + $0x162]]  ;;  %v1400_v1 = vstv %s3508_s1  ;;  %v1398_v47 = vmul.f32 %v1397_v13, %v3178_v7  ;;  %v1429_v20 = vadd.f32 %v1392_v4, %v1389_v46  ;;  %v1321_v13 = vadd.f32 %v3532_v40, %v3522_v35 }
 0x2ee   :  { %v1403_v25 = vstv %s3514_s18  ;;  %s3556_s23 = sld [smem:[#allocation2 + $0x163]]  ;;  %v1401_v48 = vmul.f32 %v1400_v1, %v3182_v38  ;;  %v1376_v4 = vadd.f32 %v1369_v16, %v1366_v15 }
 0x2ef   :  { %v1406_v63 = vstv %s3524_s10  ;;  %s3561_s13 = sld [smem:[#allocation2 + $0x164]]  ;;  %v1404_v57 = vmul.f32 %v1403_v25, %v3184_v11  ;;  %v1430_v2 = vadd.f32 %v1398_v47, %v1395_v8 }
 0x2f0   :  { %v1409_v9 = vstv %s3535_s14  ;;  %s3567_s19 = sld [smem:[#allocation2 + $0x165]]  ;;  %v1407_v37 = vmul.f32 %v1406_v63, %v3186_v61  ;;  %v1378_v63 = vadd.f32 %v1373_v33, %v1372_v27  ;;  %v1322_v27 = vadd.f32 %v1320_v58, %v1317_v29 }
 0x2f1   :  { %v1412_v30 = vstv %s3542_s12  ;;  %s3573_s27 = sld [smem:[#allocation2 + $0x17a]]  ;;  %v1410_v14 = vmul.f32 %v1409_v9, %v3188_v56  ;;  %v1431_v51 = vadd.f32 %v1404_v57, %v1401_v48  ;;  %v1436_v45 = vadd.f32 %v1430_v2, %v1429_v20 }
 0x2f2   :  { %v1413_v26 = vmul.f32 %v1412_v30, %v3192_v0  ;;  %v1415_v44 = vstv %s3544_s28  ;;  %s3579_s0 = sld [smem:[#allocation2 + $0x166]]  ;;  %v1325_v33 = vstv %s3410_s25  ;;  %v1380_v57 = vadd.f32 %v1378_v63, %v1377_v59 }
 0x2f3   :  { %v1416_v17 = vmul.f32 %v1415_v44, %v3196_v10  ;;  %v1418_v18 = vstv %s3550_s8  ;;  %s3585_s7 = sld [smem:[#allocation2 + $0x167]]  ;;  %v1432_v12 = vadd.f32 %v1410_v14, %v1407_v37  ;;  %v1381_v30 = vadd.f32 %v1379_v43, %v1376_v4 }
 0x2f4   :  { %v1419_v42 = vmul.f32 %v1418_v18, %v3214_v32  ;;  %v1421_v19 = vstv %s3556_s23  ;;  %s3589_s16 = sld [smem:[#allocation2 + $0x168]]  ;;  %v1323_v16 = vadd.f32 %v1322_v27, %v1321_v13  ;;  %v1150_v63 = vmax.f32 %v3467_v53, 0.0 }
 0x2f5   :  { %v1422_v28 = vmul.f32 %v1421_v19, %v3216_v49  ;;  %v1424_v41 = vstv %s3561_s13  ;;  %s3593_s3 = sld [smem:[#allocation2 + $0x169]]  ;;  %v1433_v3 = vadd.f32 %v1416_v17, %v1413_v26  ;;  %v1437_v8 = vadd.f32 %v1432_v12, %v1431_v51 }
 0x2f6   :  { %v1425_v5 = vmul.f32 %v1424_v41, %v3240_v54  ;;  %v1427_v50 = vstv %s3567_s19  ;;  %s3597_s30 = sld [smem:[#allocation2 + $0x16a]]  ;;  %v1326_v13 = vadd.f32 %v1325_v33, %v1323_v16 }
 0x2f7   :  { %v1428_v1 = vmul.f32 %v1427_v50, %v3242_v36  ;;  %v1434_v25 = vadd.f32 %v1422_v28, %v1419_v42  ;;  %s3604_s21 = sld [smem:[#allocation2 + $0x16b]]  ;;  %v1384_v42 = vstv %s3479_s5 }
 0x2f8   :  { %v1447_v46 = vstv %s3579_s0  ;;  %s3609_s4 = sld [smem:[#allocation2 + $0x16c]] }
 0x2f9   :  { %v1450_v35 = vstv %s3585_s7  ;;  %s3612_s6 = sld [smem:[#allocation2 + $0x16d]]  ;;  %v1435_v40 = vadd.f32 %v1428_v1, %v1425_v5  ;;  %v1438_v9 = vadd.f32 %v1434_v25, %v1433_v3  ;;  %v1448_v34 = vmul.f32 %v1447_v46, %v3171_v60 }
 0x2fa   :  { %v1453_v47 = vstv %s3589_s16  ;;  %s3615_s26 = sld [smem:[#allocation2 + $0x16e]]  ;;  %v1451_v31 = vmul.f32 %v1450_v35, %v3174_v23  ;;  %v1268_v46 = vmax.f32 %v3518_v22, 0.0 }
 0x2fb   :  { %v1454_v52 = vmul.f32 %v1453_v47, %v3176_v6  ;;  %v1456_v55 = vstv %s3593_s3  ;;  %s3621_s2 = sld [smem:[#allocation2 + $0x16f]]  ;;  %v1439_v6 = vadd.f32 %v1437_v8, %v1436_v45  ;;  %v1440_v37 = vadd.f32 %v1438_v9, %v1435_v40 }
 0x2fc   :  { %v1457_v62 = vmul.f32 %v1456_v55, %v3178_v7  ;;  %v1459_v48 = vstv %s3597_s30  ;;  %s3626_s24 = sld [smem:[#allocation2 + $0x170]]  ;;  %v1488_v15 = vadd.f32 %v1451_v31, %v1448_v34  ;;  %v1327_v40 = vmax.f32 %v1326_v13, 0.0 }
 0x2fd   :  { %v1460_v60 = vmul.f32 %v1459_v48, %v3182_v38  ;;  %v1462_v23 = vstv %s3604_s21  ;;  %s3630_s11 = sld [smem:[#allocation2 + $0x171]]  ;;  %v1441_v20 = vadd.f32 %v1440_v37, %v1439_v6 }
 0x2fe   :  { %v1463_v14 = vmul.f32 %v1462_v23, %v3184_v11  ;;  %v1465_v26 = vstv %s3609_s4  ;;  %s3634_s25 = sld [smem:[#allocation2 + $0x172]]  ;;  %v1489_v38 = vadd.f32 %v1457_v62, %v1454_v52  ;;  %v1382_v11 = vadd.f32 %v1381_v30, %v1380_v57 }
 0x2ff   :  { %v1466_v7 = vmul.f32 %v1465_v26, %v3186_v61  ;;  %v1468_v44 = vstv %s3612_s6  ;;  %s3638_s9 = sld [smem:[#allocation2 + $0x173]] }
 0x300   :  { %v1469_v17 = vmul.f32 %v1468_v44, %v3188_v56  ;;  %v1471_v18 = vstv %s3615_s26  ;;  %v1490_v24 = vadd.f32 %v1463_v14, %v1460_v60  ;;  %s3642_s29 = sld [smem:[#allocation2 + $0x17b]]  ;;  %v1443_v56 = vstv %s3573_s27 }
 0x301   :  { %v1472_v61 = vmul.f32 %v1471_v18, %v3192_v0  ;;  %v1474_v19 = vstv %s3621_s2  ;;  %s3647_s17 = sld [smem:[#allocation2 + $0x17c]]  ;;  %v1495_v50 = vadd.f32 %v1489_v38, %v1488_v15  ;;  %v1444_v58 = vadd.f32 %v1443_v56, %v1441_v20 }
 0x302   :  { %v1475_v28 = vmul.f32 %v1474_v19, %v3196_v10  ;;  %v1477_v41 = vstv %s3626_s24  ;;  %v1491_v2 = vadd.f32 %v1469_v17, %v1466_v7  ;;  %s3651_s20 = sld [smem:[#allocation2 + $0x17d]]  ;;  %v1091_v10 = vmax.f32 %v3460_v39, 0.0 }
 0x303   :  { %v1478_v51 = vmul.f32 %v1477_v41, %v3214_v32  ;;  %v1480_v5 = vstv %s3630_s11  ;;  %s3656_s22 = sld [smem:[#allocation2 + $0x17e]]  ;;  %v1385_v32 = vadd.f32 %v1384_v42, %v1382_v11  ;;  %v1209_v39 = vmax.f32 %v3516_v21, 0.0 }
 0x304   :  { %v1481_v0 = vmul.f32 %v1480_v5, %v3216_v49  ;;  %v1483_v12 = vstv %s3634_s25  ;;  %v1492_v3 = vadd.f32 %v1475_v28, %v1472_v61  ;;  %v1496_v29 = vadd.f32 %v1491_v2, %v1490_v24  ;;  %s3660_s5 = sld [smem:[#allocation2 + $0x17f]] }
 0x305   :  { %v1484_v1 = vmul.f32 %v1483_v12, %v3240_v54  ;;  %v1486_v25 = vstv %s3638_s9  ;;  %s3665_s15 = sld [smem:[#allocation2 + $0x180]]  ;;  %v1386_v8 = vmax.f32 %v1385_v32, 0.0  ;;  %v1445_v9 = vmax.f32 %v1444_v58, 0.0 }
 0x306   :  { %v1487_v49 = vmul.f32 %v1486_v25, %v3242_v36  ;;  %v1493_v59 = vadd.f32 %v1481_v0, %v1478_v51  ;;  %s1929_s1 = sld [smem:[#allocation2 + $0x181]]  ;;  %v1498_v54 = vadd.f32 %v1496_v29, %v1495_v50  ;;  %v1502_v53 = vstv %s3642_s29 }
 0x307   :  { %s1930_s18 = sld [smem:[#allocation2 + $0x182]]  ;;  %v1506_v45 = vstv %s3647_s17 }
 0x308   :  { %v1494_v4 = vadd.f32 %v1487_v49, %v1484_v1  ;;  %v1497_v43 = vadd.f32 %v1493_v59, %v1492_v3  ;;  %v1509_v35 = vstv %s3651_s20  ;;  %s1931_s10 = sld [smem:[#allocation2 + $0x183]]  ;;  %v1507_v31 = vmul.f32 %v1506_v45, %v1091_v10 }
 0x309   :  { %v1512_v36 = vstv %s3656_s22  ;;  %v1510_v52 = vmul.f32 %v1509_v35, %v1150_v63  ;;  %s1932_s14 = sld [smem:[#allocation2 + $0x184]] }
 0x30a   :  { %v1499_v47 = vadd.f32 %v1497_v43, %v1494_v4  ;;  %v1515_v34 = vstv %s3660_s5  ;;  %v1513_v22 = vmul.f32 %v1512_v36, %v1209_v39  ;;  %s4082_s8 = sld [smem:[#allocation81_spill]] }
 0x30b   :  { %v1518_v21 = vstv %s3665_s15  ;;  %v1516_v27 = vmul.f32 %v1515_v34, %v1268_v46  ;;  %v1529_v37 = vadd.f32 %v1510_v52, %v1507_v31 }
 0x30c   :  { %v1500_v55 = vadd.f32 %v1499_v47, %v1498_v54  ;;  %v1521_v33 = vstv %s1929_s1  ;;  %v1519_v57 = vmul.f32 %v1518_v21, %v1327_v40 }
 0x30d   :  { %v1524_v62 = vstv %s1930_s18  ;;  %v1522_v30 = vmul.f32 %v1521_v33, %v1386_v8  ;;  %v1530_v14 = vadd.f32 %v1516_v27, %v1513_v22 }
 0x30e   :  { %v1503_v48 = vadd.f32 %v1502_v53, %v1500_v55  ;;  %v1527_v60 = vstv %s1931_s10  ;;  %v1525_v6 = vmul.f32 %v1524_v62, %v1445_v9 }
 0x30f   :  { %v1531_v7 = vadd.f32 %v1522_v30, %v1519_v57  ;;  %v1533_v15 = vadd.f32 %v1530_v14, %v1529_v37  ;;  %v1537_v16 = vstv %s1932_s14 }
 0x310   :  { %v1504_v23 = vmax.f32 %v1503_v48, 0.0 }
 0x312   :  { %v1528_v26 = vmul.f32 %v1527_v60, %v1504_v23 }
 0x314   :  { %v1532_v44 = vadd.f32 %v1528_v26, %v1525_v6 }
 0x316   :  { %v1534_v38 = vadd.f32 %v1532_v44, %v1531_v7 }
 0x318   :  { %v1535_v17 = vadd.f32 %v1534_v38, %v1533_v15 }
 0x31a   :  { %v1538_v18 = vadd.f32 %v1537_v16, %v1535_v17 }
 0x31c   :  { %1539 = vst [vmem:[%s4082_s8] sm:$0x1] %v1538_v18 }
 0x31d   :  { %1544 = vsyncpa [#allocation3], 1 }

</bundles_post_ra>
